<compile_context>
chip_gen: v6e
topology: v6e:2x2x1
jax: 0.10.0
libtpu: 0.0.40
codegen_flags: <defaults>
</compile_context>

<pallas_src>
import functools

import jax
import jax.numpy as jnp
from jax.experimental import pallas as pl
from jax.experimental.pallas import tpu as pltpu


# ---------------------------------------------------------------------------
# Plain-JAX glue: SE(3) + projection + bilinear warp (project_depth_volume)
# ---------------------------------------------------------------------------
def quat_trans_to_matrix(vec):
    """vec [..., 7] = (tx, ty, tz, qx, qy, qz, qw) -> 4x4 SE(3) matrices."""
    t = vec[..., :3]
    q = vec[..., 3:]
    q = q / jnp.linalg.norm(q, axis=-1, keepdims=True)
    qx, qy, qz, qw = q[..., 0], q[..., 1], q[..., 2], q[..., 3]
    R = jnp.stack(
        [
            1 - 2 * (qy**2 + qz**2), 2 * (qx * qy - qz * qw), 2 * (qx * qz + qy * qw),
            2 * (qx * qy + qz * qw), 1 - 2 * (qx**2 + qz**2), 2 * (qy * qz - qx * qw),
            2 * (qx * qz - qy * qw), 2 * (qy * qz + qx * qw), 1 - 2 * (qx**2 + qy**2),
        ],
        axis=-1,
    ).reshape(vec.shape[:-1] + (3, 3))
    M = jnp.zeros(vec.shape[:-1] + (4, 4), vec.dtype)
    M = M.at[..., :3, :3].set(R)
    M = M.at[..., :3, 3].set(t)
    M = M.at[..., 3, 3].set(1.0)
    return M


def grid_sample_bilinear(img, grid):
    """F.grid_sample(mode='bilinear', align_corners=True, padding_mode='zeros').
    img [N,C,H,W], grid [N,Hg,Wg,2] in [-1,1] (x, y) -> [N,C,Hg,Wg]."""
    N, C, H, W = img.shape

    def sample_one(img_n, grid_n):
        x = (grid_n[..., 0] + 1.0) * 0.5 * (W - 1)
        y = (grid_n[..., 1] + 1.0) * 0.5 * (H - 1)
        x0 = jnp.floor(x)
        x1 = x0 + 1.0
        y0 = jnp.floor(y)
        y1 = y0 + 1.0
        wx1 = x - x0
        wx0 = 1.0 - wx1
        wy1 = y - y0
        wy0 = 1.0 - wy1

        def gather(ix, iy):
            valid = (ix >= 0) & (ix <= W - 1) & (iy >= 0) & (iy <= H - 1)
            ixc = jnp.clip(ix, 0, W - 1).astype(jnp.int32)
            iyc = jnp.clip(iy, 0, H - 1).astype(jnp.int32)
            vals = img_n[:, iyc, ixc]  # [C, Hg, Wg]
            return vals * valid[None].astype(img_n.dtype)

        return ((wy0 * wx0)[None] * gather(x0, y0)
                + (wy0 * wx1)[None] * gather(x1, y0)
                + (wy1 * wx0)[None] * gather(x0, y1)
                + (wy1 * wx1)[None] * gather(x1, y1))

    return jax.vmap(sample_one)(img, grid)


def project_depth_volume(T_mats, feats, depths_vec, intrinsics, min_depth=0.1):
    """T_mats [b,f,4,4], feats [b,f,c,h,w], depths_vec [d], intrinsics [b,4].
    Returns volumes [b,f,c,d,h,w] directly (no post-transpose): the depth axis
    is folded into the grid's row axis so grid_sample emits c before (d,h,w)."""
    b, f, c, h, w = feats.shape
    d = depths_vec.shape[0]
    fx = intrinsics[:, 0][:, None, None, None, None]
    fy = intrinsics[:, 1][:, None, None, None, None]
    cx = intrinsics[:, 2][:, None, None, None, None]
    cy = intrinsics[:, 3][:, None, None, None, None]
    vv, uu = jnp.meshgrid(
        jnp.arange(h, dtype=feats.dtype), jnp.arange(w, dtype=feats.dtype),
        indexing="ij")
    z = jnp.broadcast_to(depths_vec[None, None, :, None, None], (b, f, d, h, w))
    z = jnp.maximum(z, min_depth)
    X = (uu - cx) / fx * z
    Y = (vv - cy) / fy * z
    pts = jnp.stack([X, Y, z, jnp.ones_like(z)], axis=-1)          # [b,f,d,h,w,4]
    pts_t = jnp.einsum("bfij,bfdhwj->bfdhwi", T_mats, pts)
    Zp = jnp.maximum(pts_t[..., 2], min_depth)
    up = fx * pts_t[..., 0] / Zp + cx
    vp = fy * pts_t[..., 1] / Zp + cy
    grid = jnp.stack([2.0 * up / (w - 1) - 1.0,
                      2.0 * vp / (h - 1) - 1.0], axis=-1)          # [b,f,d,h,w,2]
    sampled = grid_sample_bilinear(
        feats.reshape(b * f, c, h, w), grid.reshape(b * f, d * h, w, 2))
    return sampled.reshape(b, f, c, d, h, w)


# ---------------------------------------------------------------------------
# Pallas kernel: fused 1x1x1 conv (2C->C, split halves) + pointwise residual
# block + mean over frames.  Channels-first: tiles are [C, s_tile].
# ---------------------------------------------------------------------------
def _avg_block_kernel(xij_ref, f0_ref, w1a_ref, w1b_ref, b1_ref,
                      w2_ref, b2_ref, w3_ref, b3_ref,
                      out_ref, base_ref, *, inv_f, n_rep, hw):
    fi = pl.program_id(2)

    @pl.when(fi == 0)
    def _init_base():
        # Frame-independent half of conv1: the identity-warped volume equals
        # feats[:, 0] on every depth plane, so compute w1a @ feats0 + b1 once
        # and replicate it across the n_rep planes of this tile in VMEM.
        c_ii = jnp.dot(w1a_ref[...], f0_ref[0],
                       preferred_element_type=jnp.float32) + b1_ref[...]
        for r in range(n_rep):                       # static unrolled stores
            base_ref[:, r * hw:(r + 1) * hw] = c_ii

    x = xij_ref[0, 0]                                # (C, s_tile), bf16
    # conv1 (warped half) + frame-independent base
    y = base_ref[...] + jnp.dot(w1b_ref[...], x,
                                preferred_element_type=jnp.float32)
    # TODO(synk): ResConv3D definition not in the reference source; implemented
    # as a pointwise residual block (1x1x1 conv, ReLU, 1x1x1 conv, skip, ReLU).
    r = jnp.maximum(
        jnp.dot(w2_ref[...], y, preferred_element_type=jnp.float32) + b2_ref[...],
        0.0)
    r = jnp.dot(w3_ref[...], r, preferred_element_type=jnp.float32) + b3_ref[...]
    y = jnp.maximum(y + r, 0.0)

    # Mean over frames accumulated directly in the resident output block.
    @pl.when(fi == 0)
    def _first():
        out_ref[0] = y

    @pl.when(fi > 0)
    def _accum():
        out_ref[0] += y

    @pl.when(fi == pl.num_programs(2) - 1)
    def _final():
        out_ref[0] *= inv_f


def _pick_s_tile(d, hw, b, target_lanes=8192):
    """Spatial tile = whole depth planes; biggest within the lane target, but
    keep >= 2 parallel grid points so a v7x megacore can shard the grid."""
    divisors = [k for k in range(1, d + 1) if d % k == 0]
    d_tile = 1
    for k in divisors:
        if k * hw <= max(target_lanes, hw):
            d_tile = k
    if b * (d // d_tile) < 2:
        smaller = [k for k in divisors if k < d_tile]
        if smaller:
            d_tile = smaller[-1]
    s_tile = d_tile * hw
    if s_tile % 128 != 0 and s_tile != d * hw:
        s_tile = d * hw          # full-extent block is always a legal shape
    return s_tile


def avg_block_head_pallas(x_ij, feats0, params, *, hw, s_tile=None):
    """x_ij: [b, f_eff, C, S] bf16 warped cost volume (S = d*h*w, channels
    first).  feats0: [b, C, h*w] bf16 reference-frame features.
    Returns [b, C, S] float32."""
    b, f_eff, C, S = x_ij.shape
    assert S % hw == 0, (S, hw)
    w1a, w1b, b1, w2, b2, w3, b3 = params

    if s_tile is None:
        s_tile = _pick_s_tile(S // hw, hw, b)
    assert S % s_tile == 0 and s_tile % hw == 0, (S, s_tile, hw)
    assert s_tile % 128 == 0 or s_tile == S, s_tile
    n_rep = s_tile // hw
    n_s = S // s_tile
    grid = (b, n_s, f_eff)

    # VMEM budget: double-buffered input + f0 + f32 output, plus base scratch.
    vmem_est = (2 * C * s_tile * x_ij.dtype.itemsize
                + 2 * C * hw * feats0.dtype.itemsize
                + 2 * C * s_tile * 4
                + C * s_tile * 4
                + 4 * C * C * 4 + 16 * C)
    vmem_limit = int(min(max(2 * vmem_est, 32 * 1024 * 1024), 48 * 1024 * 1024))

    kernel = functools.partial(_avg_block_kernel, inv_f=1.0 / f_eff,
                               n_rep=n_rep, hw=hw)
    return pl.pallas_call(
        kernel,
        out_shape=jax.ShapeDtypeStruct((b, C, S), jnp.float32),
        grid_spec=pltpu.PrefetchScalarGridSpec(
            num_scalar_prefetch=0,
            grid=grid,
            in_specs=[
                pl.BlockSpec((1, 1, C, s_tile), lambda i, s, j: (i, j, 0, s)),
                pl.BlockSpec((1, C, hw), lambda i, s, j: (i, 0, 0)),
                pl.BlockSpec((C, C), lambda i, s, j: (0, 0)),
                pl.BlockSpec((C, C), lambda i, s, j: (0, 0)),
                pl.BlockSpec((C, 1), lambda i, s, j: (0, 0)),
                pl.BlockSpec((C, C), lambda i, s, j: (0, 0)),
                pl.BlockSpec((C, 1), lambda i, s, j: (0, 0)),
                pl.BlockSpec((C, C), lambda i, s, j: (0, 0)),
                pl.BlockSpec((C, 1), lambda i, s, j: (0, 0)),
            ],
            out_specs=pl.BlockSpec((1, C, s_tile), lambda i, s, j: (i, 0, s)),
            scratch_shapes=[pltpu.VMEM((C, s_tile), jnp.float32)],
        ),
        compiler_params=pltpu.CompilerParams(
            dimension_semantics=("parallel", "parallel", "arbitrary"),
            vmem_limit_bytes=vmem_limit),
    )(x_ij, feats0, w1a, w1b, b1, w2, b2, w3, b3)


# ---------------------------------------------------------------------------
# AvgBlock module (JAX / Pallas)
# ---------------------------------------------------------------------------
class AvgBlockPallas:
    def __init__(self, depths_vec, dim=32, key=jax.random.PRNGKey(42)):
        self.depths_vec = depths_vec
        self.dim = dim
        ks = jax.random.split(key, 7)
        s1 = 1.0 / jnp.sqrt(2.0 * dim)
        # conv1 (2C->C 1x1x1) split into its two channel halves, [C_out, C_in],
        # bf16 to match the bf16 cost-volume feed.
        w1a = (s1 * jax.random.normal(ks[0], (dim, dim), jnp.float32)).astype(jnp.bfloat16)
        w1b = (s1 * jax.random.normal(ks[1], (dim, dim), jnp.float32)).astype(jnp.bfloat16)
        b1 = 0.01 * jax.random.normal(ks[2], (dim, 1), jnp.float32)
        w2 = jax.random.normal(ks[3], (dim, dim), jnp.float32) / jnp.sqrt(1.0 * dim)
        b2 = 0.01 * jax.random.normal(ks[4], (dim, 1), jnp.float32)
        w3 = jax.random.normal(ks[5], (dim, dim), jnp.float32) / jnp.sqrt(1.0 * dim)
        b3 = 0.01 * jax.random.normal(ks[6], (dim, 1), jnp.float32)
        self.params = (w1a, w1b, b1, w2, b2, w3, b3)

    def __call__(self, Ts_vec, feats, intrinsics, *, s_tile=None):
        """Ts_vec [b,f,7], feats [b,f,C,h,w], intrinsics [b,4] -> [b,C,d,h,w]."""
        b, f, C, h, w = feats.shape
        assert C == self.dim
        d = self.depths_vec.shape[0]
        M = quat_trans_to_matrix(Ts_vec)                      # [b, f, 4, 4]
        # Tii = Ts[:, ii] * Ts[:, ii].inv() is the identity, so the "ii" half
        # of the cost volume is exactly feats[:, 0] repeated over the d depth
        # planes -> reconstructed inside the kernel (no projection pass, no
        # concat, no d-times-redundant HBM traffic).
        Tij = M[:, 1:] @ jnp.linalg.inv(M[:, :1])             # [b, f-1, 4, 4]
        vol_ij = project_depth_volume(Tij, feats[:, 1:], self.depths_vec,
                                      intrinsics)             # [b,f-1,C,d,h,w]
        x_ij = vol_ij.reshape(b, f - 1, C, d * h * w).astype(jnp.bfloat16)
        feats0 = feats[:, 0].reshape(b, C, h * w).astype(jnp.bfloat16)
        out = avg_block_head_pallas(x_ij, feats0, self.params, hw=h * w,
                                    s_tile=s_tile)            # [b, C, S] f32
        return out.reshape(b, C, d, h, w)


def _reference_head(x_ij, feats0, params):
    """Pure-JAX reference of the Pallas head (f32 math on the bf16 inputs)."""
    hp = jax.lax.Precision.HIGHEST
    w1a, w1b, b1, w2, b2, w3, b3 = [jnp.asarray(p, jnp.float32) for p in params]
    x = x_ij.astype(jnp.float32)                              # [b,f,C,S]
    f0 = feats0.astype(jnp.float32)                           # [b,C,hw]
    S = x.shape[-1]
    hw = f0.shape[-1]
    base = jnp.einsum("oc,bcs->bos", w1a, f0, precision=hp) + b1[None]
    base = jnp.tile(base, (1, 1, S // hw))                    # [b,C,S]
    y = base[:, None] + jnp.einsum("oc,bfcs->bfos", w1b, x, precision=hp)
    r = jnp.maximum(jnp.einsum("oc,bfcs->bfos", w2, y, precision=hp)
                    + b2[None, None], 0.0)
    r = jnp.einsum("oc,bfcs->bfos", w3, r, precision=hp) + b3[None, None]
    y = jnp.maximum(y + r, 0.0)
    return y.mean(axis=1)                                     # [b,C,S]


if __name__ == "__main__":
    key = jax.random.PRNGKey(0)
    b, f, dim, h, w, d = 2, 3, 32, 16, 16, 8

    k1, k2, k3, k4 = jax.random.split(key, 4)
    feats = jax.random.normal(k1, (b, f, dim, h, w), jnp.float32)
    # Poses: (tx, ty, tz, qx, qy, qz, qw) near identity
    trans = 0.1 * jax.random.normal(k2, (b, f, 3), jnp.float32)
    qvec = 0.05 * jax.random.normal(k3, (b, f, 3), jnp.float32)
    qw = jnp.ones((b, f, 1), jnp.float32)
    Ts_vec = jnp.concatenate([trans, qvec, qw], axis=-1)      # [b, f, 7]
    intrinsics = jnp.tile(
        jnp.array([[20.0, 20.0, (w - 1) / 2.0, (h - 1) / 2.0]], jnp.float32), (b, 1))
    depths_vec = jnp.linspace(1.0, 4.0, d, dtype=jnp.float32)

    block = AvgBlockPallas(depths_vec, dim=dim, key=k4)
    out = jax.block_until_ready(block(Ts_vec, feats, intrinsics))
    assert out.shape == (b, dim, d, h, w), out.shape

    # Check 1: the identity-warp shortcut — projecting with Tii = T * T^-1
    # reproduces the un-warped features on every depth plane.
    M = quat_trans_to_matrix(Ts_vec)
    ii = jnp.zeros((f - 1,), jnp.int32)
    Tii = M[:, ii] @ jnp.linalg.inv(M[:, ii])
    vol_ii = project_depth_volume(Tii, feats[:, ii], depths_vec, intrinsics)
    expect_ii = jnp.broadcast_to(feats[:, ii][:, :, :, None], vol_ii.shape)
    err_ii = float(jnp.max(jnp.abs(vol_ii - expect_ii)))
    assert err_ii < 1e-3, err_ii

    # Check 2: Pallas head vs pure-JAX reference on the exact kernel inputs.
    Tij = M[:, 1:] @ jnp.linalg.inv(M[:, :1])
    vol_ij = project_depth_volume(Tij, feats[:, 1:], depths_vec, intrinsics)
    x_ij = vol_ij.reshape(b, f - 1, dim, d * h * w).astype(jnp.bfloat16)
    feats0 = feats[:, 0].reshape(b, dim, h * w).astype(jnp.bfloat16)
    ref = _reference_head(x_ij, feats0, block.params).reshape(b, dim, d, h, w)
    err = float(jnp.max(jnp.abs(out - ref)))
    assert err < 2e-2, err

    print("KERNEL_OK")
</pallas_src>

<mosaic_0001>
module attributes {stable_mosaic.version = 11 : i64} {
  func.func @_avg_block_kernel(%arg0: i32, %arg1: i32, %arg2: i32, %arg3: memref<1x1x32x2048xbf16, #tpu.memory_space<vmem>>, %arg4: memref<1x32x256xbf16, #tpu.memory_space<vmem>>, %arg5: memref<32x32xbf16, #tpu.memory_space<vmem>>, %arg6: memref<32x32xbf16, #tpu.memory_space<vmem>>, %arg7: memref<32x1xf32, #tpu.memory_space<vmem>>, %arg8: memref<32x32xf32, #tpu.memory_space<vmem>>, %arg9: memref<32x1xf32, #tpu.memory_space<vmem>>, %arg10: memref<32x32xf32, #tpu.memory_space<vmem>>, %arg11: memref<32x1xf32, #tpu.memory_space<vmem>>, %arg12: memref<1x32x2048xf32, #tpu.memory_space<vmem>>, %arg13: memref<32x2048xf32, #tpu.memory_space<vmem>>) attributes {dimension_semantics = [#tpu.dimension_semantics<parallel>, #tpu.dimension_semantics<parallel>, #tpu.dimension_semantics<arbitrary>], iteration_bounds = array<i64: 2, 1, 2>, scalar_prefetch = 0 : i64, scratch_operands = 1 : i64, tpu.core_type = #tpu.core_type<tc>, window_params = [{transform_indices = @transform_0, window_bounds = array<i64: 1, 1, 32, 2048>}, {transform_indices = @transform_1, window_bounds = array<i64: 1, 32, 256>}, {pipeline_mode = #tpu.pipeline_mode<synchronous>, transform_indices = @transform_2, window_bounds = array<i64: 32, 32>}, {pipeline_mode = #tpu.pipeline_mode<synchronous>, transform_indices = @transform_3, window_bounds = array<i64: 32, 32>}, {pipeline_mode = #tpu.pipeline_mode<synchronous>, transform_indices = @transform_4, window_bounds = array<i64: 32, 1>}, {pipeline_mode = #tpu.pipeline_mode<synchronous>, transform_indices = @transform_5, window_bounds = array<i64: 32, 32>}, {pipeline_mode = #tpu.pipeline_mode<synchronous>, transform_indices = @transform_6, window_bounds = array<i64: 32, 1>}, {pipeline_mode = #tpu.pipeline_mode<synchronous>, transform_indices = @transform_7, window_bounds = array<i64: 32, 32>}, {pipeline_mode = #tpu.pipeline_mode<synchronous>, transform_indices = @transform_8, window_bounds = array<i64: 32, 1>}, {transform_indices = @transform_9, window_bounds = array<i64: 1, 32, 2048>}]} {
    %c0_i32 = arith.constant 0 : i32
    %0 = arith.cmpi eq, %arg2, %c0_i32 : i32
    %1 = arith.extui %0 : i1 to i32
    %c0_i32_0 = arith.constant 0 : i32
    %2 = arith.cmpi ne, %1, %c0_i32_0 : i32
    scf.if %2 {
      %c0_25 = arith.constant 0 : index
      %c0_26 = arith.constant 0 : index
      %33 = vector.load %arg5[%c0_25, %c0_26] : memref<32x32xbf16, #tpu.memory_space<vmem>>, vector<32x32xbf16>
      %c0_27 = arith.constant 0 : index
      %c0_28 = arith.constant 0 : index
      %c0_29 = arith.constant 0 : index
      %34 = vector.load %arg4[%c0_27, %c0_28, %c0_29] : memref<1x32x256xbf16, #tpu.memory_space<vmem>>, vector<1x32x256xbf16>
      %35 = vector.shape_cast %34 : vector<1x32x256xbf16> to vector<32x256xbf16>
      %cst_30 = arith.constant dense<0.000000e+00> : vector<32x256xf32>
      %36 = tpu.matmul %33, %35, %cst_30 {dimension_numbers = #tpu.dot_dimension_numbers<[1], [0], [0], [1], [0, 0, 1, 1], [], []>} : vector<32x32xbf16>, vector<32x256xbf16>, vector<32x256xf32> -> vector<32x256xf32>
      %c0_31 = arith.constant 0 : index
      %c0_32 = arith.constant 0 : index
      %37 = vector.load %arg7[%c0_31, %c0_32] : memref<32x1xf32, #tpu.memory_space<vmem>>, vector<32x1xf32>
      %38 = vector.broadcast %37 : vector<32x1xf32> to vector<32x256xf32>
      %39 = arith.addf %36, %38 : vector<32x256xf32>
      %c0_33 = arith.constant 0 : index
      %c0_34 = arith.constant 0 : index
      %40 = vector.load %arg13[%c0_33, %c0_34] : memref<32x2048xf32, #tpu.memory_space<vmem>>, vector<32x256xf32>
      tpu.vector_store %arg13[%c0_33, %c0_34], %39 {strides = array<i32>} : memref<32x2048xf32, #tpu.memory_space<vmem>>, vector<32x256xf32>,
      %c0_35 = arith.constant 0 : index
      %c256 = arith.constant 256 : index
      %41 = vector.load %arg13[%c0_35, %c256] : memref<32x2048xf32, #tpu.memory_space<vmem>>, vector<32x256xf32>
      tpu.vector_store %arg13[%c0_35, %c256], %39 {strides = array<i32>} : memref<32x2048xf32, #tpu.memory_space<vmem>>, vector<32x256xf32>,
      %c0_36 = arith.constant 0 : index
      %c512 = arith.constant 512 : index
      %42 = vector.load %arg13[%c0_36, %c512] : memref<32x2048xf32, #tpu.memory_space<vmem>>, vector<32x256xf32>
      tpu.vector_store %arg13[%c0_36, %c512], %39 {strides = array<i32>} : memref<32x2048xf32, #tpu.memory_space<vmem>>, vector<32x256xf32>,
      %c0_37 = arith.constant 0 : index
      %c768 = arith.constant 768 : index
      %43 = vector.load %arg13[%c0_37, %c768] : memref<32x2048xf32, #tpu.memory_space<vmem>>, vector<32x256xf32>
      tpu.vector_store %arg13[%c0_37, %c768], %39 {strides = array<i32>} : memref<32x2048xf32, #tpu.memory_space<vmem>>, vector<32x256xf32>,
      %c0_38 = arith.constant 0 : index
      %c1024 = arith.constant 1024 : index
      %44 = vector.load %arg13[%c0_38, %c1024] : memref<32x2048xf32, #tpu.memory_space<vmem>>, vector<32x256xf32>
      tpu.vector_store %arg13[%c0_38, %c1024], %39 {strides = array<i32>} : memref<32x2048xf32, #tpu.memory_space<vmem>>, vector<32x256xf32>,
      %c0_39 = arith.constant 0 : index
      %c1280 = arith.constant 1280 : index
      %45 = vector.load %arg13[%c0_39, %c1280] : memref<32x2048xf32, #tpu.memory_space<vmem>>, vector<32x256xf32>
      tpu.vector_store %arg13[%c0_39, %c1280], %39 {strides = array<i32>} : memref<32x2048xf32, #tpu.memory_space<vmem>>, vector<32x256xf32>,
      %c0_40 = arith.constant 0 : index
      %c1536 = arith.constant 1536 : index
      %46 = vector.load %arg13[%c0_40, %c1536] : memref<32x2048xf32, #tpu.memory_space<vmem>>, vector<32x256xf32>
      tpu.vector_store %arg13[%c0_40, %c1536], %39 {strides = array<i32>} : memref<32x2048xf32, #tpu.memory_space<vmem>>, vector<32x256xf32>,
      %c0_41 = arith.constant 0 : index
      %c1792 = arith.constant 1792 : index
      %47 = vector.load %arg13[%c0_41, %c1792] : memref<32x2048xf32, #tpu.memory_space<vmem>>, vector<32x256xf32>
      tpu.vector_store %arg13[%c0_41, %c1792], %39 {strides = array<i32>} : memref<32x2048xf32, #tpu.memory_space<vmem>>, vector<32x256xf32>,
    } else {
    }
    %c0 = arith.constant 0 : index
    %c0_1 = arith.constant 0 : index
    %c0_2 = arith.constant 0 : index
    %c0_3 = arith.constant 0 : index
    %3 = vector.load %arg3[%c0, %c0_1, %c0_2, %c0_3] : memref<1x1x32x2048xbf16, #tpu.memory_space<vmem>>, vector<1x1x32x2048xbf16>
    %4 = vector.shape_cast %3 : vector<1x1x32x2048xbf16> to vector<32x2048xbf16>
    %c0_4 = arith.constant 0 : index
    %c0_5 = arith.constant 0 : index
    %5 = vector.load %arg13[%c0_4, %c0_5] : memref<32x2048xf32, #tpu.memory_space<vmem>>, vector<32x2048xf32>
    %c0_6 = arith.constant 0 : index
    %c0_7 = arith.constant 0 : index
    %6 = vector.load %arg6[%c0_6, %c0_7] : memref<32x32xbf16, #tpu.memory_space<vmem>>, vector<32x32xbf16>
    %cst = arith.constant dense<0.000000e+00> : vector<32x2048xf32>
    %7 = tpu.matmul %6, %4, %cst {dimension_numbers = #tpu.dot_dimension_numbers<[1], [0], [0], [1], [0, 0, 1, 1], [], []>} : vector<32x32xbf16>, vector<32x2048xbf16>, vector<32x2048xf32> -> vector<32x2048xf32>
    %8 = arith.addf %5, %7 : vector<32x2048xf32>
    %c0_8 = arith.constant 0 : index
    %c0_9 = arith.constant 0 : index
    %9 = vector.load %arg8[%c0_8, %c0_9] : memref<32x32xf32, #tpu.memory_space<vmem>>, vector<32x32xf32>
    %cst_10 = arith.constant dense<0.000000e+00> : vector<32x2048xf32>
    %10 = tpu.matmul %9, %8, %cst_10 {dimension_numbers = #tpu.dot_dimension_numbers<[1], [0], [0], [1], [0, 0, 1, 1], [], []>} : vector<32x32xf32>, vector<32x2048xf32>, vector<32x2048xf32> -> vector<32x2048xf32>
    %c0_11 = arith.constant 0 : index
    %c0_12 = arith.constant 0 : index
    %11 = vector.load %arg9[%c0_11, %c0_12] : memref<32x1xf32, #tpu.memory_space<vmem>>, vector<32x1xf32>
    %12 = vector.broadcast %11 : vector<32x1xf32> to vector<32x2048xf32>
    %13 = arith.addf %10, %12 : vector<32x2048xf32>
    %cst_13 = arith.constant 0.000000e+00 : f32
    %14 = vector.broadcast %cst_13 : f32 to vector<32x2048xf32>
    %15 = arith.maximumf %13, %14 : vector<32x2048xf32>
    %c0_14 = arith.constant 0 : index
    %c0_15 = arith.constant 0 : index
    %16 = vector.load %arg10[%c0_14, %c0_15] : memref<32x32xf32, #tpu.memory_space<vmem>>, vector<32x32xf32>
    %cst_16 = arith.constant dense<0.000000e+00> : vector<32x2048xf32>
    %17 = tpu.matmul %16, %15, %cst_16 {dimension_numbers = #tpu.dot_dimension_numbers<[1], [0], [0], [1], [0, 0, 1, 1], [], []>} : vector<32x32xf32>, vector<32x2048xf32>, vector<32x2048xf32> -> vector<32x2048xf32>
    %c0_17 = arith.constant 0 : index
    %c0_18 = arith.constant 0 : index
    %18 = vector.load %arg11[%c0_17, %c0_18] : memref<32x1xf32, #tpu.memory_space<vmem>>, vector<32x1xf32>
    %19 = vector.broadcast %18 : vector<32x1xf32> to vector<32x2048xf32>
    %20 = arith.addf %17, %19 : vector<32x2048xf32>
    %21 = arith.addf %8, %20 : vector<32x2048xf32>
    %cst_19 = arith.constant 0.000000e+00 : f32
    %22 = vector.broadcast %cst_19 : f32 to vector<32x2048xf32>
    %23 = arith.maximumf %21, %22 : vector<32x2048xf32>
    %c0_i32_20 = arith.constant 0 : i32
    %24 = arith.cmpi eq, %arg2, %c0_i32_20 : i32
    %25 = arith.extui %24 : i1 to i32
    %c0_i32_21 = arith.constant 0 : i32
    %26 = arith.cmpi ne, %25, %c0_i32_21 : i32
    scf.if %26 {
      %c0_25 = arith.constant 0 : index
      %c0_26 = arith.constant 0 : index
      %c0_27 = arith.constant 0 : index
      %33 = vector.load %arg12[%c0_25, %c0_26, %c0_27] : memref<1x32x2048xf32, #tpu.memory_space<vmem>>, vector<1x32x2048xf32>
      %34 = vector.shape_cast %33 : vector<1x32x2048xf32> to vector<32x2048xf32>
      %35 = vector.shape_cast %23 : vector<32x2048xf32> to vector<1x32x2048xf32>
      tpu.vector_store %arg12[%c0_25, %c0_26, %c0_27], %35 {strides = array<i32>} : memref<1x32x2048xf32, #tpu.memory_space<vmem>>, vector<1x32x2048xf32>,
    } else {
    }
    %c0_i32_22 = arith.constant 0 : i32
    %27 = arith.cmpi sgt, %arg2, %c0_i32_22 : i32
    %28 = arith.extui %27 : i1 to i32
    %c0_i32_23 = arith.constant 0 : i32
    %29 = arith.cmpi ne, %28, %c0_i32_23 : i32
    scf.if %29 {
      %c0_25 = arith.constant 0 : index
      %c0_26 = arith.constant 0 : index
      %c0_27 = arith.constant 0 : index
      %33 = vector.load %arg12[%c0_25, %c0_26, %c0_27] : memref<1x32x2048xf32, #tpu.memory_space<vmem>>, vector<1x32x2048xf32>
      %34 = vector.shape_cast %33 : vector<1x32x2048xf32> to vector<32x2048xf32>
      %35 = arith.addf %34, %23 : vector<32x2048xf32>
      %c0_28 = arith.constant 0 : index
      %c0_29 = arith.constant 0 : index
      %c0_30 = arith.constant 0 : index
      %36 = vector.load %arg12[%c0_28, %c0_29, %c0_30] : memref<1x32x2048xf32, #tpu.memory_space<vmem>>, vector<1x32x2048xf32>
      %37 = vector.shape_cast %36 : vector<1x32x2048xf32> to vector<32x2048xf32>
      %38 = vector.shape_cast %35 : vector<32x2048xf32> to vector<1x32x2048xf32>
      tpu.vector_store %arg12[%c0_28, %c0_29, %c0_30], %38 {strides = array<i32>} : memref<1x32x2048xf32, #tpu.memory_space<vmem>>, vector<1x32x2048xf32>,
    } else {
    }
    %c1_i32 = arith.constant 1 : i32
    %30 = arith.cmpi eq, %arg2, %c1_i32 : i32
    %31 = arith.extui %30 : i1 to i32
    %c0_i32_24 = arith.constant 0 : i32
    %32 = arith.cmpi ne, %31, %c0_i32_24 : i32
    scf.if %32 {
      %c0_25 = arith.constant 0 : index
      %c0_26 = arith.constant 0 : index
      %c0_27 = arith.constant 0 : index
      %33 = vector.load %arg12[%c0_25, %c0_26, %c0_27] : memref<1x32x2048xf32, #tpu.memory_space<vmem>>, vector<1x32x2048xf32>
      %34 = vector.shape_cast %33 : vector<1x32x2048xf32> to vector<32x2048xf32>
      %cst_28 = arith.constant 5.000000e-01 : f32
      %35 = vector.broadcast %cst_28 : f32 to vector<32x2048xf32>
      %36 = arith.mulf %34, %35 : vector<32x2048xf32>
      %c0_29 = arith.constant 0 : index
      %c0_30 = arith.constant 0 : index
      %c0_31 = arith.constant 0 : index
      %37 = vector.load %arg12[%c0_29, %c0_30, %c0_31] : memref<1x32x2048xf32, #tpu.memory_space<vmem>>, vector<1x32x2048xf32>
      %38 = vector.shape_cast %37 : vector<1x32x2048xf32> to vector<32x2048xf32>
      %39 = vector.shape_cast %36 : vector<32x2048xf32> to vector<1x32x2048xf32>
      tpu.vector_store %arg12[%c0_29, %c0_30, %c0_31], %39 {strides = array<i32>} : memref<1x32x2048xf32, #tpu.memory_space<vmem>>, vector<1x32x2048xf32>,
    } else {
    }
    return
  }
  func.func @transform_0(%arg0: i32, %arg1: i32, %arg2: i32) -> (i32, i32, i32, i32) {
    %c0_i32 = arith.constant 0 : i32
    %c0_i32_0 = arith.constant 0 : i32
    return %arg0, %arg2, %c0_i32, %arg1 : i32, i32, i32, i32
  }
  func.func @transform_1(%arg0: i32, %arg1: i32, %arg2: i32) -> (i32, i32, i32) {
    %c0_i32 = arith.constant 0 : i32
    %c0_i32_0 = arith.constant 0 : i32
    %c0_i32_1 = arith.constant 0 : i32
    return %arg0, %c0_i32, %c0_i32_0 : i32, i32, i32
  }
  func.func @transform_2(%arg0: i32, %arg1: i32, %arg2: i32) -> (i32, i32) {
    %c0_i32 = arith.constant 0 : i32
    %c0_i32_0 = arith.constant 0 : i32
    %c0_i32_1 = arith.constant 0 : i32
    return %c0_i32, %c0_i32_0 : i32, i32
  }
  func.func @transform_3(%arg0: i32, %arg1: i32, %arg2: i32) -> (i32, i32) {
    %c0_i32 = arith.constant 0 : i32
    %c0_i32_0 = arith.constant 0 : i32
    %c0_i32_1 = arith.constant 0 : i32
    return %c0_i32, %c0_i32_0 : i32, i32
  }
  func.func @transform_4(%arg0: i32, %arg1: i32, %arg2: i32) -> (i32, i32) {
    %c0_i32 = arith.constant 0 : i32
    %c0_i32_0 = arith.constant 0 : i32
    %c0_i32_1 = arith.constant 0 : i32
    return %c0_i32, %c0_i32_0 : i32, i32
  }
  func.func @transform_5(%arg0: i32, %arg1: i32, %arg2: i32) -> (i32, i32) {
    %c0_i32 = arith.constant 0 : i32
    %c0_i32_0 = arith.constant 0 : i32
    %c0_i32_1 = arith.constant 0 : i32
    return %c0_i32, %c0_i32_0 : i32, i32
  }
  func.func @transform_6(%arg0: i32, %arg1: i32, %arg2: i32) -> (i32, i32) {
    %c0_i32 = arith.constant 0 : i32
    %c0_i32_0 = arith.constant 0 : i32
    %c0_i32_1 = arith.constant 0 : i32
    return %c0_i32, %c0_i32_0 : i32, i32
  }
  func.func @transform_7(%arg0: i32, %arg1: i32, %arg2: i32) -> (i32, i32) {
    %c0_i32 = arith.constant 0 : i32
    %c0_i32_0 = arith.constant 0 : i32
    %c0_i32_1 = arith.constant 0 : i32
    return %c0_i32, %c0_i32_0 : i32, i32
  }
  func.func @transform_8(%arg0: i32, %arg1: i32, %arg2: i32) -> (i32, i32) {
    %c0_i32 = arith.constant 0 : i32
    %c0_i32_0 = arith.constant 0 : i32
    %c0_i32_1 = arith.constant 0 : i32
    return %c0_i32, %c0_i32_0 : i32, i32
  }
  func.func @transform_9(%arg0: i32, %arg1: i32, %arg2: i32) -> (i32, i32, i32) {
    %c0_i32 = arith.constant 0 : i32
    %c0_i32_0 = arith.constant 0 : i32
    return %arg0, %c0_i32, %arg1 : i32, i32, i32
  }
}

</mosaic_0001>

<bundles_post_ra>
// kernel: tpu_custom_call.1
= control target key start
LH: loop header
LB: loop body
LE: loop exit
PB: predicated region body
PF: predicated region fallthrough
CT: control target
= control target key end

     0   :  { %s6231_s0 = inlined_call_operand.hbm [shape: bf16[2,2,32,2048], index: 0, kind: input, shape index: {}]   ;;  %s6232_s1 = inlined_call_operand.vmem [shape: bf16[2,32,256], index: 1, kind: input, shape index: {}]   ;;  %s6233_s2 = inlined_call_operand.hbm [shape: bf16[32,32], index: 2, kind: input, shape index: {}]   ;;  %s6234_s3 = inlined_call_operand.hbm [shape: bf16[32,32], index: 3, kind: input, shape index: {}]   ;;  %s6235_s4 = inlined_call_operand.vmem [shape: f32[32,1], index: 4, kind: input, shape index: {}]   ;;  %s6236_s5 = inlined_call_operand.vmem [shape: f32[32,32], index: 5, kind: input, shape index: {}]   ;;  %s6237_s6 = inlined_call_operand.vmem [shape: f32[32,1], index: 6, kind: input, shape index: {}]   ;;  %s6238_s7 = inlined_call_operand.hbm [shape: f32[32,32], index: 7, kind: input, shape index: {}]   ;;  %s6239_s8 = inlined_call_operand.vmem [shape: f32[32,1], index: 8, kind: input, shape index: {}]   ;;  %s6240_s9 = inlined_call_operand.hbm [shape: f32[2,32,2048], index: 9, kind: output, shape index: {}]  }
   0x1   :  { %6310 = sst [smem:[#allocation62_spill]] %s6233_s2 }
   0x2   :  { %6311 = sst [smem:[#allocation63_spill]] %s6234_s3 }
   0x3   :  { %6312 = sst [smem:[#allocation64_spill]] %s6235_s4 }
   0x4   :  { %6313 = sst [smem:[#allocation65_spill]] %s6236_s5 }
   0x5   :  { %6314 = sst [smem:[#allocation66_spill]] %s6237_s6 }
   0x6   :  { %6315 = sst [smem:[#allocation67_spill]] %s6238_s7 }
   0x7   :  { %6316 = sst [smem:[#allocation68_spill]] %s6239_s8 }
   0x8   :  { %6317 = sst [smem:[#allocation69_spill]] %s6240_s9 }
   0x9   :  { %14 = vsyncpa [#allocation4], 0 }
   0xa   :  { %16 = vsyncpa [#allocation4 + $0x1], 0 }
   0xb   :  { %17 = vsyncpa [#allocation7], 0 }
   0xc   :  { %18 = vsyncpa [#allocation10], 0 }
   0xd   :  { %19 = vsyncpa [#allocation5], 0 }
   0xe   :  { %21 = vsyncpa [#allocation5 + $0x1], 0  ;;  %s4323_s30 = smov 0   ;;  %s4325_s10 = smov 0  }
   0xf   :  { %s4327_s11 = smov 0   ;;  %s4329_s12 = smov 0  }
  0x10   :  { %s4331_s13 = smov 0   ;;  %s4333_s14 = smov 0  }
  0x11   :  { %s4335_s15 = smov 0   ;;  %s4337_s16 = smov 0  }
  0x12   :  { %s4339_s17 = smov 0   ;;  %s4341_s18 = smov 0  }
  0x13   :  { %s4343_s19 = smov 0  }
  0x14 LB: > { %6318 = sst [smem:[#allocation16_spill]] %s4216_s30  ;;  %s3709_s20 = sadd.s32 4294967295, %s4256_s19   ;;  %s4256_s19 = sphi %s4343_s19, %s27_s19   ;;  %s4252_s18 = sphi %s4341_s18, %s6604_s18   ;;  %s4248_s17 = sphi %s4339_s17, %s6603_s17   ;;  %s4244_s16 = sphi %s4337_s16, %s6602_s16   ;;  %s4240_s15 = sphi %s4335_s15, %s6601_s15   ;;  %s4236_s14 = sphi %s4333_s14, %s6600_s14   ;;  %s4232_s13 = sphi %s4331_s13, %s6599_s13   ;;  %s4228_s12 = sphi %s4329_s12, %s6598_s12   ;;  %s4224_s11 = sphi %s4327_s11, %s6597_s11   ;;  %s4220_s10 = sphi %s4325_s10, %s6596_s10   ;;  %s4216_s30 = sphi %s4323_s30, %s6595_s30  }
  0x15   : > { %6319 = sst [smem:[#allocation17_spill]] %s4240_s15  ;;  %s3710_s21 = sadd.s32 4294967294, %s4256_s19  }
  0x16   : > { %p70_p0 = scmp.ne.s32.totalorder %s4232_s13, %s4228_s12  ;;  %p4379_p1 = scmp.eq.s32.totalorder %s3709_s20, 0 }
  0x17   : > { %p268_p2 = scmp.ne.s32.totalorder %s4224_s11, %s4220_s10  ;;  %p269_p4 = scmp.eq.s32.totalorder %s3709_s20, 3 }
  0x18   : > { %p4388_p3 = por %p4379_p1, %p70_p0  ;;  %p274_p5 = scmp.ne.s32.totalorder %s4220_s10, %s4216_s30 }
  0x19   : > { %p275_p6 = scmp.eq.s32.totalorder %s3710_s21, 3  ;;  %p4394_p7 = por %p269_p4, %p268_p2 }
  0x1a   : > { %p3711_p8 = scmp.ge.s32.totalorder %s4256_s19, 1  ;;  %p282_p10 = scmp.lt.s32.totalorder %s4256_s19, 5 }
  0x1b   : > { %s6322_s25 = scalar_select %p4394_p7, 1, 0 }
  0x1c   : > { %p4399_p9 = por %p275_p6, %p274_p5  ;;  %p4404_p11 = pnand %p3711_p8, %p282_p10 }
  0x1d   : > { %6323 = sst [smem:[#allocation18_spill]] %s6322_s25  ;;  %s4258_s28 = smov [#allocation6]  }
  0x1e   : > { %s6324_s26 = scalar_select %p4399_p9, 1, 0 }
  0x1f   : > { %s294_s29 = sshll.u32 %s4258_s28, 4  ;;  %p3881_p12 = pneg %p4404_p11  ;;  %s295_s29 = int_to_ptr.vmem [resolvable:$true] %s294_s29 }
  0x20   : > { %6325 = sst [smem:[#allocation19_spill]] %s6324_s26  ;;  %s4259_s20 = smov [#allocation8]  }
  0x21   : > { %p4412_p13 = pnand %p3881_p12, %p4379_p1  ;;  %s307_s21 = sshll.u32 %s4259_s20, 4  ;;  %s308_s21 = int_to_ptr.vmem [resolvable:$true] %s307_s21 }
  0x22   : > { %s4260_s23 = smov [#allocation9]   ;;  %s4033_s30 = scalar_lea.vmem %s295_s29, 256 }
  0x23   : > { %s329_s26 = sshll.u32 %s4260_s23, 4  ;;  %p4024_p0 = pneg %p4412_p13  ;;  %s330_s26 = int_to_ptr.vmem [resolvable:$true] %s329_s26 }
  0x24   : > { %p4034_p2 = scmp.ne.s32.totalorder %s295_s29, %s4033_s30  ;;  %p4041_p6 = scmp.lt.s32.totalorder %s295_s29, %s295_s29 }
  0x25   : > { %p4042_p8 = scmp.lt.s32.totalorder %s4033_s30, %s4033_s30 }
  0x26   : > { %p4036_p4 = pnand %p4034_p2, %p4024_p0 }
  0x27   : > { %p4043_p10 = por %p4042_p8, %p4041_p6 }
  0x28   : > { %p4037_p5 = pneg %p4036_p4 }
  0x2a   : > { %p4044_p12 = pnand %p4043_p10, %p4037_p5 }
  0x2c   : > { %4047 = shalt.err (!%p4044_p12)
}
  0x2d   : > { %s6248_s28 = smov 64   ;;  %s4262_s20 = smov 4  }
  0x2e   : > { %s6328_s2 = sld [smem:[#allocation62_spill]]  ;;  %s4059_s25 = scalar_lea.vmem %s308_s21, 256 }
  0x2f   : > { %p4060_p9 = scmp.ne.s32.totalorder %s308_s21, %s4059_s25  ;;  %p4067_p6 = scmp.lt.s32.totalorder %s308_s21, %s308_s21 }
  0x30   : > { %p4068_p5 = scmp.lt.s32.totalorder %s4059_s25, %s4059_s25 }
  0x31   : > { %p4062_p2 = pnand %p4060_p9, %p4024_p0 }
  0x32   : > { %p4069_p8 = por %p4068_p5, %p4067_p6 }
  0x33   : > { %p4063_p4 = pneg %p4062_p2 }
  0x34   : > { %3884 = dma.hbm_to_vmem [thread:$0]  (!%p4412_p13), %s6328_s2, 256, %s295_s29, [#allocation7], %s6248_s28, %s6248_s28, %s4262_s20  }
  0x35   : > { %p4070_p10 = pnand %p4069_p8, %p4063_p4 }
  0x37   : > { %4073 = shalt.err (!%p4070_p10)
}
  0x38   : > { %s6329_s3 = sld [smem:[#allocation63_spill]]  ;;  %s4085_s9 = scalar_lea.vmem %s330_s26, 512 }
  0x39   : > { %p4086_p12 = scmp.ne.s32.totalorder %s330_s26, %s4085_s9  ;;  %p4093_p7 = scmp.lt.s32.totalorder %s330_s26, %s330_s26 }
  0x3a   : > { %p4094_p6 = scmp.lt.s32.totalorder %s4085_s9, %s4085_s9 }
  0x3b   : > { %p4088_p9 = pnand %p4086_p12, %p4024_p0 }
  0x3c   : > { %p4095_p4 = por %p4094_p6, %p4093_p7 }
  0x3d   : > { %p4089_p2 = pneg %p4088_p9 }
  0x3e   : > { %3887 = dma.hbm_to_vmem [thread:$0]  (!%p4412_p13), %s6329_s3, 256, %s308_s21, [#allocation7], %s6248_s28, %s6248_s28, %s4262_s20  }
  0x3f   : > { %p4096_p5 = pnand %p4095_p4, %p4089_p2 }
  0x41   : > { %4099 = shalt.err (!%p4096_p5)
}
  0x42   : > { %s4263_s25 = smov 128   ;;  %s4264_s5 = smov 8  }
  0x43   : > { %s6330_s7 = sld [smem:[#allocation67_spill]]  ;;  %s39_s20 = sadd.s32 1, %s4248_s17 }
  0x44   : > { %p40_p7 = scmp.ge.s32.totalorder %s39_s20, 2  ;;  %s46_s23 = sadd.s32 1, %s4252_s18 }
  0x45   : > { %s57_s30 = sadd.s32 1, %s4236_s14  ;;  %p64_p0 = scmp.ne.s32.totalorder %s4236_s14, %s4232_s13 }
  0x46   : > { %s6606_s20 = smov (%p40_p7, %s39_s20), 0  ;;  %s6608_s23 = smov (!%p40_p7, %s46_s23), %s4252_s18 }
  0x47   : > { %6331 = sst [smem:[#allocation20_spill]] %s6606_s20  ;;  %s51_s12 = ssub.s32 %s4248_s17, %s6606_s20 }
  0x48   : > { %p65_p8 = scmp.eq.s32.totalorder %s4256_s19, 0  ;;  %p48_p10 = scmp.ge.s32.totalorder %s6608_s23, 2 }
  0x49   : > { %3890 = dma.hbm_to_vmem [thread:$0]  (!%p4412_p13), %s6330_s7, 512, %s330_s26, [#allocation10], %s4263_s25, %s4263_s25, %s4264_s5  }
  0x4a   : > { %p3902_p12 = scmp.lt.s32.totalorder %s4256_s19, 4  ;;  %p4458_p13 = por %p65_p8, %p64_p0 }
  0x4b   : > { %s346_s9 = sand.u32 1, %s4236_s14   ;;  %s6610_s23 = smov (%p48_p10, %s6608_s23), 0 }
  0x4c   : > { %s3716_s25 = sshll.u32 %s346_s9, 8  ;;  %s50_s5 = ssub.s32 %s4252_s18, %s6610_s23 }
  0x4d   : > { %s52_s29 = sor.u32 %s51_s12, %s50_s5  ;;  %p256_p9 = scmp.eq.s32.totalorder %s50_s5, 0 }
  0x4e   : > { %p55_p2 = scmp.eq.s32.totalorder %s52_s29, 0  ;;  %s3717_s21 = sshll.u32 %s4248_s17, 6 }
  0x4f   : > { %s6333_s28 = sadd.s32 1, %s4224_s11  ;;  %s3718_s7 = sshll.u32 %s4252_s18, 7 }
  0x50   : > { %s4471_s2 = scalar_select %p256_p9, %s4224_s11, %s6333_s28  }
  0x51   : > { %s4474_s3 = scalar_select %p55_p2, %s4236_s14, %s57_s30  }
  0x52   : > { %s350_s20 = scalar_lea.vmem [#allocation3], %s3716_s25  ;;  %s358_s6 = sadd.s32 %s3718_s7, %s3717_s21 }
  0x53   : > { %s361_s8 = sshll.u32 %s350_s20, 4  ;;  %s3719_s4 = sshll.u32 %s358_s6, 6  ;;  %s362_s8 = int_to_ptr.vmem [resolvable:$true] %s361_s8 }
  0x54   : > { %p4481_p6 = pnand %p3902_p12, %p4458_p13  ;;  %s360_s28 = scalar_lea.hbm %s6231_s0, %s3719_s4 }
  0x55   : > { %s347_s29 = scalar_lea.sflag [#allocation4], %s346_s9  ;;  %s4113_s30 = scalar_lea.vmem %s362_s8, 4096 }
  0x56   : > { %p4102_p4 = pneg %p4481_p6  ;;  %p4114_p5 = scmp.ne.s32.totalorder %s362_s8, %s4113_s30 }
  0x57   : > { %s4265_s7 = smov [#allocation3]  }
  0x58   : > { %p4116_p7 = pnand %p4114_p5, %p4102_p4  ;;  %s4118_s6 = sshll.u32 %s4265_s7, 4  ;;  %s4119_s6 = int_to_ptr.vmem [resolvable:$false] %s4118_s6 }
  0x59   : > { %s4120_s20 = scalar_lea.vmem %s4119_s6, 8192  ;;  %p4121_p8 = scmp.lt.s32.totalorder %s362_s8, %s4119_s6 }
  0x5a   : > { %p4117_p0 = pneg %p4116_p7  ;;  %p4122_p10 = scmp.lt.s32.totalorder %s4120_s20, %s4113_s30 }
  0x5c   : > { %p4123_p12 = por %p4122_p10, %p4121_p8 }
  0x5e   : > { %p4124_p13 = pnand %p4123_p12, %p4117_p0 }
  0x60   : > { %4127 = shalt.err (!%p4124_p13)
}
  0x61   : > { %s4266_s26 = smov 1024   ;;  %s6335_s4 = smov 64  }
  0x62   : > { %3894 = dma.hbm_to_vmem [thread:$0]  (!%p4481_p6), %s360_s28, 4096, %s362_s8, %s347_s29, %s4266_s26, %s4266_s26, %s6335_s4  }
  0x63   : > { %381 = sbr.rel (%p4404_p11) target bundleno = 1245 (0x4dd), region = 56 }
  0x68   : > { %s383_s9 = sand.u32 1, %s4232_s13  }
  0x69   : > { %s3721_s25 = sshll.u32 %s383_s9, 8  ;;  %s384_s21 = scalar_lea.sflag [#allocation4], %s383_s9 }
  0x6a   : > { %s4496_s12 = scalar_lea.vmem [#allocation3], %s3721_s25 }
  0x6b   : > { %4199 = dma.done.wait (%p4388_p3), %s384_s21, 4096  }
  0x6c   : > { %4201 = vsyncadd (%p4388_p3), %s384_s21, 4294963200 }
  0x6d   : > { %4203 = dma.done.wait (%p4379_p1), [#allocation7], 512  }
  0x6e   : > { %4205 = vsyncadd (%p4379_p1), [#allocation7], 4294966784 }
  0x6f   : > { %4207 = dma.done.wait (%p4379_p1), [#allocation10], 512  }
  0x70   : > { %4209 = vsyncadd (%p4379_p1), [#allocation10], 4294966784  ;;  %s436_s8 = sand.u32 1, %s4220_s10   ;;  %p440_p11 = scmp.lt.s32.totalorder %s4244_s16, 1 }
  0x71   : > { %s3725_s15 = sshll.u32 %s436_s8, 9  ;;  %s6336_s7 = sld [smem:[#allocation17_spill]] }
  0x72   : > { %s441_s24 = scalar_select %p440_p11, %s4244_s16, 1 }
  0x73   : > { %s4518_s30 = scalar_lea.vmem [#allocation11], %s3725_s15 }
  0x74   : > { %s3859_s27 = sshll.u32 %s441_s24, 5 }
  0x75   : > { %s444_s29 = scalar_lea.vmem %s6232_s1, %s3859_s27 }
  0x77   : > { %p3728_p3 = scmp.ne.s32.totalorder %s6336_s7, 0 }
  0x78   : > { %s6337_s20 = sld [smem:[#allocation64_spill]] (!%p3728_p3) }
  0x79   : > { %450 = sbr.rel (%p3728_p3) target bundleno = 363 (0x16b), region = 76 }
  0x7e   : > { %v4010_v0 = vld [vmem:[%s444_s29 + $0x14] ss:$8 sps:$4 sm:$0xff]   ;;  %v4012_v1 = vld [vmem:[%s444_s29 + $0x10] ss:$8 sps:$4 sm:$0xff]   ;;  %v4267_v2 = vmov 0   ;;  %v459_v6 = vld [vmem:[%s6337_s20] sm:$0xff] }
  0x7f   : > { %552 = vmatprep.mubr.bf16.mxu0 %v4267_v2  ;;  %562 = vmatprep.mubr.bf16.mxu1 %v4267_v2  ;;  %v4013_v3 = vld [vmem:[%s444_s29 + $0x4] ss:$8 sps:$4 sm:$0xff]   ;;  %v4015_v4 = vld [vmem:[%s444_s29] ss:$8 sps:$4 sm:$0xff]   ;;  %v461_v5 = vld [vmem:[%s6337_s20 + $0x10] sm:$0xff]  ;;  %vm513_vm0 = vcmask 261120  }
  0x80   : > { %532 = vmatprep.subr.bf16.mxu0 %v4010_v0  ;;  %3861 = vmatprep.subr.bf16.mxu1 %v4010_v0  ;;  %v4016_v7 = vld [vmem:[#allocation6] sm:$0xff]   ;;  %v4017_v8 = vld [vmem:[#allocation6 + $0x8] sm:$0xff]   ;;  %v462_v9 = vld [vmem:[%s6337_s20 + $0x18] sm:$0xff] }
  0x81   : > { %533 = vmatpush1.bf16.msra.mxu0 %v4012_v1  ;;  %3863 = vmatpush1.bf16.msra.mxu1 %v4012_v1  ;;  %v460_v10 = vld [vmem:[%s6337_s20 + $0x8] sm:$0xff] }
  0x82   : > { %534 = vmatprep.subr.bf16.mxu0 %v4013_v3  ;;  %3862 = vmatprep.subr.bf16.mxu1 %v4013_v3 }
  0x83   : > { %4009 = vset.pattern.permute.xlu1 %v4267_v2  ;;  %4008 = vset.pattern.permute.xlu0 %v4267_v2 }
  0x84   : > { %475 = vperm.xlu1 %4009, %v461_v5   ;;  %465 = vperm.xlu0 %4008, %v459_v6  }
  0x85   : > { %535 = vmatpush1.bf16.msra.mxu0 %v4015_v4  ;;  %3864 = vmatpush1.bf16.msra.mxu1 %v4015_v4 }
  0x88   : > { %3735 = vmatmul.mubr.msk.bf16.vlgmr.msra.gmra.mxu0 %vm513_vm0, %v4016_v7  ;;  %3736 = vmatmul.mubr.msk.bf16.vlgmr.msra.gmra.mxu1 %vm513_vm0, %v4017_v8 }
  0x89   : > { %480 = vperm.xlu1 %4009, %v462_v9   ;;  %470 = vperm.xlu0 %4008, %v460_v10  }
  0xff   : > { %v476_v11 = vpop.permute.xlu1 %475  ;;  %v466_v12 = vpop.permute.xlu0 %465 }
 0x104   : > { %v481_v19 = vpop.permute.xlu1 %480  ;;  %v471_v20 = vpop.permute.xlu0 %470 }
 0x148   : > { %v554_v13 = vpop.f32.mrf.mxu0  ;;  %v564_v14 = vpop.f32.mrf.mxu1 }
 0x149   : > { %v555_v15 = vadd.f32 %v554_v13, %v466_v12  ;;  %v565_v16 = vadd.f32 %v564_v14, %v476_v11 }
 0x14a   : > { %v556_v17 = vpop.f32.mrf.mxu0  ;;  %v566_v18 = vpop.f32.mrf.mxu1 }
 0x14b   : > { %573 = vst [vmem:[#allocation2 + $0x1a0] sm:$0xff] %v555_v15  ;;  %581 = vst [vmem:[#allocation2 + $0x60] sm:$0xff] %v555_v15  ;;  %v557_v21 = vadd.f32 %v556_v17, %v466_v12  ;;  %v567_v22 = vadd.f32 %v566_v18, %v476_v11 }
 0x14c   : > { %589 = vst [vmem:[#allocation2 + $0x130] sm:$0xff] %v555_v15  ;;  %597 = vst [vmem:[#allocation2 + $0x178] sm:$0xff] %v555_v15  ;;  %v558_v23 = vpop.f32.mrf.mxu0  ;;  %v568_v24 = vpop.f32.mrf.mxu1 }
 0x14d   : > { %605 = vst [vmem:[#allocation2 + $0x58] sm:$0xff] %v555_v15  ;;  %613 = vst [vmem:[#allocation2 + $0x160] sm:$0xff] %v555_v15  ;;  %v559_v25 = vadd.f32 %v558_v23, %v471_v20  ;;  %v569_v26 = vadd.f32 %v568_v24, %v481_v19 }
 0x14e   : > { %621 = vst [vmem:[#allocation2 + $0x1a8] sm:$0xff] %v555_v15  ;;  %629 = vst [vmem:[#allocation2 + $0xe8] sm:$0xff] %v555_v15  ;;  %v560_v27 = vpop.f32.mrf.mxu0  ;;  %v570_v28 = vpop.f32.mrf.mxu1 }
 0x14f   : > { %577 = vst [vmem:[#allocation2 + $0x90] sm:$0xff] %v565_v16  ;;  %585 = vst [vmem:[#allocation2 + $0x140] sm:$0xff] %v565_v16  ;;  %v561_v29 = vadd.f32 %v560_v27, %v471_v20  ;;  %v571_v30 = vadd.f32 %v570_v28, %v481_v19 }
 0x150   : > { %593 = vst [vmem:[#allocation2 + $0x20] sm:$0xff] %v565_v16  ;;  %601 = vst [vmem:[#allocation2 + $0x170] sm:$0xff] %v565_v16 }
 0x151   : > { %609 = vst [vmem:[#allocation2 + $0x10] sm:$0xff] %v565_v16  ;;  %617 = vst [vmem:[#allocation2 + $0x190] sm:$0xff] %v565_v16 }
 0x152   : > { %625 = vst [vmem:[#allocation2 + $0x1d0] sm:$0xff] %v565_v16  ;;  %633 = vst [vmem:[#allocation2 + $0xd8] sm:$0xff] %v565_v16 }
 0x153   : > { %574 = vst [vmem:[#allocation2 + $0x1e0] sm:$0xff] %v557_v21  ;;  %582 = vst [vmem:[#allocation2 + $0xc0] sm:$0xff] %v557_v21 }
 0x154   : > { %590 = vst [vmem:[#allocation2 + $0x68] sm:$0xff] %v557_v21  ;;  %598 = vst [vmem:[#allocation2 + $0x1b8] sm:$0xff] %v557_v21 }
 0x155   : > { %606 = vst [vmem:[#allocation2 + $0xf0] sm:$0xff] %v557_v21  ;;  %614 = vst [vmem:[#allocation2 + $0x1f0] sm:$0xff] %v557_v21 }
 0x156   : > { %622 = vst [vmem:[#allocation2 + $0x28] sm:$0xff] %v557_v21  ;;  %630 = vst [vmem:[#allocation2 + $0x188] sm:$0xff] %v557_v21 }
 0x157   : > { %578 = vst [vmem:[#allocation2 + $0x158] sm:$0xff] %v567_v22  ;;  %586 = vst [vmem:[#allocation2 + $0xd0] sm:$0xff] %v567_v22 }
 0x158   : > { %594 = vst [vmem:[#allocation2 + $0x168] sm:$0xff] %v567_v22  ;;  %602 = vst [vmem:[#allocation2] sm:$0xff] %v567_v22 }
 0x159   : > { %610 = vst [vmem:[#allocation2 + $0x1f8] sm:$0xff] %v567_v22  ;;  %618 = vst [vmem:[#allocation2 + $0xa0] sm:$0xff] %v567_v22 }
 0x15a   : > { %626 = vst [vmem:[#allocation2 + $0x1d8] sm:$0xff] %v567_v22  ;;  %634 = vst [vmem:[#allocation2 + $0x80] sm:$0xff] %v567_v22 }
 0x15b   : > { %575 = vst [vmem:[#allocation2 + $0xb8] sm:$0xff] %v559_v25  ;;  %583 = vst [vmem:[#allocation2 + $0xc8] sm:$0xff] %v559_v25 }
 0x15c   : > { %591 = vst [vmem:[#allocation2 + $0x1c8] sm:$0xff] %v559_v25  ;;  %599 = vst [vmem:[#allocation2 + $0x150] sm:$0xff] %v559_v25 }
 0x15d   : > { %607 = vst [vmem:[#allocation2 + $0x40] sm:$0xff] %v559_v25  ;;  %615 = vst [vmem:[#allocation2 + $0x138] sm:$0xff] %v559_v25 }
 0x15e   : > { %623 = vst [vmem:[#allocation2 + $0x128] sm:$0xff] %v559_v25  ;;  %631 = vst [vmem:[#allocation2 + $0x30] sm:$0xff] %v559_v25 }
 0x15f   : > { %579 = vst [vmem:[#allocation2 + $0x1c0] sm:$0xff] %v569_v26  ;;  %587 = vst [vmem:[#allocation2 + $0x48] sm:$0xff] %v569_v26 }
 0x160   : > { %595 = vst [vmem:[#allocation2 + $0x1e8] sm:$0xff] %v569_v26  ;;  %603 = vst [vmem:[#allocation2 + $0x1b0] sm:$0xff] %v569_v26 }
 0x161   : > { %611 = vst [vmem:[#allocation2 + $0x100] sm:$0xff] %v569_v26  ;;  %619 = vst [vmem:[#allocation2 + $0xf8] sm:$0xff] %v569_v26 }
 0x162   : > { %627 = vst [vmem:[#allocation2 + $0x118] sm:$0xff] %v569_v26  ;;  %635 = vst [vmem:[#allocation2 + $0x98] sm:$0xff] %v569_v26 }
 0x163   : > { %576 = vst [vmem:[#allocation2 + $0x88] sm:$0xff] %v561_v29  ;;  %584 = vst [vmem:[#allocation2 + $0xa8] sm:$0xff] %v561_v29 }
 0x164   : > { %592 = vst [vmem:[#allocation2 + $0x50] sm:$0xff] %v561_v29  ;;  %600 = vst [vmem:[#allocation2 + $0x180] sm:$0xff] %v561_v29 }
 0x165   : > { %608 = vst [vmem:[#allocation2 + $0x38] sm:$0xff] %v561_v29  ;;  %616 = vst [vmem:[#allocation2 + $0x198] sm:$0xff] %v561_v29 }
 0x166   : > { %624 = vst [vmem:[#allocation2 + $0x78] sm:$0xff] %v561_v29  ;;  %632 = vst [vmem:[#allocation2 + $0x70] sm:$0xff] %v561_v29 }
 0x167   : > { %580 = vst [vmem:[#allocation2 + $0x18] sm:$0xff] %v571_v30  ;;  %588 = vst [vmem:[#allocation2 + $0x110] sm:$0xff] %v571_v30 }
 0x168   : > { %596 = vst [vmem:[#allocation2 + $0x108] sm:$0xff] %v571_v30  ;;  %604 = vst [vmem:[#allocation2 + $0x8] sm:$0xff] %v571_v30 }
 0x169   : > { %612 = vst [vmem:[#allocation2 + $0x148] sm:$0xff] %v571_v30  ;;  %620 = vst [vmem:[#allocation2 + $0xb0] sm:$0xff] %v571_v30 }
 0x16a   : > { %628 = vst [vmem:[#allocation2 + $0xe0] sm:$0xff] %v571_v30  ;;  %636 = vst [vmem:[#allocation2 + $0x120] sm:$0xff] %v571_v30 }
 0x16b PF: > { %v653_v31 = vld [vmem:[%s4496_s12 + $0x80] sm:$0xff]  ;;  %v654_v33 = vld [vmem:[%s4496_s12 + $0x88] sm:$0xff]  ;;  %v4268_v39 = vmov 0   ;;  %v655_v47 = vld [vmem:[%s4496_s12 + $0x90] sm:$0xff]  ;;  %vm907_vm1 = vcmask 261120   ;;  %s6338_s27 = sld [smem:[#allocation66_spill]] }
 0x16c   : > { %v661_v32 = vld [vmem:[%s4496_s12 + $0xc0] sm:$0xff]  ;;  %v662_v35 = vld [vmem:[%s4496_s12 + $0xc8] sm:$0xff]  ;;  %946 = vmatprep.mubr.bf16.mxu0 %v4268_v39  ;;  %999 = vmatprep.mubr.bf16.mxu1 %v4268_v39  ;;  %v663_v49 = vld [vmem:[%s4496_s12 + $0xd0] sm:$0xff]  ;;  %s6339_s9 = sld [smem:[#allocation68_spill]] }
 0x16d   : > { %v3756_v34 = vcombine.high %v653_v31, %v661_v32  ;;  %v3755_v36 = vcombine.low %v653_v31, %v661_v32  ;;  %v637_v37 = vld [vmem:[%s4496_s12] sm:$0xff]  ;;  %v3758_v40 = vcombine.high %v654_v33, %v662_v35  ;;  %v3757_v41 = vcombine.low %v654_v33, %v662_v35  ;;  %v638_v43 = vld [vmem:[%s4496_s12 + $0x8] sm:$0xff]  ;;  %4019 = vset.pattern.permute.xlu1 %v4268_v39  ;;  %v656_v50 = vld [vmem:[%s4496_s12 + $0x98] sm:$0xff]  ;;  %s6340_s7 = sld [smem:[#allocation65_spill]] }
 0x16e   : > { %v645_v38 = vld [vmem:[%s4496_s12 + $0x40] sm:$0xff]  ;;  %v646_v44 = vld [vmem:[%s4496_s12 + $0x48] sm:$0xff]  ;;  %4018 = vset.pattern.permute.xlu0 %v4268_v39  ;;  %v664_v51 = vld [vmem:[%s4496_s12 + $0xd8] sm:$0xff]  ;;  %v3760_v52 = vcombine.high %v655_v47, %v663_v49  ;;  %v3759_v59 = vcombine.low %v655_v47, %v663_v49 }
 0x16f   : > { %v3740_v42 = vcombine.high %v637_v37, %v645_v38  ;;  %926 = vmatprep.subr.bf16.mxu0 %v3756_v34  ;;  %v3742_v45 = vcombine.high %v638_v43, %v646_v44  ;;  %979 = vmatprep.subr.bf16.mxu1 %v3758_v40  ;;  %v3739_v46 = vcombine.low %v637_v37, %v645_v38  ;;  %v4551_v54 = vld [vmem:[#allocation8] sm:$0xff]   ;;  %v640_v57 = vld [vmem:[%s4496_s12 + $0x18] sm:$0xff]  ;;  %v657_v63 = vld [vmem:[%s4496_s12 + $0xa0] sm:$0xff]  ;;  %v6254_v34 = vmov 0.0  }
 0x170   : > { %927 = vmatpush1.bf16.msra.mxu0 %v3755_v36  ;;  %980 = vmatpush1.bf16.msra.mxu1 %v3757_v41  ;;  %v3741_v48 = vcombine.low %v638_v43, %v646_v44  ;;  %v3762_v53 = vcombine.high %v656_v50, %v664_v51  ;;  %v639_v55 = vld [vmem:[%s4496_s12 + $0x10] sm:$0xff]  ;;  %v648_v58 = vld [vmem:[%s4496_s12 + $0x58] sm:$0xff]  ;;  %v3761_v60 = vcombine.low %v656_v50, %v664_v51  ;;  %v665_v0 = vld [vmem:[%s4496_s12 + $0xe0] sm:$0xff] }
 0x171   : > { %928 = vmatprep.subr.bf16.mxu0 %v3740_v42  ;;  %981 = vmatprep.subr.bf16.mxu1 %v3742_v45  ;;  %v647_v56 = vld [vmem:[%s4496_s12 + $0x50] sm:$0xff]  ;;  %v3746_v62 = vcombine.high %v640_v57, %v648_v58  ;;  %v658_v1 = vld [vmem:[%s4496_s12 + $0xa8] sm:$0xff]  ;;  %v3745_v4 = vcombine.low %v640_v57, %v648_v58  ;;  %v3764_v5 = vcombine.high %v657_v63, %v665_v0  ;;  %v4567_v6 = vld [vmem:[#allocation8 + $0x8] sm:$0xff]  }
 0x172   : > { %v3744_v61 = vcombine.high %v639_v55, %v647_v56  ;;  %v666_v2 = vld [vmem:[%s4496_s12 + $0xe8] sm:$0xff]  ;;  %v3743_v3 = vcombine.low %v639_v55, %v647_v56  ;;  %v641_v8 = vld [vmem:[%s4496_s12 + $0x20] sm:$0xff]  ;;  %v3763_v12 = vcombine.low %v657_v63, %v665_v0  ;;  %v659_v16 = vld [vmem:[%s4496_s12 + $0xb0] sm:$0xff] }
 0x173   : > { %v3766_v7 = vcombine.high %v658_v1, %v666_v2  ;;  %v649_v9 = vld [vmem:[%s4496_s12 + $0x60] sm:$0xff]  ;;  %v642_v10 = vld [vmem:[%s4496_s12 + $0x28] sm:$0xff]  ;;  %v3765_v13 = vcombine.low %v658_v1, %v666_v2  ;;  %v667_v17 = vld [vmem:[%s4496_s12 + $0xf0] sm:$0xff] }
 0x174   : > { %929 = vmatpush1.bf16.msra.mxu0 %v3739_v46  ;;  %982 = vmatpush1.bf16.msra.mxu1 %v3741_v48  ;;  %v650_v11 = vld [vmem:[%s4496_s12 + $0x68] sm:$0xff]  ;;  %v3748_v14 = vcombine.high %v641_v8, %v649_v9  ;;  %v660_v18 = vld [vmem:[%s4496_s12 + $0xb8] sm:$0xff]  ;;  %v3747_v20 = vcombine.low %v641_v8, %v649_v9  ;;  %v3768_v22 = vcombine.high %v659_v16, %v667_v17  ;;  %v643_v24 = vld [vmem:[%s4496_s12 + $0x30] sm:$0xff] }
 0x175   : > { %1032 = vmatprep.subr.bf16.mxu0 %v3760_v52  ;;  %1085 = vmatprep.subr.bf16.mxu1 %v3762_v53  ;;  %v3750_v15 = vcombine.high %v642_v10, %v650_v11  ;;  %v668_v19 = vld [vmem:[%s4496_s12 + $0xf8] sm:$0xff]  ;;  %v3749_v21 = vcombine.low %v642_v10, %v650_v11  ;;  %v651_v25 = vld [vmem:[%s4496_s12 + $0x70] sm:$0xff]  ;;  %v3767_v28 = vcombine.low %v659_v16, %v667_v17  ;;  %v1407_v35 = vld [vmem:[%s6338_s27 + $0x8] sm:$0xff] }
 0x176   : > { %v3770_v23 = vcombine.high %v660_v18, %v668_v19  ;;  %v644_v26 = vld [vmem:[%s4496_s12 + $0x38] sm:$0xff]  ;;  %v3769_v29 = vcombine.low %v660_v18, %v668_v19  ;;  %v3752_v30 = vcombine.high %v643_v24, %v651_v25  ;;  %v3751_v32 = vcombine.low %v643_v24, %v651_v25  ;;  %1417 = vperm.xlu1 %4019, %v1407_v35   ;;  %v1406_v37 = vld [vmem:[%s6338_s27] sm:$0xff]  ;;  %v1408_v38 = vld [vmem:[%s6338_s27 + $0x10] sm:$0xff] }
 0x177   : > { %3771 = vmatmul.mubr.msk.bf16.vlgmr.msra.gmra.mxu0 %vm907_vm1, %v4551_v54  ;;  %3773 = vmatmul.mubr.msk.bf16.vlgmr.msra.gmra.mxu1 %vm907_vm1, %v4551_v54  ;;  %v652_v27 = vld [vmem:[%s4496_s12 + $0x78] sm:$0xff]  ;;  %v2223_v40 = vld [vmem:[%s6339_s9 + $0x8] sm:$0xff]  ;;  %v2224_v41 = vld [vmem:[%s6339_s9 + $0x10] sm:$0xff] }
 0x178   : > { %956 = vmatprep.mubr.bf16.mxu0 %v4268_v39  ;;  %1009 = vmatprep.mubr.bf16.mxu1 %v4268_v39  ;;  %v3754_v31 = vcombine.high %v644_v26, %v652_v27  ;;  %v3753_v33 = vcombine.low %v644_v26, %v652_v27  ;;  %v1409_v36 = vld [vmem:[%s6338_s27 + $0x18] sm:$0xff]  ;;  %v717_v57 = vld [vmem:[#allocation2 + $0x1c0] sm:$0xff]  ;;  %v701_v63 = vld [vmem:[#allocation2 + $0x90] sm:$0xff] }
 0x179   : > { %1033 = vmatpush1.bf16.msra.mxu0 %v3759_v59  ;;  %1086 = vmatpush1.bf16.msra.mxu1 %v3761_v60  ;;  %v2225_v42 = vld [vmem:[%s6339_s9 + $0x18] sm:$0xff]  ;;  %v720_v59 = vld [vmem:[#allocation2 + $0x110] sm:$0xff]  ;;  %v688_v9 = vld [vmem:[#allocation2 + $0xa8] sm:$0xff] }
 0x17a   : > { %1034 = vmatprep.subr.bf16.mxu0 %v3744_v61  ;;  %1087 = vmatprep.subr.bf16.mxu1 %v3746_v62  ;;  %v718_v56 = vld [vmem:[#allocation2 + $0x18] sm:$0xff]  ;;  %v719_v61 = vld [vmem:[#allocation2 + $0x48] sm:$0xff]  ;;  %v704_v0 = vld [vmem:[#allocation2 + $0xd0] sm:$0xff] }
 0x17b   : > { %1427 = vperm.xlu0 %4018, %v1409_v36   ;;  %1412 = vperm.xlu1 %4019, %v1406_v37   ;;  %v702_v60 = vld [vmem:[#allocation2 + $0x158] sm:$0xff]  ;;  %v669_v18 = vld [vmem:[#allocation2 + $0x1a0] sm:$0xff] }
 0x17c   : > { %v685_v8 = vld [vmem:[#allocation2 + $0xb8] sm:$0xff]  ;;  %v672_v19 = vld [vmem:[#allocation2 + $0xc0] sm:$0xff] }
 0x17d   : > { %1035 = vmatpush1.bf16.msra.mxu0 %v3743_v3  ;;  %1088 = vmatpush1.bf16.msra.mxu1 %v3745_v4  ;;  %v686_v3 = vld [vmem:[#allocation2 + $0x88] sm:$0xff]  ;;  %v703_v4 = vld [vmem:[#allocation2 + $0x140] sm:$0xff] }
 0x17e   : > { %1138 = vmatprep.subr.bf16.mxu0 %v3764_v5  ;;  %1191 = vmatprep.subr.bf16.mxu1 %v3766_v7 }
 0x17f   : > { %3772 = vmatmul.mubr.msk.bf16.gmra.mxu0 %vm907_vm1, %v4567_v6  ;;  %3774 = vmatmul.mubr.msk.bf16.gmra.mxu1 %vm907_vm1, %v4567_v6 }
 0x180   : > { %1052 = vmatprep.mubr.bf16.mxu0 %v4268_v39  ;;  %1105 = vmatprep.mubr.bf16.mxu1 %v4268_v39 }
 0x181   : > { %1422 = vperm.xlu0 %4018, %v1408_v38   ;;  %2233 = vperm.xlu1 %4019, %v2223_v40   ;;  %v4727_v40 = vld [vmem:[%s6340_s7 + $0x8] sm:$0xff] }
 0x185   : > { %2243 = vperm.xlu1 %4019, %v2225_v42  }
 0x187   : > { %3775 = vmatmul.mubr.msk.bf16.vlgmr.msra.gmra.mxu0 %vm907_vm1, %v4551_v54  ;;  %3777 = vmatmul.mubr.msk.bf16.vlgmr.msra.gmra.mxu1 %vm907_vm1, %v4551_v54 }
 0x188   : > { %1062 = vmatprep.mubr.bf16.mxu0 %v4268_v39  ;;  %1115 = vmatprep.mubr.bf16.mxu1 %v4268_v39 }
 0x189   : > { %1139 = vmatpush1.bf16.msra.mxu0 %v3763_v12  ;;  %1192 = vmatpush1.bf16.msra.mxu1 %v3765_v13  ;;  %v670_v13 = vld [vmem:[#allocation2 + $0x1e0] sm:$0xff] }
 0x18a   : > { %1140 = vmatprep.subr.bf16.mxu0 %v3748_v14  ;;  %1193 = vmatprep.subr.bf16.mxu1 %v3750_v15  ;;  %v687_v14 = vld [vmem:[#allocation2 + $0xc8] sm:$0xff] }
 0x18d   : > { %1141 = vmatpush1.bf16.msra.mxu0 %v3747_v20  ;;  %1194 = vmatpush1.bf16.msra.mxu1 %v3749_v21 }
 0x18e   : > { %1244 = vmatprep.subr.bf16.mxu0 %v3768_v22  ;;  %1297 = vmatprep.subr.bf16.mxu1 %v3770_v23  ;;  %v671_v23 = vld [vmem:[#allocation2 + $0x60] sm:$0xff] }
 0x18f   : > { %3776 = vmatmul.mubr.msk.bf16.gmra.mxu0 %vm907_vm1, %v4567_v6  ;;  %3778 = vmatmul.mubr.msk.bf16.gmra.mxu1 %vm907_vm1, %v4567_v6 }
 0x190   : > { %1158 = vmatprep.mubr.bf16.mxu0 %v4268_v39  ;;  %1211 = vmatprep.mubr.bf16.mxu1 %v4268_v39 }
 0x197   : > { %3779 = vmatmul.mubr.msk.bf16.vlgmr.msra.gmra.mxu0 %vm907_vm1, %v4551_v54  ;;  %3781 = vmatmul.mubr.msk.bf16.vlgmr.msra.gmra.mxu1 %vm907_vm1, %v4551_v54 }
 0x198   : > { %1168 = vmatprep.mubr.bf16.mxu0 %v4268_v39  ;;  %1221 = vmatprep.mubr.bf16.mxu1 %v4268_v39 }
 0x199   : > { %1245 = vmatpush1.bf16.msra.mxu0 %v3767_v28  ;;  %1298 = vmatpush1.bf16.msra.mxu1 %v3769_v29 }
 0x19a   : > { %1246 = vmatprep.subr.bf16.mxu0 %v3752_v30  ;;  %1299 = vmatprep.subr.bf16.mxu1 %v3754_v31 }
 0x19d   : > { %1247 = vmatpush1.bf16.msra.mxu0 %v3751_v32  ;;  %1300 = vmatpush1.bf16.msra.mxu1 %v3753_v33  ;;  %v4707_v33 = vld [vmem:[%s6340_s7] sm:$0xff] }
 0x19f   : > { %3780 = vmatmul.mubr.msk.bf16.gmra.mxu0 %vm907_vm1, %v4567_v6  ;;  %3782 = vmatmul.mubr.msk.bf16.gmra.mxu1 %vm907_vm1, %v4567_v6 }
 0x1a0   : > { %1264 = vmatprep.mubr.bf16.mxu0 %v4268_v39  ;;  %1317 = vmatprep.mubr.bf16.mxu1 %v4268_v39 }
 0x1a7   : > { %3783 = vmatmul.mubr.msk.bf16.vlgmr.msra.gmra.mxu0 %vm907_vm1, %v4551_v54  ;;  %3785 = vmatmul.mubr.msk.bf16.vlgmr.msra.gmra.mxu1 %vm907_vm1, %v4551_v54 }
 0x1a8   : > { %1274 = vmatprep.mubr.bf16.mxu0 %v4268_v39  ;;  %1327 = vmatprep.mubr.bf16.mxu1 %v4268_v39  ;;  %v2222_v39 = vld [vmem:[%s6339_s9] sm:$0xff] }
 0x1a9   : > { %2228 = vperm.xlu0 %4018, %v2222_v39  }
 0x1ad   : > { %2238 = vperm.xlu0 %4018, %v2224_v41  }
 0x1af   : > { %3784 = vmatmul.mubr.msk.bf16.gmra.mxu0 %vm907_vm1, %v4567_v6  ;;  %3786 = vmatmul.mubr.msk.bf16.gmra.mxu1 %vm907_vm1, %v4567_v6 }
 0x1b0   : > { %1506 = vmatprep.mubr.f32.mxu0 %v6254_v34  ;;  %1595 = vmatprep.mubr.f32.mxu1 %v6254_v34 }
 0x237   : > { %v948_v43 = vpop.f32.mrf.mxu0  ;;  %v4647_v44 = vpop.f32.mrf.mxu1 }
 0x238   : > { %v4696_v30 = vadd.f32 %v948_v43, %v669_v18  ;;  %v4710_v35 = vadd.f32 %v4647_v44, %v671_v23  ;;  %v722_v43 = vld [vmem:[#allocation2 + $0x108] sm:$0xff]  ;;  %v4780_v18 = vld [vmem:[%s6340_s7 + $0x18] sm:$0xff] }
 0x239   : > { %v950_v45 = vpop.f32.mrf.mxu0  ;;  %v1003_v46 = vpop.f32.mrf.mxu1  ;;  %v676_v23 = vld [vmem:[#allocation2 + $0x1b8] sm:$0xff] }
 0x23a   : > { %v4688_v27 = vadd.f32 %v950_v45, %v670_v13  ;;  %v4698_v31 = vadd.f32 %v1003_v46, %v672_v19  ;;  %v724_v45 = vld [vmem:[#allocation2 + $0x8] sm:$0xff] }
 0x23b   : > { %v952_v47 = vpop.f32.mrf.mxu0  ;;  %v1005_v48 = vpop.f32.mrf.mxu1  ;;  %v721_v46 = vld [vmem:[#allocation2 + $0x1e8] sm:$0xff] }
 0x23c   : > { %v4680_v24 = vadd.f32 %v952_v47, %v685_v8  ;;  %v4690_v28 = vadd.f32 %v1005_v48, %v687_v14  ;;  %v723_v47 = vld [vmem:[#allocation2 + $0x1b0] sm:$0xff]  ;;  %v674_v19 = vld [vmem:[#allocation2 + $0x68] sm:$0xff] }
 0x23d   : > { %v954_v49 = vpop.f32.mrf.mxu0  ;;  %v1007_v50 = vpop.f32.mrf.mxu1  ;;  %v691_v8 = vld [vmem:[#allocation2 + $0x150] sm:$0xff] }
 0x23e   : > { %v4672_v20 = vadd.f32 %v954_v49, %v686_v3  ;;  %v4682_v25 = vadd.f32 %v1007_v50, %v688_v9  ;;  %v4738_v49 = vld [vmem:[%s6340_s7 + $0x10] sm:$0xff]  ;;  %v706_v50 = vld [vmem:[#allocation2 + $0x168] sm:$0xff] }
 0x23f   : > { %v958_v51 = vpop.f32.mrf.mxu0  ;;  %v1011_v52 = vpop.f32.mrf.mxu1 }
 0x240   : > { %v4664_v15 = vadd.f32 %v958_v51, %v701_v63  ;;  %v4674_v21 = vadd.f32 %v1011_v52, %v703_v4  ;;  %v708_v51 = vld [vmem:[#allocation2] sm:$0xff]  ;;  %v689_v4 = vld [vmem:[#allocation2 + $0x1c8] sm:$0xff] }
 0x241   : > { %v960_v53 = vpop.f32.mrf.mxu0  ;;  %v1013_v54 = vpop.f32.mrf.mxu1 }
 0x242   : > { %v4657_v10 = vadd.f32 %v960_v53, %v702_v60  ;;  %v4666_v16 = vadd.f32 %v1013_v54, %v704_v0  ;;  %v690_v0 = vld [vmem:[#allocation2 + $0x50] sm:$0xff] }
 0x243   : > { %v962_v55 = vpop.f32.mrf.mxu0  ;;  %v1015_v58 = vpop.f32.mrf.mxu1 }
 0x244   : > { %v4651_v5 = vadd.f32 %v962_v55, %v717_v57  ;;  %v4659_v11 = vadd.f32 %v1015_v58, %v719_v61  ;;  %v707_v57 = vld [vmem:[#allocation2 + $0x170] sm:$0xff] }
 0x245   : > { %v964_v62 = vpop.f32.mrf.mxu0  ;;  %v1017_v2 = vpop.f32.mrf.mxu1 }
 0x246   : > { %v4649_v1 = vadd.f32 %v964_v62, %v718_v56  ;;  %v4653_v6 = vadd.f32 %v1017_v2, %v720_v59  ;;  %v705_v56 = vld [vmem:[#allocation2 + $0x20] sm:$0xff] }
 0x247   : > { %v4655_v7 = vpop.f32.mrf.mxu0  ;;  %v4661_v12 = vpop.f32.mrf.mxu1  ;;  %v692_v2 = vld [vmem:[#allocation2 + $0x180] sm:$0xff] }
 0x248   : > { %1466 = vmatprep.subr.mxu0 %v4649_v1  ;;  %1555 = vmatprep.subr.mxu1 %v4653_v6 }
 0x249   : > { %v4669_v17 = vpop.f32.mrf.mxu0  ;;  %1467 = vmatpush1.msra.mxu0 %v4651_v5  ;;  %v4676_v22 = vpop.f32.mrf.mxu1  ;;  %1556 = vmatpush1.msra.mxu1 %v4659_v11 }
 0x24a   : > { %1468 = vmatprep.subr.mxu0 %v4657_v10  ;;  %1557 = vmatprep.subr.mxu1 %v4666_v16 }
 0x24b   : > { %v4685_v26 = vpop.f32.mrf.mxu0  ;;  %1469 = vmatpush1.msra.mxu0 %v4664_v15  ;;  %v4692_v29 = vpop.f32.mrf.mxu1  ;;  %1558 = vmatpush1.msra.mxu1 %v4674_v21 }
 0x24c   : > { %1470 = vmatprep.subr.mxu0 %v4672_v20  ;;  %1559 = vmatprep.subr.mxu1 %v4682_v25 }
 0x24d   : > { %v4701_v32 = vpop.f32.mrf.mxu0  ;;  %1471 = vmatpush1.msra.mxu0 %v4680_v24  ;;  %v4712_v36 = vpop.f32.mrf.mxu1  ;;  %1560 = vmatpush1.msra.mxu1 %v4690_v28 }
 0x24e   : > { %1472 = vmatprep.subr.mxu0 %v4688_v27  ;;  %1561 = vmatprep.subr.mxu1 %v4698_v31 }
 0x24f   : > { %v1064_v37 = vpop.f32.mrf.mxu0  ;;  %1473 = vmatpush1.msra.mxu0 %v4696_v30  ;;  %v1117_v38 = vpop.f32.mrf.mxu1  ;;  %1562 = vmatpush1.msra.mxu1 %v4710_v35 }
 0x250   : > { %3787 = vmatmul.mubr.msk.f32.vlgmr.msra.gmra.mxu0 %vm907_vm1, %v4707_v33  ;;  %3791 = vmatmul.mubr.msk.f32.vlgmr.msra.gmra.mxu1 %vm907_vm1, %v4707_v33  ;;  %v4769_v9 = vadd.f32 %v1064_v37, %v705_v56  ;;  %v4771_v13 = vadd.f32 %v1117_v38, %v707_v57  ;;  %v673_v37 = vld [vmem:[#allocation2 + $0x130] sm:$0xff]  ;;  %v4787_v38 = vadd.f32 %v4701_v32, %v690_v0  ;;  %v725_v56 = vld [vmem:[#allocation2 + $0x100] sm:$0xff]  ;;  %v727_v57 = vld [vmem:[#allocation2 + $0xf8] sm:$0xff] }
 0x251   : > { %v1066_v39 = vpop.f32.mrf.mxu0  ;;  %1512 = vmatprep.mubr.f32.mxu0 %v6254_v34  ;;  %v1119_v41 = vpop.f32.mrf.mxu1  ;;  %1601 = vmatprep.mubr.f32.mxu1 %v6254_v34 }
 0x252   : > { %v4756_v61 = vadd.f32 %v1066_v39, %v706_v50  ;;  %v4758_v62 = vadd.f32 %v1119_v41, %v708_v51  ;;  %v4790_v41 = vadd.f32 %v4712_v36, %v692_v2  ;;  %v4809_v36 = vadd.f32 %v4669_v17, %v674_v19  ;;  %v726_v50 = vld [vmem:[#allocation2 + $0x148] sm:$0xff]  ;;  %v728_v51 = vld [vmem:[#allocation2 + $0xb0] sm:$0xff]  ;;  %v710_v19 = vld [vmem:[#allocation2 + $0x1f8] sm:$0xff] }
 0x253   : > { %v1068_v42 = vpop.f32.mrf.mxu0  ;;  %v1121_v44 = vpop.f32.mrf.mxu1 }
 0x254   : > { %3788 = vmatmul.mubr.msk.f32.gmra.mxu0 %vm907_vm1, %v4727_v40  ;;  %3792 = vmatmul.mubr.msk.f32.gmra.mxu1 %vm907_vm1, %v4727_v40  ;;  %v4747_v58 = vadd.f32 %v1068_v42, %v721_v46  ;;  %v4749_v59 = vadd.f32 %v1121_v44, %v723_v47  ;;  %6345 = vst [vmem:[#allocation25_spill] sm:$0xff] %v4758_v62 }
 0x255   : > { %v1070_v48 = vpop.f32.mrf.mxu0  ;;  %1518 = vmatprep.mubr.f32.mxu0 %v6254_v34  ;;  %v1123_v53 = vpop.f32.mrf.mxu1  ;;  %1607 = vmatprep.mubr.f32.mxu1 %v6254_v34  ;;  %v4797_v44 = vadd.f32 %v4685_v26, %v689_v4  ;;  %v4812_v46 = vadd.f32 %v4676_v22, %v676_v23  ;;  %v712_v23 = vld [vmem:[#allocation2 + $0xa0] sm:$0xff] }
 0x256   : > { %v4740_v52 = vadd.f32 %v1070_v48, %v722_v43  ;;  %v4743_v54 = vadd.f32 %v1123_v53, %v724_v45  ;;  %6343 = vst [vmem:[#allocation23_spill] sm:$0xff] %v4747_v58  ;;  %6344 = vst [vmem:[#allocation24_spill] sm:$0xff] %v4749_v59  ;;  %v675_v43 = vld [vmem:[#allocation2 + $0x178] sm:$0xff]  ;;  %v4800_v45 = vadd.f32 %v4692_v29, %v691_v8 }
 0x257   : > { %v4745_v55 = vpop.f32.mrf.mxu0  ;;  %v4751_v60 = vpop.f32.mrf.mxu1  ;;  %v4817_v29 = vadd.f32 %v4655_v7, %v673_v37  ;;  %v4822_v48 = vadd.f32 %v4661_v12, %v675_v43 }
 0x258   : > { %6341 = vst [vmem:[#allocation21_spill] sm:$0xff] %v4740_v52  ;;  %6342 = vst [vmem:[#allocation22_spill] sm:$0xff] %v4743_v54  ;;  %3789 = vmatmul.mubr.msk.f32.gmra.mxu0 %vm907_vm1, %v4738_v49  ;;  %1644 = vmatprep.subr.mxu0 %v4740_v52 }
 0x259   : > { %3793 = vmatmul.mubr.msk.f32.gmra.mxu1 %vm907_vm1, %v4738_v49  ;;  %1733 = vmatprep.subr.mxu1 %v4743_v54  ;;  %v4763_v63 = vpop.f32.mrf.mxu0  ;;  %v4765_v3 = vpop.f32.mrf.mxu1 }
 0x25a   : > { %1645 = vmatpush1.msra.mxu0 %v4747_v58  ;;  %1734 = vmatpush1.msra.mxu1 %v4749_v59  ;;  %v677_v58 = vld [vmem:[#allocation2 + $0x58] sm:$0xff] }
 0x25b   : > { %1646 = vmatprep.subr.mxu0 %v4756_v61  ;;  %1735 = vmatprep.subr.mxu1 %v4758_v62  ;;  %v4775_v14 = vpop.f32.mrf.mxu0  ;;  %v4782_v39 = vpop.f32.mrf.mxu1 }
 0x25c   : > { %1524 = vmatprep.mubr.f32.mxu0 %v6254_v34  ;;  %1613 = vmatprep.mubr.f32.mxu1 %v6254_v34 }
 0x25d   : > { %1647 = vmatpush1.msra.mxu0 %v4769_v9  ;;  %1736 = vmatpush1.msra.mxu1 %v4771_v13  ;;  %v4794_v42 = vpop.f32.mrf.mxu0  ;;  %v4806_v32 = vpop.f32.mrf.mxu1 }
 0x25e   : > { %3790 = vmatmul.mubr.msk.f32.gmra.mxu0 %vm907_vm1, %v4780_v18  ;;  %3794 = vmatmul.mubr.msk.f32.gmra.mxu1 %vm907_vm1, %v4780_v18 }
 0x25f   : > { %1648 = vmatprep.subr.mxu0 %v4787_v38  ;;  %1737 = vmatprep.subr.mxu1 %v4790_v41  ;;  %v1170_v26 = vpop.f32.mrf.mxu0  ;;  %v1223_v47 = vpop.f32.mrf.mxu1 }
 0x260   : > { %1649 = vmatpush1.msra.mxu0 %v4797_v44  ;;  %1738 = vmatpush1.msra.mxu1 %v4800_v45 }
 0x261   : > { %1650 = vmatprep.subr.mxu0 %v4809_v36  ;;  %1739 = vmatprep.subr.mxu1 %v4812_v46  ;;  %v1172_v17 = vpop.f32.mrf.mxu0  ;;  %v1225_v22 = vpop.f32.mrf.mxu1 }
 0x262   : > { %1651 = vmatpush1.msra.mxu0 %v4817_v29  ;;  %1684 = vmatprep.mubr.f32.mxu0 %v6254_v34  ;;  %v4860_v52 = vadd.f32 %v1172_v17, %v710_v19  ;;  %v693_v17 = vld [vmem:[#allocation2 + $0x40] sm:$0xff]  ;;  %v695_v19 = vld [vmem:[#allocation2 + $0x138] sm:$0xff] }
 0x263   : > { %1740 = vmatpush1.msra.mxu1 %v4822_v48  ;;  %1773 = vmatprep.mubr.f32.mxu1 %v6254_v34  ;;  %v1174_v7 = vpop.f32.mrf.mxu0  ;;  %v1227_v12 = vpop.f32.mrf.mxu1 }
 0x264   : > { %3795 = vmatmul.mubr.msk.f32.vlgmr.msra.gmra.mxu0 %vm907_vm1, %v4707_v33  ;;  %3799 = vmatmul.mubr.msk.f32.vlgmr.msra.gmra.mxu1 %vm907_vm1, %v4707_v33  ;;  %v4848_v43 = vadd.f32 %v1174_v7, %v725_v56  ;;  %6351 = vst [vmem:[#allocation30_spill] sm:$0xff] %v4860_v52  ;;  %v4862_v7 = vadd.f32 %v1225_v22, %v712_v23  ;;  %v694_v56 = vld [vmem:[#allocation2 + $0x38] sm:$0xff] }
 0x265   : > { %1690 = vmatprep.mubr.f32.mxu0 %v6254_v34  ;;  %1779 = vmatprep.mubr.f32.mxu1 %v6254_v34  ;;  %v1176_v53 = vpop.f32.mrf.mxu0  ;;  %v1229_v2 = vpop.f32.mrf.mxu1  ;;  %v4850_v34 = vadd.f32 %v1227_v12, %v727_v57  ;;  %v696_v57 = vld [vmem:[#allocation2 + $0x198] sm:$0xff] }
 0x266   : > { %v4836_v0 = vadd.f32 %v1176_v53, %v726_v50  ;;  %v4838_v4 = vadd.f32 %v1229_v2, %v728_v51  ;;  %6348 = vst [vmem:[#allocation28_spill] sm:$0xff] %v4848_v43  ;;  %v6350_v50 = vmov 0.0   ;;  %v709_v53 = vld [vmem:[#allocation2 + $0x10] sm:$0xff]  ;;  %6352 = vst [vmem:[#allocation31_spill] sm:$0xff] %v4862_v7 }
 0x267   : > { %v4840_v8 = vpop.f32.mrf.mxu0  ;;  %v4846_v37 = vpop.f32.mrf.mxu1  ;;  %6349 = vst [vmem:[#allocation29_spill] sm:$0xff] %v4850_v34  ;;  %v711_v2 = vld [vmem:[#allocation2 + $0x190] sm:$0xff]  ;;  %v4874_v22 = vadd.f32 %v1170_v26, %v709_v53  ;;  %v4887_v26 = vadd.f32 %v4794_v42, %v694_v56 }
 0x268   : > { %6346 = vst [vmem:[#allocation26_spill] sm:$0xff] %v4836_v0  ;;  %6347 = vst [vmem:[#allocation27_spill] sm:$0xff] %v4838_v4  ;;  %3796 = vmatmul.mubr.msk.f32.gmra.mxu0 %vm907_vm1, %v4727_v40  ;;  %3800 = vmatmul.mubr.msk.f32.gmra.mxu1 %vm907_vm1, %v4727_v40  ;;  %v4876_v23 = vadd.f32 %v1223_v47, %v711_v2  ;;  %v4890_v47 = vadd.f32 %v4806_v32, %v696_v57  ;;  %v679_v2 = vld [vmem:[#allocation2 + $0x160] sm:$0xff] }
 0x269   : > { %1696 = vmatprep.mubr.f32.mxu0 %v6350_v50  ;;  %1785 = vmatprep.mubr.f32.mxu1 %v6350_v50  ;;  %v4854_v51 = vpop.f32.mrf.mxu0  ;;  %v4858_v54 = vpop.f32.mrf.mxu1  ;;  %6353 = vst [vmem:[#allocation32_spill] sm:$0xff] %v4874_v22  ;;  %6355 = vst [vmem:[#allocation34_spill] sm:$0xff] %v4887_v26 }
 0x26a   : > { %1822 = vmatprep.subr.mxu0 %v4836_v0  ;;  %1911 = vmatprep.subr.mxu1 %v4838_v4  ;;  %6354 = vst [vmem:[#allocation33_spill] sm:$0xff] %v4876_v23  ;;  %6356 = vst [vmem:[#allocation35_spill] sm:$0xff] %v4890_v47 }
 0x26b   : > { %1823 = vmatpush1.msra.mxu0 %v4848_v43  ;;  %1912 = vmatpush1.msra.mxu1 %v4850_v34  ;;  %v4866_v12 = vpop.f32.mrf.mxu0  ;;  %v4872_v4 = vpop.f32.mrf.mxu1  ;;  %v678_v34 = vld [vmem:[#allocation2 + $0xf0] sm:$0xff] }
 0x26c   : > { %3797 = vmatmul.mubr.msk.f32.gmra.mxu0 %vm907_vm1, %v4738_v49  ;;  %3801 = vmatmul.mubr.msk.f32.gmra.mxu1 %vm907_vm1, %v4738_v49  ;;  %v680_v43 = vld [vmem:[#allocation2 + $0x1f0] sm:$0xff]  ;;  %v4905_v32 = vadd.f32 %v4763_v63, %v678_v34  ;;  %v730_v63 = vld [vmem:[#allocation2 + $0xe0] sm:$0xff] }
 0x26d   : > { %1824 = vmatprep.subr.mxu0 %v4860_v52  ;;  %1913 = vmatprep.subr.mxu1 %v4862_v7  ;;  %v4880_v0 = vpop.f32.mrf.mxu0  ;;  %v4884_v59 = vpop.f32.mrf.mxu1  ;;  %v4895_v7 = vadd.f32 %v4775_v14, %v693_v17  ;;  %v4898_v52 = vadd.f32 %v4782_v39, %v695_v19  ;;  %v4908_v56 = vadd.f32 %v4765_v3, %v680_v43  ;;  %v732_v3 = vld [vmem:[#allocation2 + $0x120] sm:$0xff] }
 0x26e   : > { %1702 = vmatprep.mubr.f32.mxu0 %v6350_v50  ;;  %1791 = vmatprep.mubr.f32.mxu1 %v6350_v50  ;;  %6359 = vst [vmem:[#allocation38_spill] sm:$0xff] %v4905_v32  ;;  %v4913_v39 = vadd.f32 %v4745_v55, %v677_v58  ;;  %v4918_v17 = vadd.f32 %v4751_v60, %v679_v2  ;;  %v729_v55 = vld [vmem:[#allocation2 + $0x118] sm:$0xff] }
 0x26f   : > { %1825 = vmatpush1.msra.mxu0 %v4874_v22  ;;  %1914 = vmatpush1.msra.mxu1 %v4876_v23  ;;  %v1276_v53 = vpop.f32.mrf.mxu0  ;;  %6357 = vst [vmem:[#allocation36_spill] sm:$0xff] %v4895_v7  ;;  %6358 = vst [vmem:[#allocation37_spill] sm:$0xff] %v4898_v52  ;;  %v1329_v42 = vpop.f32.mrf.mxu1  ;;  %v714_v2 = vld [vmem:[#allocation2 + $0x1d8] sm:$0xff] }
 0x270   : > { %3798 = vmatmul.mubr.msk.f32.gmra.mxu0 %vm907_vm1, %v4780_v18  ;;  %3802 = vmatmul.mubr.msk.f32.gmra.mxu1 %vm907_vm1, %v4780_v18  ;;  %6360 = vst [vmem:[#allocation39_spill] sm:$0xff] %v4908_v56  ;;  %6361 = vst [vmem:[#allocation40_spill] sm:$0xff] %v4913_v39  ;;  %v731_v22 = vld [vmem:[#allocation2 + $0x98] sm:$0xff] }
 0x271   : > { %1826 = vmatprep.subr.mxu0 %v4887_v26  ;;  %1915 = vmatprep.subr.mxu1 %v4890_v47  ;;  %v1278_v14 = vpop.f32.mrf.mxu0  ;;  %v1331_v57 = vpop.f32.mrf.mxu1  ;;  %6362 = vst [vmem:[#allocation41_spill] sm:$0xff] %v4918_v17  ;;  %v713_v26 = vld [vmem:[#allocation2 + $0x1d0] sm:$0xff] }
 0x272   : > { %1827 = vmatpush1.msra.mxu0 %v4895_v7  ;;  %1916 = vmatpush1.msra.mxu1 %v4898_v52  ;;  %v716_v52 = vld [vmem:[#allocation2 + $0x80] sm:$0xff] }
 0x273   : > { %1828 = vmatprep.subr.mxu0 %v4905_v32  ;;  %1917 = vmatprep.subr.mxu1 %v4908_v56  ;;  %v1280_v34 = vpop.f32.mrf.mxu0  ;;  %v1333_v58 = vpop.f32.mrf.mxu1 }
 0x274   : > { %1829 = vmatpush1.msra.mxu0 %v4913_v39  ;;  %1862 = vmatprep.mubr.f32.mxu0 %v6350_v50  ;;  %v4932_v23 = vadd.f32 %v1280_v34, %v729_v55  ;;  %v698_v34 = vld [vmem:[#allocation2 + $0x78] sm:$0xff]  ;;  %v4949_v55 = vadd.f32 %v1276_v53, %v713_v26  ;;  %v699_v26 = vld [vmem:[#allocation2 + $0x30] sm:$0xff] }
 0x275   : > { %1918 = vmatpush1.msra.mxu1 %v4918_v17  ;;  %1951 = vmatprep.mubr.f32.mxu1 %v6350_v50  ;;  %v1282_v43 = vpop.f32.mrf.mxu0  ;;  %v1335_v19 = vpop.f32.mrf.mxu1  ;;  %v4960_v53 = vadd.f32 %v4880_v0, %v698_v34  ;;  %v683_v0 = vld [vmem:[#allocation2 + $0xe8] sm:$0xff]  ;;  %v4982_v34 = vadd.f32 %v4872_v4, %v699_v26 }
 0x276   : > { %3803 = vmatmul.mubr.msk.f32.vlgmr.msra.gmra.mxu0 %vm907_vm1, %v4707_v33  ;;  %3807 = vmatmul.mubr.msk.f32.vlgmr.msra.gmra.mxu1 %vm907_vm1, %v4707_v33  ;;  %v4930_v60 = vadd.f32 %v1282_v43, %v730_v63  ;;  %6364 = vst [vmem:[#allocation43_spill] sm:$0xff] %v4932_v23  ;;  %v4936_v47 = vadd.f32 %v1335_v19, %v732_v3  ;;  %6368 = vst [vmem:[#allocation47_spill] sm:$0xff] %v4949_v55  ;;  %v715_v3 = vld [vmem:[#allocation2 + $0xd8] sm:$0xff] }
 0x277   : > { %1868 = vmatprep.mubr.f32.mxu0 %v6350_v50  ;;  %1957 = vmatprep.mubr.f32.mxu1 %v6350_v50  ;;  %v4941_v63 = vadd.f32 %v1278_v14, %v714_v2  ;;  %v4943_v43 = vadd.f32 %v1333_v58, %v731_v22  ;;  %v4951_v19 = vadd.f32 %v1331_v57, %v716_v52  ;;  %v697_v14 = vld [vmem:[#allocation2 + $0x128] sm:$0xff]  ;;  %v700_v2 = vld [vmem:[#allocation2 + $0x70] sm:$0xff] }
 0x278   : > { %6363 = vst [vmem:[#allocation42_spill] sm:$0xff] %v4930_v60  ;;  %6365 = vst [vmem:[#allocation44_spill] sm:$0xff] %v4936_v47  ;;  %2000 = vmatprep.subr.mxu0 %v4930_v60  ;;  %2089 = vmatprep.subr.mxu1 %v4936_v47  ;;  %v682_v22 = vld [vmem:[#allocation2 + $0x28] sm:$0xff]  ;;  %v4962_v52 = vadd.f32 %v1329_v42, %v715_v3  ;;  %v4969_v47 = vadd.f32 %v4866_v12, %v697_v14 }
 0x279   : > { %2001 = vmatpush1.msra.mxu0 %v4932_v23  ;;  %6366 = vst [vmem:[#allocation45_spill] sm:$0xff] %v4941_v63  ;;  %6367 = vst [vmem:[#allocation46_spill] sm:$0xff] %v4943_v43  ;;  %2090 = vmatpush1.msra.mxu1 %v4943_v43  ;;  %v681_v57 = vld [vmem:[#allocation2 + $0x1a8] sm:$0xff]  ;;  %v4972_v60 = vadd.f32 %v4884_v59, %v700_v2  ;;  %v4979_v42 = vadd.f32 %v4854_v51, %v682_v22  ;;  %v5030_v2 = vpop.permute.xlu0 %1427 }
 0x27a   : > { %3804 = vmatmul.mubr.msk.f32.gmra.mxu0 %vm907_vm1, %v4727_v40  ;;  %3808 = vmatmul.mubr.msk.f32.gmra.mxu1 %vm907_vm1, %v4727_v40  ;;  %6369 = vst [vmem:[#allocation48_spill] sm:$0xff] %v4951_v19  ;;  %6370 = vst [vmem:[#allocation49_spill] sm:$0xff] %v4960_v53  ;;  %v684_v58 = vld [vmem:[#allocation2 + $0x188] sm:$0xff]  ;;  %v4987_v59 = vadd.f32 %v4840_v8, %v681_v57  ;;  %v4997_v51 = vadd.f32 %v4846_v37, %v683_v0 }
 0x27b   : > { %1874 = vmatprep.mubr.f32.mxu0 %v6350_v50  ;;  %1963 = vmatprep.mubr.f32.mxu1 %v6350_v50  ;;  %6371 = vst [vmem:[#allocation50_spill] sm:$0xff] %v4962_v52  ;;  %6372 = vst [vmem:[#allocation51_spill] sm:$0xff] %v4969_v47  ;;  %v4990_v12 = vadd.f32 %v4858_v54, %v684_v58  ;;  %v5032_v58 = vpop.permute.xlu1 %1417 }
 0x27c   : > { %2002 = vmatprep.subr.mxu0 %v4941_v63  ;;  %2091 = vmatprep.subr.mxu1 %v4951_v19  ;;  %6373 = vst [vmem:[#allocation52_spill] sm:$0xff] %v4972_v60  ;;  %6374 = vst [vmem:[#allocation53_spill] sm:$0xff] %v4979_v42 }
 0x27d   : > { %2003 = vmatpush1.msra.mxu0 %v4949_v55  ;;  %2092 = vmatpush1.msra.mxu1 %v4962_v52  ;;  %6375 = vst [vmem:[#allocation54_spill] sm:$0xff] %v4982_v34  ;;  %6376 = vst [vmem:[#allocation55_spill] sm:$0xff] %v4987_v59  ;;  %v5034_v43 = vpop.permute.xlu0 %1422 }
 0x27e   : > { %3805 = vmatmul.mubr.msk.f32.gmra.mxu0 %vm907_vm1, %v4738_v49  ;;  %3809 = vmatmul.mubr.msk.f32.gmra.mxu1 %vm907_vm1, %v4738_v49  ;;  %6377 = vst [vmem:[#allocation56_spill] sm:$0xff] %v4990_v12  ;;  %6378 = vst [vmem:[#allocation57_spill] sm:$0xff] %v4997_v51 }
 0x27f   : > { %1880 = vmatprep.mubr.f32.mxu0 %v6350_v50  ;;  %1969 = vmatprep.mubr.f32.mxu1 %v6350_v50 }
 0x280   : > { %2004 = vmatprep.subr.mxu0 %v4960_v53  ;;  %2093 = vmatprep.subr.mxu1 %v4972_v60 }
 0x281   : > { %2005 = vmatpush1.msra.mxu0 %v4969_v47  ;;  %2094 = vmatpush1.msra.mxu1 %v4982_v34 }
 0x282   : > { %3806 = vmatmul.mubr.msk.f32.gmra.mxu0 %vm907_vm1, %v4780_v18  ;;  %3810 = vmatmul.mubr.msk.f32.gmra.mxu1 %vm907_vm1, %v4780_v18 }
 0x283   : > { %2006 = vmatprep.subr.mxu0 %v4979_v42  ;;  %2095 = vmatprep.subr.mxu1 %v4990_v12  ;;  %v5044_v42 = vpop.permute.xlu1 %1412 }
 0x284   : > { %2007 = vmatpush1.msra.mxu0 %v4987_v59  ;;  %2040 = vmatprep.mubr.f32.mxu0 %v6350_v50 }
 0x285   : > { %2096 = vmatpush1.msra.mxu1 %v4997_v51  ;;  %2129 = vmatprep.mubr.f32.mxu1 %v6350_v50 }
 0x286   : > { %3811 = vmatmul.mubr.msk.f32.vlgmr.msra.gmra.mxu0 %vm907_vm1, %v4707_v33  ;;  %3815 = vmatmul.mubr.msk.f32.vlgmr.msra.gmra.mxu1 %vm907_vm1, %v4707_v33 }
 0x287   : > { %2046 = vmatprep.mubr.f32.mxu0 %v6350_v50  ;;  %2135 = vmatprep.mubr.f32.mxu1 %v6350_v50 }
 0x28a   : > { %3812 = vmatmul.mubr.msk.f32.gmra.mxu0 %vm907_vm1, %v4727_v40  ;;  %3816 = vmatmul.mubr.msk.f32.gmra.mxu1 %vm907_vm1, %v4727_v40 }
 0x28b   : > { %2052 = vmatprep.mubr.f32.mxu0 %v6350_v50  ;;  %2141 = vmatprep.mubr.f32.mxu1 %v6350_v50 }
 0x28e   : > { %3813 = vmatmul.mubr.msk.f32.gmra.mxu0 %vm907_vm1, %v4738_v49  ;;  %3817 = vmatmul.mubr.msk.f32.gmra.mxu1 %vm907_vm1, %v4738_v49 }
 0x28f   : > { %2058 = vmatprep.mubr.f32.mxu0 %v6350_v50  ;;  %2147 = vmatprep.mubr.f32.mxu1 %v6350_v50 }
 0x292   : > { %3814 = vmatmul.mubr.msk.f32.gmra.mxu0 %vm907_vm1, %v4780_v18  ;;  %3818 = vmatmul.mubr.msk.f32.gmra.mxu1 %vm907_vm1, %v4780_v18 }
 0x293   : > { %2322 = vmatprep.mubr.f32.mxu0 %v6350_v50  ;;  %2411 = vmatprep.mubr.f32.mxu1 %v6350_v50 }
 0x310   : > { %v1508_v33 = vpop.f32.mrf.mxu0  ;;  %v1597_v40 = vpop.f32.mrf.mxu1 }
 0x312   : > { %v1510_v54 = vpop.f32.mrf.mxu0  ;;  %v1599_v4 = vpop.f32.mrf.mxu1 }
 0x314   : > { %v1514_v8 = vpop.f32.mrf.mxu0  ;;  %v1603_v49 = vpop.f32.mrf.mxu1 }
 0x316   : > { %v1516_v37 = vpop.f32.mrf.mxu0  ;;  %v1605_v3 = vpop.f32.mrf.mxu1 }
 0x318   : > { %v1520_v14 = vpop.f32.mrf.mxu0 }
 0x319   : > { %v1609_v22 = vpop.f32.mrf.mxu1  ;;  %v1521_v47 = vadd.f32 %v1520_v14, %v5034_v43  ;;  %v1511_v14 = vadd.f32 %v1510_v54, %v5044_v42 }
 0x31a   : > { %v1522_v26 = vpop.f32.mrf.mxu0  ;;  %v1610_v12 = vadd.f32 %v1609_v22, %v5034_v43  ;;  %v1600_v22 = vadd.f32 %v1599_v4, %v5044_v42 }
 0x31b   : > { %v1611_v57 = vpop.f32.mrf.mxu1  ;;  %v1523_v55 = vadd.f32 %v1522_v26, %v5034_v43  ;;  %v1515_v26 = vadd.f32 %v1514_v8, %v5032_v58  ;;  %v2186_v8 = vmax.f32 %v1521_v47, 0.0 }
 0x31c   : > { %v1612_v60 = vadd.f32 %v1611_v57, %v5034_v43  ;;  %v1604_v57 = vadd.f32 %v1603_v49, %v5032_v58  ;;  %v2188_v49 = vmax.f32 %v1610_v12, 0.0 }
 0x31d   : > { %v2187_v32 = vmax.f32 %v1523_v55, 0.0  ;;  %v2170_v55 = vmax.f32 %v1515_v26, 0.0 }
 0x31e   : > { %v1526_v18 = vpop.f32.mrf.mxu0  ;;  %v1615_v0 = vpop.f32.mrf.mxu1 }
 0x31f   : > { %v1527_v23 = vadd.f32 %v1526_v18, %v5030_v2  ;;  %v1616_v19 = vadd.f32 %v1615_v0, %v5030_v2  ;;  %v1517_v18 = vadd.f32 %v1516_v37, %v5032_v58  ;;  %v1606_v0 = vadd.f32 %v1605_v3, %v5032_v58 }
 0x320   : > { %v1528_v63 = vpop.f32.mrf.mxu0  ;;  %v1617_v52 = vpop.f32.mrf.mxu1  ;;  %v2189_v37 = vmax.f32 %v1612_v60, 0.0  ;;  %v2172_v60 = vmax.f32 %v1604_v57, 0.0  ;;  %v5070_v57 = vld [vmem:[#allocation9 + $0x8] sm:$0xff] }
 0x321   : > { %v1529_v53 = vadd.f32 %v1528_v63, %v5030_v2  ;;  %v1618_v34 = vadd.f32 %v1617_v52, %v5030_v2  ;;  %v2202_v7 = vmax.f32 %v1527_v23, 0.0  ;;  %v2204_v63 = vmax.f32 %v1616_v19, 0.0 }
 0x322   : > { %v2171_v3 = vmax.f32 %v1517_v18, 0.0  ;;  %v2173_v54 = vmax.f32 %v1606_v0, 0.0 }
 0x323   : > { %v2203_v51 = vmax.f32 %v1529_v53, 0.0  ;;  %v2205_v59 = vmax.f32 %v1618_v34, 0.0  ;;  %v1509_v53 = vadd.f32 %v1508_v33, %v5044_v42  ;;  %v1598_v34 = vadd.f32 %v1597_v40, %v5044_v42 }
 0x324   : > { %v5050_v56 = vpop.f32.mrf.mxu0  ;;  %v5052_v52 = vpop.f32.mrf.mxu1  ;;  %v2155_v33 = vmax.f32 %v1511_v14, 0.0  ;;  %v2157_v40 = vmax.f32 %v1600_v22, 0.0 }
 0x325   : > { %2282 = vmatprep.subr.mxu0 %v2203_v51  ;;  %2371 = vmatprep.subr.mxu1 %v2205_v59  ;;  %v2154_v47 = vmax.f32 %v1509_v53, 0.0  ;;  %v2156_v12 = vmax.f32 %v1598_v34, 0.0 }
 0x326   : > { %v5058_v23 = vpop.f32.mrf.mxu0  ;;  %v5060_v19 = vpop.f32.mrf.mxu1  ;;  %2283 = vmatpush1.msra.mxu0 %v2202_v7  ;;  %2372 = vmatpush1.msra.mxu1 %v2204_v63  ;;  %v5062_v7 = vld [vmem:[#allocation9] sm:$0xff] }
 0x327   : > { %2284 = vmatprep.subr.mxu0 %v2187_v32  ;;  %2373 = vmatprep.subr.mxu1 %v2189_v37 }
 0x328   : > { %v1692_v51 = vpop.f32.mrf.mxu0  ;;  %v1781_v59 = vpop.f32.mrf.mxu1  ;;  %2285 = vmatpush1.msra.mxu0 %v2186_v8  ;;  %2374 = vmatpush1.msra.mxu1 %v2188_v49  ;;  %v5080_v8 = vld [vmem:[#allocation9 + $0x10] sm:$0xff] }
 0x329   : > { %2286 = vmatprep.subr.mxu0 %v2171_v3  ;;  %2375 = vmatprep.subr.mxu1 %v2173_v54 }
 0x32a   : > { %v1694_v4 = vpop.f32.mrf.mxu0  ;;  %v1783_v17 = vpop.f32.mrf.mxu1  ;;  %2287 = vmatpush1.msra.mxu0 %v2170_v55  ;;  %2376 = vmatpush1.msra.mxu1 %v2172_v60 }
 0x32b   : > { %2288 = vmatprep.subr.mxu0 %v2155_v33  ;;  %2377 = vmatprep.subr.mxu1 %v2157_v40 }
 0x32c   : > { %v1698_v32 = vpop.f32.mrf.mxu0  ;;  %v1787_v18 = vpop.f32.mrf.mxu1  ;;  %2289 = vmatpush1.msra.mxu0 %v2154_v47  ;;  %2378 = vmatpush1.msra.mxu1 %v2156_v12  ;;  %v1695_v12 = vadd.f32 %v1694_v4, %v5032_v58  ;;  %v1778_v4 = vadd.f32 %v5060_v19, %v5044_v42 }
 0x32d   : > { %3819 = vmatmul.mubr.msk.f32.vlgmr.msra.gmra.mxu0 %vm907_vm1, %v5062_v7  ;;  %3823 = vmatmul.mubr.msk.f32.vlgmr.msra.gmra.mxu1 %vm907_vm1, %v5062_v7  ;;  %v1699_v60 = vadd.f32 %v1698_v32, %v5034_v43  ;;  %v1788_v33 = vadd.f32 %v1787_v18, %v5034_v43  ;;  %v1693_v32 = vadd.f32 %v1692_v51, %v5032_v58  ;;  %v5110_v51 = vld [vmem:[#allocation9 + $0x18] sm:$0xff] }
 0x32e   : > { %v1700_v0 = vpop.f32.mrf.mxu0  ;;  %v1789_v26 = vpop.f32.mrf.mxu1  ;;  %2328 = vmatprep.mubr.f32.mxu0 %v6350_v50  ;;  %2417 = vmatprep.mubr.f32.mxu1 %v6350_v50  ;;  %v1782_v18 = vadd.f32 %v1781_v59, %v5032_v58  ;;  %v1687_v59 = vadd.f32 %v5050_v56, %v5044_v42 }
 0x32f   : > { %v1701_v49 = vadd.f32 %v1700_v0, %v5034_v43  ;;  %v1790_v3 = vadd.f32 %v1789_v26, %v5034_v43  ;;  %v1784_v0 = vadd.f32 %v1783_v17, %v5032_v58  ;;  %v1689_v17 = vadd.f32 %v5058_v23, %v5044_v42 }
 0x330   : > { %v1704_v63 = vpop.f32.mrf.mxu0  ;;  %v1793_v14 = vpop.f32.mrf.mxu1  ;;  %v1776_v23 = vadd.f32 %v5052_v52, %v5044_v42 }
 0x331   : > { %3820 = vmatmul.mubr.msk.f32.gmra.mxu0 %vm907_vm1, %v5070_v57  ;;  %3824 = vmatmul.mubr.msk.f32.gmra.mxu1 %vm907_vm1, %v5070_v57  ;;  %v1705_v22 = vadd.f32 %v1704_v63, %v5030_v2  ;;  %v1794_v37 = vadd.f32 %v1793_v14, %v5030_v2  ;;  %v2177_v19 = vmax.f32 %v1784_v0, 0.0  ;;  %v2159_v56 = vmax.f32 %v1689_v17, 0.0 }
 0x332   : > { %v1706_v53 = vpop.f32.mrf.mxu0  ;;  %v1795_v34 = vpop.f32.mrf.mxu1  ;;  %2334 = vmatprep.mubr.f32.mxu0 %v6350_v50  ;;  %2423 = vmatprep.mubr.f32.mxu1 %v6350_v50  ;;  %v2160_v0 = vmax.f32 %v1776_v23, 0.0 }
 0x333   : > { %v1707_v54 = vadd.f32 %v1706_v53, %v5030_v2  ;;  %v1796_v55 = vadd.f32 %v1795_v34, %v5030_v2  ;;  %v2206_v26 = vmax.f32 %v1705_v22, 0.0  ;;  %v2208_v63 = vmax.f32 %v1794_v37, 0.0 }
 0x334   : > { %v2191_v34 = vmax.f32 %v1701_v49, 0.0  ;;  %v2190_v22 = vmax.f32 %v1699_v60, 0.0  ;;  %v2192_v37 = vmax.f32 %v1788_v33, 0.0  ;;  %v2175_v49 = vmax.f32 %v1695_v12, 0.0 }
 0x335   : > { %v2207_v40 = vmax.f32 %v1707_v54, 0.0  ;;  %v2209_v47 = vmax.f32 %v1796_v55, 0.0  ;;  %3821 = vmatmul.mubr.msk.f32.gmra.mxu0 %vm907_vm1, %v5080_v8  ;;  %3825 = vmatmul.mubr.msk.f32.gmra.mxu1 %vm907_vm1, %v5080_v8  ;;  %v2193_v54 = vmax.f32 %v1790_v3, 0.0  ;;  %v2174_v33 = vmax.f32 %v1693_v32, 0.0 }
 0x336   : > { %v5094_v14 = vpop.f32.mrf.mxu0  ;;  %v5096_v53 = vpop.f32.mrf.mxu1  ;;  %2340 = vmatprep.mubr.f32.mxu0 %v6350_v50  ;;  %2429 = vmatprep.mubr.f32.mxu1 %v6350_v50  ;;  %v2158_v12 = vmax.f32 %v1687_v59, 0.0 }
 0x337   : > { %2460 = vmatprep.subr.mxu0 %v2207_v40  ;;  %2549 = vmatprep.subr.mxu1 %v2209_v47  ;;  %v2176_v40 = vmax.f32 %v1782_v18, 0.0  ;;  %v2161_v47 = vmax.f32 %v1778_v4, 0.0 }
 0x338   : > { %v5106_v55 = vpop.f32.mrf.mxu0  ;;  %v5108_v39 = vpop.f32.mrf.mxu1  ;;  %2461 = vmatpush1.msra.mxu0 %v2206_v26  ;;  %2550 = vmatpush1.msra.mxu1 %v2208_v63 }
 0x339   : > { %2462 = vmatprep.subr.mxu0 %v2191_v34  ;;  %2551 = vmatprep.subr.mxu1 %v2193_v54 }
 0x33a   : > { %v5116_v3 = vpop.f32.mrf.mxu0  ;;  %v5118_v60 = vpop.f32.mrf.mxu1  ;;  %2463 = vmatpush1.msra.mxu0 %v2190_v22  ;;  %2552 = vmatpush1.msra.mxu1 %v2192_v37 }
 0x33b   : > { %3822 = vmatmul.mubr.msk.f32.gmra.mxu0 %vm907_vm1, %v5110_v51  ;;  %3826 = vmatmul.mubr.msk.f32.gmra.mxu1 %vm907_vm1, %v5110_v51 }
 0x33c   : > { %v1872_v26 = vpop.f32.mrf.mxu0  ;;  %v1961_v52 = vpop.f32.mrf.mxu1  ;;  %2464 = vmatprep.subr.mxu0 %v2175_v49  ;;  %2553 = vmatprep.subr.mxu1 %v2177_v19 }
 0x33d   : > { %2465 = vmatpush1.msra.mxu0 %v2174_v33  ;;  %2554 = vmatpush1.msra.mxu1 %v2176_v40 }
 0x33e   : > { %v1876_v63 = vpop.f32.mrf.mxu0  ;;  %v1965_v34 = vpop.f32.mrf.mxu1  ;;  %2466 = vmatprep.subr.mxu0 %v2159_v56  ;;  %2555 = vmatprep.subr.mxu1 %v2161_v47 }
 0x33f   : > { %2467 = vmatpush1.msra.mxu0 %v2158_v12  ;;  %2500 = vmatprep.mubr.f32.mxu0 %v6350_v50 }
 0x340   : > { %v1878_v32 = vpop.f32.mrf.mxu0  ;;  %v1967_v18 = vpop.f32.mrf.mxu1  ;;  %2556 = vmatpush1.msra.mxu1 %v2160_v0  ;;  %2589 = vmatprep.mubr.f32.mxu1 %v6350_v50  ;;  %v1877_v0 = vadd.f32 %v1876_v63, %v5034_v43 }
 0x341   : > { %3827 = vmatmul.mubr.msk.f32.vlgmr.msra.gmra.mxu0 %vm907_vm1, %v5062_v7  ;;  %3831 = vmatmul.mubr.msk.f32.vlgmr.msra.gmra.mxu1 %vm907_vm1, %v5062_v7  ;;  %v1879_v19 = vadd.f32 %v1878_v32, %v5034_v43  ;;  %v1968_v33 = vadd.f32 %v1967_v18, %v5034_v43  ;;  %v1873_v18 = vadd.f32 %v1872_v26, %v5032_v58 }
 0x342   : > { %v1882_v54 = vpop.f32.mrf.mxu0  ;;  %v1971_v17 = vpop.f32.mrf.mxu1  ;;  %2506 = vmatprep.mubr.f32.mxu0 %v6350_v50  ;;  %2595 = vmatprep.mubr.f32.mxu1 %v6350_v50  ;;  %v1867_v26 = vadd.f32 %v5106_v55, %v5044_v42 }
 0x343   : > { %v1883_v4 = vadd.f32 %v1882_v54, %v5030_v2  ;;  %v1972_v59 = vadd.f32 %v1971_v17, %v5030_v2  ;;  %v1966_v54 = vadd.f32 %v1965_v34, %v5034_v43  ;;  %v2197_v63 = vmax.f32 %v1968_v33, 0.0 }
 0x344   : > { %v1884_v22 = vpop.f32.mrf.mxu0  ;;  %v1973_v37 = vpop.f32.mrf.mxu1  ;;  %v2179_v55 = vmax.f32 %v1873_v18, 0.0 }
 0x345   : > { %v1885_v23 = vadd.f32 %v1884_v22, %v5030_v2  ;;  %v1974_v49 = vadd.f32 %v1973_v37, %v5030_v2  ;;  %3828 = vmatmul.mubr.msk.f32.gmra.mxu0 %vm907_vm1, %v5070_v57  ;;  %3832 = vmatmul.mubr.msk.f32.gmra.mxu1 %vm907_vm1, %v5070_v57  ;;  %v2210_v22 = vmax.f32 %v1883_v4, 0.0  ;;  %v2212_v32 = vmax.f32 %v1972_v59, 0.0 }
 0x346   : > { %v5142_v40 = vpop.f32.mrf.mxu0  ;;  %2512 = vmatprep.mubr.f32.mxu0 %v6350_v50  ;;  %2601 = vmatprep.mubr.f32.mxu1 %v6350_v50  ;;  %v5146_v12 = vpop.f32.mrf.mxu1  ;;  %v1871_v4 = vadd.f32 %v5116_v3, %v5032_v58  ;;  %v1960_v59 = vadd.f32 %v5118_v60, %v5032_v58  ;;  %v2196_v33 = vmax.f32 %v1966_v54, 0.0  ;;  %v1865_v3 = vadd.f32 %v5094_v14, %v5044_v42 }
 0x347   : > { %v2211_v56 = vmax.f32 %v1885_v23, 0.0  ;;  %v2213_v47 = vmax.f32 %v1974_v49, 0.0  ;;  %v1962_v23 = vadd.f32 %v1961_v52, %v5032_v58  ;;  %v2195_v49 = vmax.f32 %v1879_v19, 0.0 }
 0x348   : > { %v5150_v17 = vpop.f32.mrf.mxu0  ;;  %v5152_v37 = vpop.f32.mrf.mxu1  ;;  %v1956_v52 = vadd.f32 %v5108_v39, %v5044_v42  ;;  %v2194_v19 = vmax.f32 %v1877_v0, 0.0  ;;  %v1954_v60 = vadd.f32 %v5096_v53, %v5044_v42  ;;  %v2178_v0 = vmax.f32 %v1871_v4, 0.0 }
 0x349   : > { %3829 = vmatmul.mubr.msk.f32.gmra.mxu0 %vm907_vm1, %v5080_v8  ;;  %3833 = vmatmul.mubr.msk.f32.gmra.mxu1 %vm907_vm1, %v5080_v8  ;;  %v2180_v54 = vmax.f32 %v1960_v59, 0.0  ;;  %v2162_v53 = vmax.f32 %v1865_v3, 0.0 }
 0x34a   : > { %2638 = vmatprep.subr.mxu0 %v2211_v56  ;;  %2727 = vmatprep.subr.mxu1 %v2213_v47  ;;  %v5160_v34 = vpop.f32.mrf.mxu0  ;;  %v5166_v62 = vpop.f32.mrf.mxu1 }
 0x34b   : > { %2639 = vmatpush1.msra.mxu0 %v2210_v22  ;;  %2728 = vmatpush1.msra.mxu1 %v2212_v32  ;;  %v2181_v22 = vmax.f32 %v1962_v23, 0.0  ;;  %v2163_v32 = vmax.f32 %v1867_v26, 0.0  ;;  %v2164_v23 = vmax.f32 %v1954_v60, 0.0 }
 0x34c   : > { %2640 = vmatprep.subr.mxu0 %v2195_v49  ;;  %2729 = vmatprep.subr.mxu1 %v2197_v63  ;;  %v2050_v56 = vpop.f32.mrf.mxu0  ;;  %v2139_v47 = vpop.f32.mrf.mxu1  ;;  %v2165_v49 = vmax.f32 %v1956_v52, 0.0 }
 0x34d   : > { %2518 = vmatprep.mubr.f32.mxu0 %v6350_v50  ;;  %2607 = vmatprep.mubr.f32.mxu1 %v6350_v50 }
 0x34e   : > { %2641 = vmatpush1.msra.mxu0 %v2194_v19  ;;  %2730 = vmatpush1.msra.mxu1 %v2196_v33  ;;  %v2054_v39 = vpop.f32.mrf.mxu0  ;;  %v2143_v14 = vpop.f32.mrf.mxu1 }
 0x34f   : > { %3830 = vmatmul.mubr.msk.f32.gmra.mxu0 %vm907_vm1, %v5110_v51  ;;  %3834 = vmatmul.mubr.msk.f32.gmra.mxu1 %vm907_vm1, %v5110_v51 }
 0x350   : > { %2642 = vmatprep.subr.mxu0 %v2179_v55  ;;  %2731 = vmatprep.subr.mxu1 %v2181_v22  ;;  %v2056_v63 = vpop.f32.mrf.mxu0  ;;  %v2145_v18 = vpop.f32.mrf.mxu1 }
 0x351   : > { %2643 = vmatpush1.msra.mxu0 %v2178_v0  ;;  %2732 = vmatpush1.msra.mxu1 %v2180_v54  ;;  %v2057_v22 = vadd.f32 %v2056_v63, %v5034_v43  ;;  %v2146_v0 = vadd.f32 %v2145_v18, %v5034_v43  ;;  %v2051_v63 = vadd.f32 %v2050_v56, %v5032_v58 }
 0x352   : > { %2644 = vmatprep.subr.mxu0 %v2163_v32  ;;  %2733 = vmatprep.subr.mxu1 %v2165_v49  ;;  %v2060_v4 = vpop.f32.mrf.mxu0  ;;  %v2149_v59 = vpop.f32.mrf.mxu1  ;;  %v2055_v32 = vadd.f32 %v2054_v39, %v5034_v43  ;;  %v2140_v18 = vadd.f32 %v2139_v47, %v5032_v58  ;;  %v2049_v39 = vadd.f32 %v5160_v34, %v5032_v58 }
 0x353   : > { %2645 = vmatpush1.msra.mxu0 %v2162_v53  ;;  %2678 = vmatprep.mubr.f32.mxu0 %v6350_v50  ;;  %v2061_v33 = vadd.f32 %v2060_v4, %v5030_v2  ;;  %v2150_v3 = vadd.f32 %v2149_v59, %v5030_v2  ;;  %v2201_v4 = vmax.f32 %v2146_v0, 0.0  ;;  %v2045_v56 = vadd.f32 %v5150_v17, %v5044_v42 }
 0x354   : > { %2734 = vmatpush1.msra.mxu1 %v2164_v23  ;;  %2767 = vmatprep.mubr.f32.mxu1 %v6350_v50  ;;  %v2062_v26 = vpop.f32.mrf.mxu0  ;;  %v2151_v19 = vpop.f32.mrf.mxu1  ;;  %v2199_v23 = vmax.f32 %v2057_v22, 0.0  ;;  %v2134_v47 = vadd.f32 %v5152_v37, %v5044_v42  ;;  %v2043_v34 = vadd.f32 %v5142_v40, %v5044_v42  ;;  %v2182_v17 = vmax.f32 %v2049_v39, 0.0  ;;  %v6407_v39 = vld [vmem:[#allocation29_spill] sm:$0xff] }
 0x355   : > { %3835 = vmatmul.mubr.msk.f32.vlgmr.msra.gmra.mxu0 %vm907_vm1, %v5062_v7  ;;  %3839 = vmatmul.mubr.msk.f32.vlgmr.msra.gmra.mxu1 %vm907_vm1, %v5062_v7  ;;  %v2063_v52 = vadd.f32 %v2062_v26, %v5030_v2  ;;  %v2152_v60 = vadd.f32 %v2151_v19, %v5030_v2  ;;  %v2144_v2 = vadd.f32 %v2143_v14, %v5034_v43  ;;  %v2214_v49 = vmax.f32 %v2061_v33, 0.0 }
 0x356   : > { %2684 = vmatprep.mubr.f32.mxu0 %v6350_v50  ;;  %2773 = vmatprep.mubr.f32.mxu1 %v6350_v50  ;;  %v2216_v53 = vmax.f32 %v2150_v3, 0.0  ;;  %v2138_v43 = vadd.f32 %v5166_v62, %v5032_v58  ;;  %v2198_v14 = vmax.f32 %v2055_v32, 0.0  ;;  %v2132_v62 = vadd.f32 %v5146_v12, %v5044_v42  ;;  %v5264_v32 = vpop.permute.xlu1 %2233 }
 0x357   : > { %v2215_v55 = vmax.f32 %v2063_v52, 0.0  ;;  %v2217_v54 = vmax.f32 %v2152_v60, 0.0  ;;  %v2200_v59 = vmax.f32 %v2144_v2, 0.0  ;;  %v2183_v58 = vmax.f32 %v2051_v63, 0.0 }
 0x358   : > { %v2185_v26 = vmax.f32 %v2140_v18, 0.0  ;;  %v2184_v37 = vmax.f32 %v2138_v43, 0.0  ;;  %v2167_v40 = vmax.f32 %v2045_v56, 0.0  ;;  %v2169_v52 = vmax.f32 %v2134_v47, 0.0  ;;  %v6402_v43 = vld [vmem:[#allocation30_spill] sm:$0xff] }
 0x359   : > { %3836 = vmatmul.mubr.msk.f32.gmra.mxu0 %vm907_vm1, %v5070_v57  ;;  %3840 = vmatmul.mubr.msk.f32.gmra.mxu1 %vm907_vm1, %v5070_v57  ;;  %v2166_v19 = vmax.f32 %v2043_v34, 0.0  ;;  %v2168_v42 = vmax.f32 %v2132_v62, 0.0 }
 0x35a   : > { %2690 = vmatprep.mubr.f32.mxu0 %v6350_v50  ;;  %2779 = vmatprep.mubr.f32.mxu1 %v6350_v50 }
 0x35b   : > { %2816 = vmatprep.subr.mxu0 %v2215_v55  ;;  %2905 = vmatprep.subr.mxu1 %v2217_v54 }
 0x35c   : > { %2817 = vmatpush1.msra.mxu0 %v2214_v49  ;;  %2906 = vmatpush1.msra.mxu1 %v2216_v53  ;;  %v6405_v49 = vld [vmem:[#allocation28_spill] sm:$0xff] }
 0x35d   : > { %3837 = vmatmul.mubr.msk.f32.gmra.mxu0 %vm907_vm1, %v5080_v8  ;;  %3841 = vmatmul.mubr.msk.f32.gmra.mxu1 %vm907_vm1, %v5080_v8 }
 0x35e   : > { %2818 = vmatprep.subr.mxu0 %v2199_v23  ;;  %2907 = vmatprep.subr.mxu1 %v2201_v4 }
 0x35f   : > { %2696 = vmatprep.mubr.f32.mxu0 %v6350_v50  ;;  %2785 = vmatprep.mubr.f32.mxu1 %v6350_v50 }
 0x360   : > { %2819 = vmatpush1.msra.mxu0 %v2198_v14  ;;  %2908 = vmatpush1.msra.mxu1 %v2200_v59 }
 0x361   : > { %3838 = vmatmul.mubr.msk.f32.gmra.mxu0 %vm907_vm1, %v5110_v51  ;;  %3842 = vmatmul.mubr.msk.f32.gmra.mxu1 %vm907_vm1, %v5110_v51 }
 0x362   : > { %2820 = vmatprep.subr.mxu0 %v2183_v58  ;;  %2909 = vmatprep.subr.mxu1 %v2185_v26 }
 0x363   : > { %2821 = vmatpush1.msra.mxu0 %v2182_v17  ;;  %2910 = vmatpush1.msra.mxu1 %v2184_v37 }
 0x364   : > { %2822 = vmatprep.subr.mxu0 %v2167_v40  ;;  %2911 = vmatprep.subr.mxu1 %v2169_v52  ;;  %v6395_v52 = vld [vmem:[#allocation39_spill] sm:$0xff] }
 0x365   : > { %2823 = vmatpush1.msra.mxu0 %v2166_v19  ;;  %2856 = vmatprep.mubr.f32.mxu0 %v6350_v50 }
 0x366   : > { %2912 = vmatpush1.msra.mxu1 %v2168_v42  ;;  %2945 = vmatprep.mubr.f32.mxu1 %v6350_v50 }
 0x367   : > { %3843 = vmatmul.mubr.msk.f32.vlgmr.msra.gmra.mxu0 %vm907_vm1, %v5062_v7  ;;  %3847 = vmatmul.mubr.msk.f32.vlgmr.msra.gmra.mxu1 %vm907_vm1, %v5062_v7  ;;  %v5252_v7 = vpop.permute.xlu0 %2228 }
 0x368   : > { %2862 = vmatprep.mubr.f32.mxu0 %v6350_v50  ;;  %2951 = vmatprep.mubr.f32.mxu1 %v6350_v50 }
 0x36b   : > { %3844 = vmatmul.mubr.msk.f32.gmra.mxu0 %vm907_vm1, %v5070_v57  ;;  %3848 = vmatmul.mubr.msk.f32.gmra.mxu1 %vm907_vm1, %v5070_v57  ;;  %v5276_v4 = vpop.permute.xlu0 %2238 }
 0x36c   : > { %2868 = vmatprep.mubr.f32.mxu0 %v6350_v50  ;;  %2957 = vmatprep.mubr.f32.mxu1 %v6350_v50 }
 0x36f   : > { %3845 = vmatmul.mubr.msk.f32.gmra.mxu0 %vm907_vm1, %v5080_v8  ;;  %3849 = vmatmul.mubr.msk.f32.gmra.mxu1 %vm907_vm1, %v5080_v8 }
 0x370   : > { %2874 = vmatprep.mubr.f32.mxu0 %v6350_v50  ;;  %2963 = vmatprep.mubr.f32.mxu1 %v6350_v50 }
 0x373   : > { %3846 = vmatmul.mubr.msk.f32.gmra.mxu0 %vm907_vm1, %v5110_v51  ;;  %3850 = vmatmul.mubr.msk.f32.gmra.mxu1 %vm907_vm1, %v5110_v51 }
 0x3ed   : > { %v2324_v57 = vpop.f32.mrf.mxu0  ;;  %v2413_v12 = vpop.f32.mrf.mxu1 }
 0x3ee   : > { %v2325_v33 = vadd.f32 %v2324_v57, %v5252_v7  ;;  %v2414_v3 = vadd.f32 %v2413_v12, %v5252_v7  ;;  %v5308_v57 = vpop.permute.xlu1 %2243 }
 0x3ef   : > { %v2326_v60 = vpop.f32.mrf.mxu0  ;;  %v2415_v8 = vpop.f32.mrf.mxu1 }
 0x3f0   : > { %v5257_v55 = vadd.f32 %v2325_v33, %v4696_v30  ;;  %v5260_v50 = vadd.f32 %v2414_v3, %v4710_v35  ;;  %v2327_v22 = vadd.f32 %v2326_v60, %v5252_v7  ;;  %v2416_v51 = vadd.f32 %v2415_v8, %v5252_v7  ;;  %v6384_v33 = vld [vmem:[#allocation23_spill] sm:$0xff] }
 0x3f1   : > { %v2330_v0 = vpop.f32.mrf.mxu0  ;;  %v2419_v54 = vpop.f32.mrf.mxu1 }
 0x3f2   : > { %v5269_v53 = vadd.f32 %v2327_v22, %v4688_v27  ;;  %v5272_v30 = vadd.f32 %v2416_v51, %v4698_v31  ;;  %v2331_v35 = vadd.f32 %v2330_v0, %v5264_v32  ;;  %v2420_v63 = vadd.f32 %v2419_v54, %v5264_v32  ;;  %v6388_v51 = vld [vmem:[#allocation21_spill] sm:$0xff] }
 0x3f3   : > { %v2332_v18 = vpop.f32.mrf.mxu0  ;;  %v2421_v23 = vpop.f32.mrf.mxu1 }
 0x3f4   : > { %v2333_v56 = vadd.f32 %v2332_v18, %v5264_v32  ;;  %v2422_v27 = vadd.f32 %v2421_v23, %v5264_v32  ;;  %v5283_v47 = vadd.f32 %v2331_v35, %v4680_v24  ;;  %v5286_v31 = vadd.f32 %v2420_v63, %v4690_v28 }
 0x3f5   : > { %v2336_v14 = vpop.f32.mrf.mxu0  ;;  %v2425_v59 = vpop.f32.mrf.mxu1 }
 0x3f6   : > { %v5289_v34 = vadd.f32 %v2333_v56, %v4672_v20  ;;  %v5292_v62 = vadd.f32 %v2422_v27, %v4682_v25  ;;  %v2337_v58 = vadd.f32 %v2336_v14, %v5276_v4  ;;  %v2426_v26 = vadd.f32 %v2425_v59, %v5276_v4 }
 0x3f7   : > { %v2338_v37 = vpop.f32.mrf.mxu0  ;;  %v2427_v40 = vpop.f32.mrf.mxu1 }
 0x3f8   : > { %v5301_v20 = vadd.f32 %v2337_v58, %v4664_v15  ;;  %v5304_v25 = vadd.f32 %v2426_v26, %v4674_v21  ;;  %v2339_v19 = vadd.f32 %v2338_v37, %v5276_v4  ;;  %v2428_v42 = vadd.f32 %v2427_v40, %v5276_v4  ;;  %v6383_v58 = vld [vmem:[#allocation25_spill] sm:$0xff] }
 0x3fa   : > { %v5313_v3 = vadd.f32 %v2339_v19, %v4657_v10  ;;  %v5316_v60 = vadd.f32 %v2428_v42, %v4666_v16 }
 0x3fb   : > { %v2342_v15 = vpop.f32.mrf.mxu0  ;;  %v2431_v8 = vpop.f32.mrf.mxu1 }
 0x3fc   : > { %v2343_v21 = vadd.f32 %v2342_v15, %v5308_v57  ;;  %v2432_v22 = vadd.f32 %v2431_v8, %v5308_v57 }
 0x3fd   : > { %v2344_v54 = vpop.f32.mrf.mxu0  ;;  %v2433_v35 = vpop.f32.mrf.mxu1 }
 0x3fe   : > { %v5323_v63 = vadd.f32 %v2343_v21, %v4651_v5  ;;  %v5326_v10 = vadd.f32 %v2432_v22, %v4659_v11  ;;  %v2345_v16 = vadd.f32 %v2344_v54, %v5308_v57  ;;  %v2434_v18 = vadd.f32 %v2433_v35, %v5308_v57 }
 0x400   : > { %6379 = vst [vmem:[#allocation58_spill] sm:$0xff] %v5323_v63  ;;  %6380 = vst [vmem:[#allocation59_spill] sm:$0xff] %v5326_v10  ;;  %v5333_v27 = vadd.f32 %v2345_v16, %v4649_v1  ;;  %v5336_v14 = vadd.f32 %v2434_v18, %v4653_v6  ;;  %v6426_v63 = vld [vmem:[#allocation43_spill] sm:$0xff] }
 0x401   : > { %v2502_v59 = vpop.f32.mrf.mxu0  ;;  %v2591_v5 = vpop.f32.mrf.mxu1 }
 0x402   : > { %6381 = vst [vmem:[#allocation60_spill] sm:$0xff] %v5333_v27  ;;  %6382 = vst [vmem:[#allocation61_spill] sm:$0xff] %v5336_v14  ;;  %v2503_v26 = vadd.f32 %v2502_v59, %v5252_v7  ;;  %v2592_v37 = vadd.f32 %v2591_v5, %v5252_v7  ;;  %v6400_v5 = vld [vmem:[#allocation32_spill] sm:$0xff]  ;;  %v6423_v27 = vld [vmem:[#allocation45_spill] sm:$0xff] }
 0x403   : > { %v2504_v40 = vpop.f32.mrf.mxu0  ;;  %v2593_v19 = vpop.f32.mrf.mxu1 }
 0x404   : > { %v5343_v42 = vadd.f32 %v2503_v26, %v4817_v29  ;;  %v5346_v1 = vadd.f32 %v2592_v37, %v4822_v48  ;;  %v2505_v6 = vadd.f32 %v2504_v40, %v5252_v7  ;;  %v2594_v15 = vadd.f32 %v2593_v19, %v5252_v7  ;;  %v6399_v26 = vld [vmem:[#allocation35_spill] sm:$0xff] }
 0x405   : > { %v2508_v8 = vpop.f32.mrf.mxu0  ;;  %v2597_v21 = vpop.f32.mrf.mxu1 }
 0x406   : > { %v5353_v35 = vadd.f32 %v2505_v6, %v4809_v36  ;;  %v5356_v16 = vadd.f32 %v2594_v15, %v4812_v46  ;;  %v2509_v29 = vadd.f32 %v2508_v8, %v5264_v32  ;;  %v2598_v48 = vadd.f32 %v2597_v21, %v5264_v32 }
 0x407   : > { %v2510_v18 = vpop.f32.mrf.mxu0  ;;  %v2599_v59 = vpop.f32.mrf.mxu1 }
 0x408   : > { %v2511_v37 = vadd.f32 %v2510_v18, %v5264_v32  ;;  %v2600_v40 = vadd.f32 %v2599_v59, %v5264_v32  ;;  %v5365_v36 = vadd.f32 %v2509_v29, %v4797_v44  ;;  %v5368_v46 = vadd.f32 %v2598_v48, %v4800_v45  ;;  %v6392_v44 = vld [vmem:[#allocation40_spill] sm:$0xff]  ;;  %v6394_v59 = vld [vmem:[#allocation38_spill] sm:$0xff] }
 0x409   : > { %v2514_v19 = vpop.f32.mrf.mxu0  ;;  %v2603_v6 = vpop.f32.mrf.mxu1 }
 0x40a   : > { %v5371_v15 = vadd.f32 %v2511_v37, %v4787_v38  ;;  %v5374_v8 = vadd.f32 %v2600_v40, %v4790_v41  ;;  %v2515_v21 = vadd.f32 %v2514_v19, %v5276_v4  ;;  %v2604_v18 = vadd.f32 %v2603_v6, %v5276_v4 }
 0x40b   : > { %v2516_v29 = vpop.f32.mrf.mxu0  ;;  %v2605_v11 = vpop.f32.mrf.mxu1 }
 0x40c   : > { %v5383_v38 = vadd.f32 %v2515_v21, %v4769_v9  ;;  %v5386_v41 = vadd.f32 %v2604_v18, %v4771_v13  ;;  %v2517_v37 = vadd.f32 %v2516_v29, %v5276_v4  ;;  %v2606_v40 = vadd.f32 %v2605_v11, %v5276_v4  ;;  %v6390_v11 = vld [vmem:[#allocation22_spill] sm:$0xff] }
 0x40e   : > { %v5393_v56 = vadd.f32 %v2517_v37, %v4756_v61  ;;  %v5396_v23 = vadd.f32 %v2606_v40, %v6383_v58  ;;  %v6386_v61 = vld [vmem:[#allocation24_spill] sm:$0xff] }
 0x40f   : > { %v2520_v0 = vpop.f32.mrf.mxu0  ;;  %v2609_v9 = vpop.f32.mrf.mxu1 }
 0x410   : > { %v2521_v21 = vadd.f32 %v2520_v0, %v5308_v57  ;;  %v2610_v13 = vadd.f32 %v2609_v9, %v5308_v57 }
 0x411   : > { %v2522_v29 = vpop.f32.mrf.mxu0  ;;  %v2611_v19 = vpop.f32.mrf.mxu1 }
 0x412   : > { %v5403_v6 = vadd.f32 %v2521_v21, %v6384_v33  ;;  %v5406_v37 = vadd.f32 %v2610_v13, %v6386_v61  ;;  %v2523_v58 = vadd.f32 %v2522_v29, %v5308_v57  ;;  %v2612_v40 = vadd.f32 %v2611_v19, %v5308_v57  ;;  %v6398_v13 = vld [vmem:[#allocation34_spill] sm:$0xff] }
 0x414   : > { %6385 = vst [vmem:[#allocation25_spill] sm:$0xff] %v5403_v6  ;;  %6387 = vst [vmem:[#allocation23_spill] sm:$0xff] %v5406_v37  ;;  %v5413_v18 = vadd.f32 %v2523_v58, %v6388_v51  ;;  %v5416_v12 = vadd.f32 %v2612_v40, %v6390_v11  ;;  %v6393_v51 = vld [vmem:[#allocation41_spill] sm:$0xff]  ;;  %v6420_v6 = vld [vmem:[#allocation52_spill] sm:$0xff] }
 0x415   : > { %v2680_v48 = vpop.f32.mrf.mxu0  ;;  %v2769_v33 = vpop.f32.mrf.mxu1 }
 0x416   : > { %6389 = vst [vmem:[#allocation24_spill] sm:$0xff] %v5413_v18  ;;  %6391 = vst [vmem:[#allocation21_spill] sm:$0xff] %v5416_v12  ;;  %v2681_v29 = vadd.f32 %v2680_v48, %v5252_v7  ;;  %v2770_v19 = vadd.f32 %v2769_v33, %v5252_v7  ;;  %v6396_v48 = vld [vmem:[#allocation36_spill] sm:$0xff]  ;;  %v6419_v18 = vld [vmem:[#allocation49_spill] sm:$0xff] }
 0x417   : > { %v2682_v61 = vpop.f32.mrf.mxu0  ;;  %v2771_v0 = vpop.f32.mrf.mxu1 }
 0x418   : > { %v5423_v9 = vadd.f32 %v2681_v29, %v6392_v44  ;;  %v5426_v58 = vadd.f32 %v2770_v19, %v6393_v51  ;;  %v2683_v11 = vadd.f32 %v2682_v61, %v5252_v7  ;;  %v2772_v40 = vadd.f32 %v2771_v0, %v5252_v7 }
 0x419   : > { %v2686_v45 = vpop.f32.mrf.mxu0  ;;  %v2775_v21 = vpop.f32.mrf.mxu1 }
 0x41a   : > { %v5433_v33 = vadd.f32 %v2683_v11, %v6394_v59  ;;  %v5436_v24 = vadd.f32 %v2772_v40, %v6395_v52  ;;  %v2687_v44 = vadd.f32 %v2686_v45, %v5264_v32  ;;  %v2776_v29 = vadd.f32 %v2775_v21, %v5264_v32  ;;  %v6397_v11 = vld [vmem:[#allocation37_spill] sm:$0xff] }
 0x41b   : > { %v2688_v19 = vpop.f32.mrf.mxu0  ;;  %v2777_v61 = vpop.f32.mrf.mxu1 }
 0x41c   : > { %v2689_v28 = vadd.f32 %v2688_v19, %v5264_v32  ;;  %v2778_v17 = vadd.f32 %v2777_v61, %v5264_v32  ;;  %v5445_v59 = vadd.f32 %v2687_v44, %v6396_v48  ;;  %v5448_v52 = vadd.f32 %v2776_v29, %v6397_v11 }
 0x41d   : > { %v2692_v40 = vpop.f32.mrf.mxu0  ;;  %v2781_v45 = vpop.f32.mrf.mxu1 }
 0x41e   : > { %v5451_v21 = vadd.f32 %v2689_v28, %v6398_v13  ;;  %v5454_v54 = vadd.f32 %v2778_v17, %v6399_v26  ;;  %v2693_v51 = vadd.f32 %v2692_v40, %v5276_v4  ;;  %v2782_v19 = vadd.f32 %v2781_v45, %v5276_v4  ;;  %v6401_v13 = vld [vmem:[#allocation33_spill] sm:$0xff] }
 0x41f   : > { %v2694_v44 = vpop.f32.mrf.mxu0  ;;  %v2783_v0 = vpop.f32.mrf.mxu1 }
 0x420   : > { %v5463_v28 = vadd.f32 %v2693_v51, %v6400_v5  ;;  %v5466_v17 = vadd.f32 %v2782_v19, %v6401_v13  ;;  %v2695_v26 = vadd.f32 %v2694_v44, %v5276_v4  ;;  %v2784_v40 = vadd.f32 %v2783_v0, %v5276_v4  ;;  %v6403_v51 = vld [vmem:[#allocation31_spill] sm:$0xff] }
 0x421   : > { %v2698_v45 = vpop.f32.mrf.mxu0  ;;  %v2787_v61 = vpop.f32.mrf.mxu1 }
 0x422   : > { %v2699_v29 = vadd.f32 %v2698_v45, %v5308_v57  ;;  %v2788_v11 = vadd.f32 %v2787_v61, %v5308_v57  ;;  %v5475_v5 = vadd.f32 %v2695_v26, %v6402_v43  ;;  %v5478_v19 = vadd.f32 %v2784_v40, %v6403_v51  ;;  %v6409_v51 = vld [vmem:[#allocation26_spill] sm:$0xff] }
 0x423   : > { %v2700_v13 = vpop.f32.mrf.mxu0  ;;  %v2789_v44 = vpop.f32.mrf.mxu1 }
 0x424   : > { %6404 = vst [vmem:[#allocation22_spill] sm:$0xff] %v5478_v19  ;;  %v5481_v0 = vadd.f32 %v2699_v29, %v6405_v49  ;;  %v5484_v2 = vadd.f32 %v2788_v11, %v6407_v39  ;;  %v2701_v22 = vadd.f32 %v2700_v13, %v5308_v57  ;;  %v2790_v45 = vadd.f32 %v2789_v44, %v5308_v57  ;;  %v6411_v49 = vld [vmem:[#allocation27_spill] sm:$0xff] }
 0x425   : > { %v6417_v44 = vld [vmem:[#allocation51_spill] sm:$0xff] }
 0x426   : > { %6406 = vst [vmem:[#allocation40_spill] sm:$0xff] %v5481_v0  ;;  %6408 = vst [vmem:[#allocation41_spill] sm:$0xff] %v5484_v2  ;;  %v5493_v48 = vadd.f32 %v2701_v22, %v6409_v51  ;;  %v5496_v29 = vadd.f32 %v2790_v45, %v6411_v49  ;;  %v6413_v0 = vld [vmem:[#allocation55_spill] sm:$0xff]  ;;  %v6414_v22 = vld [vmem:[#allocation57_spill] sm:$0xff] }
 0x427   : > { %v2858_v39 = vpop.f32.mrf.mxu0  ;;  %v2947_v11 = vpop.f32.mrf.mxu1 }
 0x428   : > { %6410 = vst [vmem:[#allocation38_spill] sm:$0xff] %v5493_v48  ;;  %6412 = vst [vmem:[#allocation39_spill] sm:$0xff] %v5496_v29  ;;  %v2859_v61 = vadd.f32 %v2858_v39, %v5252_v7  ;;  %v2948_v43 = vadd.f32 %v2947_v11, %v5252_v7  ;;  %v6415_v29 = vld [vmem:[#allocation53_spill] sm:$0xff]  ;;  %v6416_v48 = vld [vmem:[#allocation56_spill] sm:$0xff] }
 0x429   : > { %v2860_v12 = vpop.f32.mrf.mxu0  ;;  %v2949_v26 = vpop.f32.mrf.mxu1 }
 0x42a   : > { %v5503_v40 = vadd.f32 %v2859_v61, %v6413_v0  ;;  %v5506_v51 = vadd.f32 %v2948_v43, %v6414_v22  ;;  %v2861_v45 = vadd.f32 %v2860_v12, %v5252_v7  ;;  %v2950_v49 = vadd.f32 %v2949_v26, %v5252_v7  ;;  %v6421_v7 = vld [vmem:[#allocation47_spill] sm:$0xff] }
 0x42b   : > { %v2864_v2 = vpop.f32.mrf.mxu0  ;;  %v2953_v13 = vpop.f32.mrf.mxu1 }
 0x42c   : > { %v5513_v11 = vadd.f32 %v2861_v45, %v6415_v29  ;;  %v5516_v37 = vadd.f32 %v2950_v49, %v6416_v48  ;;  %v2865_v0 = vadd.f32 %v2864_v2, %v5264_v32  ;;  %v2954_v61 = vadd.f32 %v2953_v13, %v5264_v32  ;;  %v6418_v45 = vld [vmem:[#allocation54_spill] sm:$0xff] }
 0x42d   : > { %v2866_v43 = vpop.f32.mrf.mxu0  ;;  %v2955_v12 = vpop.f32.mrf.mxu1 }
 0x42e   : > { %v2867_v22 = vadd.f32 %v2866_v43, %v5264_v32  ;;  %v2956_v39 = vadd.f32 %v2955_v12, %v5264_v32  ;;  %v5525_v29 = vadd.f32 %v2865_v0, %v6417_v44  ;;  %v5528_v48 = vadd.f32 %v2954_v61, %v6418_v45 }
 0x42f   : > { %v2870_v49 = vpop.f32.mrf.mxu0  ;;  %v2959_v2 = vpop.f32.mrf.mxu1 }
 0x430   : > { %v5531_v13 = vadd.f32 %v2867_v22, %v6419_v18  ;;  %v5534_v14 = vadd.f32 %v2956_v39, %v6420_v6  ;;  %v2871_v26 = vadd.f32 %v2870_v49, %v5276_v4  ;;  %v2960_v43 = vadd.f32 %v2959_v2, %v5276_v4  ;;  %v6422_v22 = vld [vmem:[#allocation50_spill] sm:$0xff] }
 0x431   : > { %v2872_v0 = vpop.f32.mrf.mxu0  ;;  %v2961_v12 = vpop.f32.mrf.mxu1 }
 0x432   : > { %v5543_v18 = vadd.f32 %v2871_v26, %v6421_v7  ;;  %v5546_v6 = vadd.f32 %v2960_v43, %v6422_v22  ;;  %v2873_v39 = vadd.f32 %v2872_v0, %v5276_v4  ;;  %v2962_v49 = vadd.f32 %v2961_v12, %v5276_v4  ;;  %v6424_v26 = vld [vmem:[#allocation48_spill] sm:$0xff]  ;;  %v6427_v12 = vld [vmem:[#allocation46_spill] sm:$0xff] }
 0x433   : > { %v2876_v2 = vpop.f32.mrf.mxu0  ;;  %v2965_v32 = vpop.f32.mrf.mxu1 }
 0x434   : > { %v2877_v61 = vadd.f32 %v2876_v2, %v5308_v57  ;;  %v2966_v45 = vadd.f32 %v2965_v32, %v5308_v57  ;;  %v5555_v7 = vadd.f32 %v2873_v39, %v6423_v27  ;;  %v5558_v43 = vadd.f32 %v2962_v49, %v6424_v26  ;;  %v6428_v26 = vld [vmem:[#allocation42_spill] sm:$0xff] }
 0x435   : > { %v2878_v22 = vpop.f32.mrf.mxu0  ;;  %v2967_v0 = vpop.f32.mrf.mxu1 }
 0x436   : > { %6425 = vst [vmem:[#allocation36_spill] sm:$0xff] %v5558_v43  ;;  %v5561_v4 = vadd.f32 %v2877_v61, %v6426_v63  ;;  %v5564_v19 = vadd.f32 %v2966_v45, %v6427_v12  ;;  %v2879_v10 = vadd.f32 %v2878_v22, %v5308_v57  ;;  %v2968_v2 = vadd.f32 %v2967_v0, %v5308_v57  ;;  %v6429_v63 = vld [vmem:[#allocation44_spill] sm:$0xff]  ;;  %3100 = sbr.rel (%p3728_p3) target bundleno = 1116 (0x45c), region = 80 }
 0x437   : > { %v6306_v32 = vmax.f32 %v5555_v7, 0.0  ;;  %v6307_v27 = vmax.f32 %v5558_v43, 0.0 }
 0x438   : > { %v5573_v44 = vadd.f32 %v2879_v10, %v6428_v26  ;;  %v5576_v61 = vadd.f32 %v2968_v2, %v6429_v63 }
 0x43a   : > { %6430 = vst [vmem:[#allocation37_spill] sm:$0xff] %v5576_v61 }
 0x43b   : > { %v6432_v57 = vmax.f32 %v5257_v55, 0.0  ;;  %v6433_v10 = vmax.f32 %v5269_v53, 0.0  ;;  %v6434_v0 = vmax.f32 %v5260_v50, 0.0  ;;  %v6435_v12 = vmax.f32 %v5272_v30, 0.0  ;;  %3146 = vst [vmem:[%s4518_s30 + $0x168] sm:$0xff] %v6306_v32  ;;  %3148 = vst [vmem:[%s4518_s30 + $0x178] sm:$0xff] %v6307_v27 }
 0x43c   : > { %v6436_v2 = vmax.f32 %v5343_v42, 0.0  ;;  %v6437_v26 = vmax.f32 %v5353_v35, 0.0  ;;  %v6438_v63 = vmax.f32 %v5346_v1, 0.0  ;;  %v6485_v22 = vld [vmem:[#allocation61_spill] sm:$0xff]  ;;  %v6491_v27 = vld [vmem:[#allocation23_spill] sm:$0xff] }
 0x43d   : > { %3101 = vst [vmem:[%s4518_s30] sm:$0xff] %v6432_v57  ;;  %3102 = vst [vmem:[%s4518_s30 + $0x8] sm:$0xff] %v6433_v10  ;;  %v6439_v57 = vmax.f32 %v5356_v16, 0.0  ;;  %v6440_v10 = vmax.f32 %v5423_v9, 0.0  ;;  %v6486_v32 = vmax.f32 %v6485_v22, 0.0  ;;  %v6487_v49 = vld [vmem:[#allocation25_spill] sm:$0xff]  ;;  %v6492_v43 = vmax.f32 %v6491_v27, 0.0 }
 0x43e   : > { %3103 = vst [vmem:[%s4518_s30 + $0x10] sm:$0xff] %v6434_v0  ;;  %3104 = vst [vmem:[%s4518_s30 + $0x18] sm:$0xff] %v6435_v12  ;;  %v6441_v0 = vmax.f32 %v5433_v33, 0.0  ;;  %v6442_v12 = vmax.f32 %v5426_v58, 0.0  ;;  %v6488_v45 = vmax.f32 %v6487_v49, 0.0  ;;  %v6499_v22 = vld [vmem:[#allocation41_spill] sm:$0xff] }
 0x43f   : > { %3105 = vst [vmem:[%s4518_s30 + $0x20] sm:$0xff] %v6436_v2  ;;  %3106 = vst [vmem:[%s4518_s30 + $0x28] sm:$0xff] %v6437_v26  ;;  %v6443_v2 = vmax.f32 %v5436_v24, 0.0  ;;  %v6444_v26 = vmax.f32 %v5503_v40, 0.0  ;;  %v6501_v49 = vld [vmem:[#allocation39_spill] sm:$0xff]  ;;  %v6505_v27 = vmax.f32 %v5564_v19, 0.0 }
 0x440   : > { %3107 = vst [vmem:[%s4518_s30 + $0x30] sm:$0xff] %v6438_v63  ;;  %3108 = vst [vmem:[%s4518_s30 + $0x38] sm:$0xff] %v6439_v57  ;;  %v6445_v63 = vmax.f32 %v5513_v11, 0.0  ;;  %v6446_v57 = vmax.f32 %v5506_v51, 0.0 }
 0x441   : > { %3109 = vst [vmem:[%s4518_s30 + $0x40] sm:$0xff] %v6440_v10  ;;  %3110 = vst [vmem:[%s4518_s30 + $0x48] sm:$0xff] %v6441_v0  ;;  %v6447_v10 = vmax.f32 %v5516_v37, 0.0  ;;  %v6448_v0 = vmax.f32 %v5283_v47, 0.0 }
 0x442   : > { %3111 = vst [vmem:[%s4518_s30 + $0x50] sm:$0xff] %v6442_v12  ;;  %3112 = vst [vmem:[%s4518_s30 + $0x58] sm:$0xff] %v6443_v2  ;;  %v6449_v12 = vmax.f32 %v5289_v34, 0.0  ;;  %v6450_v2 = vmax.f32 %v5286_v31, 0.0 }
 0x443   : > { %3113 = vst [vmem:[%s4518_s30 + $0x60] sm:$0xff] %v6444_v26  ;;  %3114 = vst [vmem:[%s4518_s30 + $0x68] sm:$0xff] %v6445_v63  ;;  %v6451_v26 = vmax.f32 %v5292_v62, 0.0  ;;  %v6452_v63 = vmax.f32 %v5365_v36, 0.0 }
 0x444   : > { %3115 = vst [vmem:[%s4518_s30 + $0x70] sm:$0xff] %v6446_v57  ;;  %3116 = vst [vmem:[%s4518_s30 + $0x78] sm:$0xff] %v6447_v10  ;;  %v6453_v57 = vmax.f32 %v5371_v15, 0.0  ;;  %v6454_v10 = vmax.f32 %v5368_v46, 0.0 }
 0x445   : > { %3117 = vst [vmem:[%s4518_s30 + $0x80] sm:$0xff] %v6448_v0  ;;  %3118 = vst [vmem:[%s4518_s30 + $0x88] sm:$0xff] %v6449_v12  ;;  %v6455_v0 = vmax.f32 %v5374_v8, 0.0  ;;  %v6456_v12 = vmax.f32 %v5445_v59, 0.0 }
 0x446   : > { %3119 = vst [vmem:[%s4518_s30 + $0x90] sm:$0xff] %v6450_v2  ;;  %3120 = vst [vmem:[%s4518_s30 + $0x98] sm:$0xff] %v6451_v26  ;;  %v6457_v2 = vmax.f32 %v5451_v21, 0.0  ;;  %v6458_v26 = vmax.f32 %v5448_v52, 0.0 }
 0x447   : > { %3121 = vst [vmem:[%s4518_s30 + $0xa0] sm:$0xff] %v6452_v63  ;;  %3122 = vst [vmem:[%s4518_s30 + $0xa8] sm:$0xff] %v6453_v57  ;;  %v6459_v63 = vmax.f32 %v5454_v54, 0.0  ;;  %v6460_v57 = vmax.f32 %v5525_v29, 0.0 }
 0x448   : > { %3123 = vst [vmem:[%s4518_s30 + $0xb0] sm:$0xff] %v6454_v10  ;;  %3124 = vst [vmem:[%s4518_s30 + $0xb8] sm:$0xff] %v6455_v0  ;;  %v6461_v10 = vmax.f32 %v5531_v13, 0.0  ;;  %v6462_v0 = vmax.f32 %v5528_v48, 0.0 }
 0x449   : > { %3125 = vst [vmem:[%s4518_s30 + $0xc0] sm:$0xff] %v6456_v12  ;;  %3126 = vst [vmem:[%s4518_s30 + $0xc8] sm:$0xff] %v6457_v2  ;;  %v6463_v12 = vmax.f32 %v5534_v14, 0.0  ;;  %v6464_v2 = vmax.f32 %v5301_v20, 0.0 }
 0x44a   : > { %3127 = vst [vmem:[%s4518_s30 + $0xd0] sm:$0xff] %v6458_v26  ;;  %3128 = vst [vmem:[%s4518_s30 + $0xd8] sm:$0xff] %v6459_v63  ;;  %v6465_v26 = vmax.f32 %v5313_v3, 0.0  ;;  %v6466_v63 = vmax.f32 %v5304_v25, 0.0 }
 0x44b   : > { %3129 = vst [vmem:[%s4518_s30 + $0xe0] sm:$0xff] %v6460_v57  ;;  %3130 = vst [vmem:[%s4518_s30 + $0xe8] sm:$0xff] %v6461_v10  ;;  %v6467_v57 = vmax.f32 %v5316_v60, 0.0  ;;  %v6468_v10 = vmax.f32 %v5383_v38, 0.0 }
 0x44c   : > { %3131 = vst [vmem:[%s4518_s30 + $0xf0] sm:$0xff] %v6462_v0  ;;  %3132 = vst [vmem:[%s4518_s30 + $0xf8] sm:$0xff] %v6463_v12  ;;  %v6469_v0 = vmax.f32 %v5393_v56, 0.0  ;;  %v6470_v12 = vmax.f32 %v5386_v41, 0.0 }
 0x44d   : > { %3133 = vst [vmem:[%s4518_s30 + $0x100] sm:$0xff] %v6464_v2  ;;  %3134 = vst [vmem:[%s4518_s30 + $0x108] sm:$0xff] %v6465_v26  ;;  %v6471_v2 = vmax.f32 %v5396_v23, 0.0  ;;  %v6472_v26 = vmax.f32 %v5463_v28, 0.0 }
 0x44e   : > { %3135 = vst [vmem:[%s4518_s30 + $0x110] sm:$0xff] %v6466_v63  ;;  %3136 = vst [vmem:[%s4518_s30 + $0x118] sm:$0xff] %v6467_v57  ;;  %v6473_v63 = vmax.f32 %v5475_v5, 0.0  ;;  %v6474_v57 = vmax.f32 %v5466_v17, 0.0 }
 0x44f   : > { %3137 = vst [vmem:[%s4518_s30 + $0x120] sm:$0xff] %v6468_v10  ;;  %3138 = vst [vmem:[%s4518_s30 + $0x128] sm:$0xff] %v6469_v0  ;;  %v6475_v10 = vld [vmem:[#allocation22_spill] sm:$0xff] }
 0x450   : > { %3139 = vst [vmem:[%s4518_s30 + $0x130] sm:$0xff] %v6470_v12  ;;  %3140 = vst [vmem:[%s4518_s30 + $0x138] sm:$0xff] %v6471_v2  ;;  %v6476_v0 = vmax.f32 %v6475_v10, 0.0  ;;  %v6477_v12 = vmax.f32 %v5543_v18, 0.0  ;;  %v6478_v2 = vmax.f32 %v5546_v6, 0.0 }
 0x451   : > { %3141 = vst [vmem:[%s4518_s30 + $0x140] sm:$0xff] %v6472_v26  ;;  %3142 = vst [vmem:[%s4518_s30 + $0x148] sm:$0xff] %v6473_v63  ;;  %v6479_v26 = vld [vmem:[#allocation58_spill] sm:$0xff] }
 0x452   : > { %3143 = vst [vmem:[%s4518_s30 + $0x150] sm:$0xff] %v6474_v57  ;;  %3144 = vst [vmem:[%s4518_s30 + $0x158] sm:$0xff] %v6476_v0  ;;  %v6480_v63 = vmax.f32 %v6479_v26, 0.0  ;;  %v6481_v57 = vld [vmem:[#allocation60_spill] sm:$0xff]  ;;  %v6483_v0 = vld [vmem:[#allocation59_spill] sm:$0xff] }
 0x453   : > { %3145 = vst [vmem:[%s4518_s30 + $0x160] sm:$0xff] %v6477_v12  ;;  %3147 = vst [vmem:[%s4518_s30 + $0x170] sm:$0xff] %v6478_v2  ;;  %v6482_v10 = vmax.f32 %v6481_v57, 0.0  ;;  %v6484_v12 = vmax.f32 %v6483_v0, 0.0  ;;  %v6489_v2 = vld [vmem:[#allocation24_spill] sm:$0xff]  ;;  %v6493_v26 = vld [vmem:[#allocation21_spill] sm:$0xff] }
 0x454   : > { %3149 = vst [vmem:[%s4518_s30 + $0x180] sm:$0xff] %v6480_v63  ;;  %3152 = vst [vmem:[%s4518_s30 + $0x198] sm:$0xff] %v6486_v32  ;;  %v6490_v39 = vmax.f32 %v6489_v2, 0.0  ;;  %v6494_v63 = vmax.f32 %v6493_v26, 0.0  ;;  %v6495_v57 = vld [vmem:[#allocation40_spill] sm:$0xff]  ;;  %v6497_v0 = vld [vmem:[#allocation38_spill] sm:$0xff] }
 0x455   : > { %3150 = vst [vmem:[%s4518_s30 + $0x188] sm:$0xff] %v6482_v10  ;;  %3151 = vst [vmem:[%s4518_s30 + $0x190] sm:$0xff] %v6484_v12  ;;  %v6496_v10 = vmax.f32 %v6495_v57, 0.0  ;;  %v6498_v12 = vmax.f32 %v6497_v0, 0.0  ;;  %v6500_v32 = vmax.f32 %v6499_v22, 0.0  ;;  %v6506_v2 = vmax.f32 %v5576_v61, 0.0 }
 0x456   : > { %3153 = vst [vmem:[%s4518_s30 + $0x1a0] sm:$0xff] %v6488_v45  ;;  %3154 = vst [vmem:[%s4518_s30 + $0x1a8] sm:$0xff] %v6490_v39  ;;  %v6502_v45 = vmax.f32 %v6501_v49, 0.0  ;;  %v6503_v39 = vmax.f32 %v5561_v4, 0.0 }
 0x457   : > { %3155 = vst [vmem:[%s4518_s30 + $0x1b0] sm:$0xff] %v6492_v43  ;;  %3156 = vst [vmem:[%s4518_s30 + $0x1b8] sm:$0xff] %v6494_v63  ;;  %v6504_v43 = vmax.f32 %v5573_v44, 0.0 }
 0x458   : > { %3157 = vst [vmem:[%s4518_s30 + $0x1c0] sm:$0xff] %v6496_v10  ;;  %3158 = vst [vmem:[%s4518_s30 + $0x1c8] sm:$0xff] %v6498_v12 }
 0x459   : > { %3159 = vst [vmem:[%s4518_s30 + $0x1d0] sm:$0xff] %v6500_v32  ;;  %3160 = vst [vmem:[%s4518_s30 + $0x1d8] sm:$0xff] %v6502_v45 }
 0x45a   : > { %3161 = vst [vmem:[%s4518_s30 + $0x1e0] sm:$0xff] %v6503_v39  ;;  %3162 = vst [vmem:[%s4518_s30 + $0x1e8] sm:$0xff] %v6504_v43 }
 0x45b   : > { %3163 = vst [vmem:[%s4518_s30 + $0x1f0] sm:$0xff] %v6505_v27  ;;  %3164 = vst [vmem:[%s4518_s30 + $0x1f8] sm:$0xff] %v6506_v2 }
 0x45c PF: > { %s6507_s12 = sld [smem:[#allocation17_spill]] }
 0x462   : > { %p3852_p1 = scmp.le.s32.totalorder %s6507_s12, 0 }
 0x464   : > { %3168 = sbr.rel (%p3852_p1) target bundleno = 1170 (0x492), region = 84 }
 0x469   : > { %v3169_v26 = vld [vmem:[%s4518_s30] sm:$0xff]  ;;  %v3170_v63 = vld [vmem:[%s4518_s30 + $0x8] sm:$0xff]  ;;  %v3171_v57 = vld [vmem:[%s4518_s30 + $0x10] sm:$0xff]  ;;  %v6508_v10 = vmax.f32 %v5257_v55, 0.0  ;;  %v6509_v12 = vmax.f32 %v5269_v53, 0.0  ;;  %v6510_v32 = vmax.f32 %v5260_v50, 0.0 }
 0x46a   : > { %v3172_v45 = vld [vmem:[%s4518_s30 + $0x18] sm:$0xff]  ;;  %v3173_v39 = vld [vmem:[%s4518_s30 + $0x20] sm:$0xff]  ;;  %v3174_v43 = vld [vmem:[%s4518_s30 + $0x28] sm:$0xff]  ;;  %v6511_v27 = vmax.f32 %v5272_v30, 0.0  ;;  %v6512_v61 = vmax.f32 %v5343_v42, 0.0  ;;  %v6513_v53 = vmax.f32 %v5353_v35, 0.0 }
 0x46b   : > { %v3233_v0 = vadd.f32 %v3169_v26, %v6508_v10  ;;  %v3234_v22 = vadd.f32 %v3170_v63, %v6509_v12  ;;  %v3235_v49 = vadd.f32 %v3171_v57, %v6510_v32  ;;  %v3175_v50 = vld [vmem:[%s4518_s30 + $0x30] sm:$0xff]  ;;  %v3176_v63 = vld [vmem:[%s4518_s30 + $0x38] sm:$0xff]  ;;  %v3177_v57 = vld [vmem:[%s4518_s30 + $0x40] sm:$0xff]  ;;  %v6514_v30 = vmax.f32 %v5346_v1, 0.0 }
 0x46c   : > { %v3236_v2 = vadd.f32 %v3172_v45, %v6511_v27  ;;  %v3237_v55 = vadd.f32 %v3173_v39, %v6512_v61  ;;  %v3238_v26 = vadd.f32 %v3174_v43, %v6513_v53  ;;  %v6515_v42 = vmax.f32 %v5356_v16, 0.0  ;;  %v3178_v32 = vld [vmem:[%s4518_s30 + $0x48] sm:$0xff]  ;;  %v3179_v45 = vld [vmem:[%s4518_s30 + $0x50] sm:$0xff]  ;;  %v3180_v39 = vld [vmem:[%s4518_s30 + $0x58] sm:$0xff] }
 0x46d   : > { %3297 = vst [vmem:[%s4518_s30] sm:$0xff] %v3233_v0  ;;  %3298 = vst [vmem:[%s4518_s30 + $0x8] sm:$0xff] %v3234_v22  ;;  %v3239_v10 = vadd.f32 %v3175_v50, %v6514_v30  ;;  %v6516_v35 = vmax.f32 %v5423_v9, 0.0  ;;  %v6517_v1 = vmax.f32 %v5433_v33, 0.0  ;;  %v6518_v16 = vmax.f32 %v5426_v58, 0.0  ;;  %v3181_v43 = vld [vmem:[%s4518_s30 + $0x60] sm:$0xff]  ;;  %v3182_v27 = vld [vmem:[%s4518_s30 + $0x68] sm:$0xff] }
 0x46e   : > { %3299 = vst [vmem:[%s4518_s30 + $0x10] sm:$0xff] %v3235_v49  ;;  %v3240_v61 = vadd.f32 %v3176_v63, %v6515_v42  ;;  %3300 = vst [vmem:[%s4518_s30 + $0x18] sm:$0xff] %v3236_v2  ;;  %v6519_v9 = vmax.f32 %v5436_v24, 0.0  ;;  %v3183_v53 = vld [vmem:[%s4518_s30 + $0x70] sm:$0xff]  ;;  %v6520_v33 = vmax.f32 %v5503_v40, 0.0  ;;  %v6521_v58 = vmax.f32 %v5513_v11, 0.0 }
 0x46f   : > { %v3241_v12 = vadd.f32 %v3177_v57, %v6516_v35  ;;  %3301 = vst [vmem:[%s4518_s30 + $0x20] sm:$0xff] %v3237_v55  ;;  %3302 = vst [vmem:[%s4518_s30 + $0x28] sm:$0xff] %v3238_v26  ;;  %v3242_v0 = vadd.f32 %v3178_v32, %v6517_v1  ;;  %v3243_v22 = vadd.f32 %v3179_v45, %v6518_v16  ;;  %v6522_v24 = vmax.f32 %v5506_v51, 0.0  ;;  %v3184_v50 = vld [vmem:[%s4518_s30 + $0x78] sm:$0xff]  ;;  %v3185_v63 = vld [vmem:[%s4518_s30 + $0x80] sm:$0xff] }
 0x470   : > { %v3244_v49 = vadd.f32 %v3180_v39, %v6519_v9  ;;  %3303 = vst [vmem:[%s4518_s30 + $0x30] sm:$0xff] %v3239_v10  ;;  %3304 = vst [vmem:[%s4518_s30 + $0x38] sm:$0xff] %v3240_v61  ;;  %v3245_v2 = vadd.f32 %v3181_v43, %v6520_v33  ;;  %v3246_v55 = vadd.f32 %v3182_v27, %v6521_v58  ;;  %v3186_v57 = vld [vmem:[%s4518_s30 + $0x88] sm:$0xff]  ;;  %v6523_v40 = vmax.f32 %v5516_v37, 0.0  ;;  %v3187_v61 = vld [vmem:[%s4518_s30 + $0x90] sm:$0xff] }
 0x471   : > { %3305 = vst [vmem:[%s4518_s30 + $0x40] sm:$0xff] %v3241_v12  ;;  %v3247_v26 = vadd.f32 %v3183_v53, %v6522_v24  ;;  %3306 = vst [vmem:[%s4518_s30 + $0x48] sm:$0xff] %v3242_v0  ;;  %v6524_v11 = vmax.f32 %v5283_v47, 0.0  ;;  %v6525_v51 = vmax.f32 %v5289_v34, 0.0  ;;  %v3188_v35 = vld [vmem:[%s4518_s30 + $0x98] sm:$0xff]  ;;  %v3189_v12 = vld [vmem:[%s4518_s30 + $0xa0] sm:$0xff] }
 0x472   : > { %3307 = vst [vmem:[%s4518_s30 + $0x50] sm:$0xff] %v3243_v22  ;;  %3308 = vst [vmem:[%s4518_s30 + $0x58] sm:$0xff] %v3244_v49  ;;  %v3248_v30 = vadd.f32 %v3184_v50, %v6523_v40  ;;  %v6526_v37 = vmax.f32 %v5286_v31, 0.0  ;;  %v6527_v47 = vmax.f32 %v5292_v62, 0.0  ;;  %v6528_v34 = vmax.f32 %v5365_v36, 0.0  ;;  %v3190_v1 = vld [vmem:[%s4518_s30 + $0xa8] sm:$0xff] }
 0x473   : > { %v3249_v10 = vadd.f32 %v3185_v63, %v6524_v11  ;;  %v3250_v42 = vadd.f32 %v3186_v57, %v6525_v51  ;;  %3309 = vst [vmem:[%s4518_s30 + $0x60] sm:$0xff] %v3245_v2  ;;  %3310 = vst [vmem:[%s4518_s30 + $0x68] sm:$0xff] %v3246_v55  ;;  %v3191_v0 = vld [vmem:[%s4518_s30 + $0xb0] sm:$0xff]  ;;  %v3192_v16 = vld [vmem:[%s4518_s30 + $0xb8] sm:$0xff]  ;;  %v6529_v31 = vmax.f32 %v5371_v15, 0.0  ;;  %v6530_v62 = vmax.f32 %v5368_v46, 0.0 }
 0x474   : > { %3311 = vst [vmem:[%s4518_s30 + $0x70] sm:$0xff] %v3247_v26  ;;  %v3251_v32 = vadd.f32 %v3187_v61, %v6526_v37  ;;  %v3252_v45 = vadd.f32 %v3188_v35, %v6527_v47  ;;  %v3253_v39 = vadd.f32 %v3189_v12, %v6528_v34  ;;  %3312 = vst [vmem:[%s4518_s30 + $0x78] sm:$0xff] %v3248_v30  ;;  %v6531_v36 = vmax.f32 %v5374_v8, 0.0  ;;  %v3193_v43 = vld [vmem:[%s4518_s30 + $0xc0] sm:$0xff]  ;;  %v3194_v27 = vld [vmem:[%s4518_s30 + $0xc8] sm:$0xff] }
 0x475   : > { %3313 = vst [vmem:[%s4518_s30 + $0x80] sm:$0xff] %v3249_v10  ;;  %3314 = vst [vmem:[%s4518_s30 + $0x88] sm:$0xff] %v3250_v42  ;;  %v3254_v22 = vadd.f32 %v3190_v1, %v6529_v31  ;;  %v3255_v9 = vadd.f32 %v3191_v0, %v6530_v62  ;;  %v3195_v53 = vld [vmem:[%s4518_s30 + $0xd0] sm:$0xff]  ;;  %v6532_v15 = vmax.f32 %v5445_v59, 0.0  ;;  %v6533_v46 = vmax.f32 %v5451_v21, 0.0  ;;  %v3196_v55 = vld [vmem:[%s4518_s30 + $0xd8] sm:$0xff] }
 0x476   : > { %v3256_v49 = vadd.f32 %v3192_v16, %v6531_v36  ;;  %3315 = vst [vmem:[%s4518_s30 + $0x90] sm:$0xff] %v3251_v32  ;;  %3316 = vst [vmem:[%s4518_s30 + $0x98] sm:$0xff] %v3252_v45  ;;  %v6534_v8 = vmax.f32 %v5448_v52, 0.0  ;;  %v3197_v24 = vld [vmem:[%s4518_s30 + $0xe0] sm:$0xff]  ;;  %v3198_v26 = vld [vmem:[%s4518_s30 + $0xe8] sm:$0xff]  ;;  %v6535_v59 = vmax.f32 %v5454_v54, 0.0 }
 0x477   : > { %3317 = vst [vmem:[%s4518_s30 + $0xa0] sm:$0xff] %v3253_v39  ;;  %v3257_v33 = vadd.f32 %v3193_v43, %v6532_v15  ;;  %v3258_v2 = vadd.f32 %v3194_v27, %v6533_v46  ;;  %3318 = vst [vmem:[%s4518_s30 + $0xa8] sm:$0xff] %v3254_v22  ;;  %v6536_v21 = vmax.f32 %v5525_v29, 0.0  ;;  %v6537_v52 = vmax.f32 %v5531_v13, 0.0  ;;  %v3199_v40 = vld [vmem:[%s4518_s30 + $0xf0] sm:$0xff]  ;;  %v3200_v30 = vld [vmem:[%s4518_s30 + $0xf8] sm:$0xff] }
 0x478   : > { %v3259_v58 = vadd.f32 %v3195_v53, %v6534_v8  ;;  %3319 = vst [vmem:[%s4518_s30 + $0xb0] sm:$0xff] %v3255_v9  ;;  %3320 = vst [vmem:[%s4518_s30 + $0xb8] sm:$0xff] %v3256_v49  ;;  %v3260_v50 = vadd.f32 %v3196_v55, %v6535_v59  ;;  %v3201_v11 = vld [vmem:[%s4518_s30 + $0x100] sm:$0xff]  ;;  %v6538_v54 = vmax.f32 %v5528_v48, 0.0  ;;  %v6539_v29 = vmax.f32 %v5534_v14, 0.0  ;;  %v3202_v61 = vld [vmem:[%s4518_s30 + $0x108] sm:$0xff] }
 0x479   : > { %v3261_v63 = vadd.f32 %v3197_v24, %v6536_v21  ;;  %v3262_v57 = vadd.f32 %v3198_v26, %v6537_v52  ;;  %3321 = vst [vmem:[%s4518_s30 + $0xc0] sm:$0xff] %v3257_v33  ;;  %3322 = vst [vmem:[%s4518_s30 + $0xc8] sm:$0xff] %v3258_v2  ;;  %v6540_v13 = vmax.f32 %v5301_v20, 0.0  ;;  %v3203_v35 = vld [vmem:[%s4518_s30 + $0x110] sm:$0xff]  ;;  %v3204_v12 = vld [vmem:[%s4518_s30 + $0x118] sm:$0xff]  ;;  %v6541_v48 = vmax.f32 %v5313_v3, 0.0 }
 0x47a   : > { %3323 = vst [vmem:[%s4518_s30 + $0xd0] sm:$0xff] %v3259_v58  ;;  %v3263_v10 = vadd.f32 %v3199_v40, %v6538_v54  ;;  %v3264_v51 = vadd.f32 %v3200_v30, %v6539_v29  ;;  %3324 = vst [vmem:[%s4518_s30 + $0xd8] sm:$0xff] %v3260_v50  ;;  %v6542_v14 = vmax.f32 %v5304_v25, 0.0  ;;  %v6543_v20 = vmax.f32 %v5316_v60, 0.0  ;;  %v3205_v45 = vld [vmem:[%s4518_s30 + $0x120] sm:$0xff]  ;;  %v3206_v34 = vld [vmem:[%s4518_s30 + $0x128] sm:$0xff] }
 0x47b   : > { %v3265_v42 = vadd.f32 %v3201_v11, %v6540_v13  ;;  %3325 = vst [vmem:[%s4518_s30 + $0xe0] sm:$0xff] %v3261_v63  ;;  %3326 = vst [vmem:[%s4518_s30 + $0xe8] sm:$0xff] %v3262_v57  ;;  %v3266_v37 = vadd.f32 %v3202_v61, %v6541_v48  ;;  %v3207_v39 = vld [vmem:[%s4518_s30 + $0x130] sm:$0xff]  ;;  %v6544_v3 = vmax.f32 %v5383_v38, 0.0  ;;  %v6545_v25 = vmax.f32 %v5393_v56, 0.0  ;;  %v3208_v31 = vld [vmem:[%s4518_s30 + $0x138] sm:$0xff] }
 0x47c   : > { %v3267_v32 = vadd.f32 %v3203_v35, %v6542_v14  ;;  %v3268_v47 = vadd.f32 %v3204_v12, %v6543_v20  ;;  %3327 = vst [vmem:[%s4518_s30 + $0xf0] sm:$0xff] %v3263_v10  ;;  %3328 = vst [vmem:[%s4518_s30 + $0xf8] sm:$0xff] %v3264_v51  ;;  %v6546_v60 = vmax.f32 %v5386_v41, 0.0  ;;  %v3209_v22 = vld [vmem:[%s4518_s30 + $0x140] sm:$0xff]  ;;  %v3210_v62 = vld [vmem:[%s4518_s30 + $0x148] sm:$0xff]  ;;  %v6547_v38 = vmax.f32 %v5396_v23, 0.0 }
 0x47d   : > { %3329 = vst [vmem:[%s4518_s30 + $0x100] sm:$0xff] %v3265_v42  ;;  %v3269_v1 = vadd.f32 %v3205_v45, %v6544_v3  ;;  %v3270_v0 = vadd.f32 %v3206_v34, %v6545_v25  ;;  %3330 = vst [vmem:[%s4518_s30 + $0x108] sm:$0xff] %v3266_v37  ;;  %v6548_v56 = vmax.f32 %v5463_v28, 0.0  ;;  %v6549_v41 = vmax.f32 %v5475_v5, 0.0  ;;  %v3211_v43 = vld [vmem:[%s4518_s30 + $0x150] sm:$0xff]  ;;  %v3212_v27 = vld [vmem:[%s4518_s30 + $0x158] sm:$0xff] }
 0x47e   : > { %v3271_v16 = vadd.f32 %v3207_v39, %v6546_v60  ;;  %3331 = vst [vmem:[%s4518_s30 + $0x110] sm:$0xff] %v3267_v32  ;;  %3332 = vst [vmem:[%s4518_s30 + $0x118] sm:$0xff] %v3268_v47  ;;  %v3272_v9 = vadd.f32 %v3208_v31, %v6547_v38  ;;  %v3213_v53 = vld [vmem:[%s4518_s30 + $0x160] sm:$0xff]  ;;  %v6550_v23 = vmax.f32 %v5466_v17, 0.0  ;;  %v6551_v28 = vld [vmem:[#allocation22_spill] sm:$0xff]  ;;  %v6553_v5 = vmax.f32 %v5543_v18, 0.0 }
 0x47f   : > { %v3273_v36 = vadd.f32 %v3209_v22, %v6548_v56  ;;  %v3274_v49 = vadd.f32 %v3210_v62, %v6549_v41  ;;  %3333 = vst [vmem:[%s4518_s30 + $0x120] sm:$0xff] %v3269_v1  ;;  %3334 = vst [vmem:[%s4518_s30 + $0x128] sm:$0xff] %v3270_v0  ;;  %v6552_v33 = vmax.f32 %v6551_v28, 0.0  ;;  %v3214_v8 = vld [vmem:[%s4518_s30 + $0x168] sm:$0xff]  ;;  %v3215_v58 = vld [vmem:[%s4518_s30 + $0x170] sm:$0xff]  ;;  %v6554_v17 = vmax.f32 %v5555_v7, 0.0 }
 0x480   : > { %3335 = vst [vmem:[%s4518_s30 + $0x130] sm:$0xff] %v3271_v16  ;;  %v3275_v15 = vadd.f32 %v3211_v43, %v6550_v23  ;;  %v3277_v2 = vadd.f32 %v3213_v53, %v6553_v5  ;;  %v3216_v55 = vld [vmem:[%s4518_s30 + $0x178] sm:$0xff]  ;;  %3336 = vst [vmem:[%s4518_s30 + $0x138] sm:$0xff] %v3272_v9  ;;  %v6555_v26 = vmax.f32 %v5546_v6, 0.0  ;;  %v3217_v63 = vld [vmem:[%s4518_s30 + $0x180] sm:$0xff] }
 0x481   : > { %v3276_v46 = vadd.f32 %v3212_v27, %v6552_v33  ;;  %3337 = vst [vmem:[%s4518_s30 + $0x140] sm:$0xff] %v3273_v36  ;;  %3338 = vst [vmem:[%s4518_s30 + $0x148] sm:$0xff] %v3274_v49  ;;  %v3278_v24 = vadd.f32 %v3214_v8, %v6554_v17  ;;  %v6556_v18 = vld [vmem:[#allocation36_spill] sm:$0xff]  ;;  %v3218_v52 = vld [vmem:[%s4518_s30 + $0x188] sm:$0xff]  ;;  %v6582_v8 = vmax.f32 %v5561_v4, 0.0 }
 0x482   : > { %v3279_v59 = vadd.f32 %v3215_v58, %v6555_v26  ;;  %v6557_v50 = vmax.f32 %v6556_v18, 0.0  ;;  %v3219_v57 = vld [vmem:[%s4518_s30 + $0x190] sm:$0xff]  ;;  %3339 = vst [vmem:[%s4518_s30 + $0x150] sm:$0xff] %v3275_v15  ;;  %3341 = vst [vmem:[%s4518_s30 + $0x160] sm:$0xff] %v3277_v2  ;;  %v6558_v7 = vld [vmem:[#allocation58_spill] sm:$0xff] }
 0x483   : > { %3340 = vst [vmem:[%s4518_s30 + $0x158] sm:$0xff] %v3276_v46  ;;  %v6559_v40 = vmax.f32 %v6558_v7, 0.0  ;;  %v6560_v6 = vld [vmem:[#allocation60_spill] sm:$0xff]  ;;  %v6562_v10 = vld [vmem:[#allocation59_spill] sm:$0xff]  ;;  %v3221_v42 = vld [vmem:[%s4518_s30 + $0x1a0] sm:$0xff] }
 0x484   : > { %v3280_v21 = vadd.f32 %v3216_v55, %v6557_v50  ;;  %v6561_v11 = vmax.f32 %v6560_v6, 0.0  ;;  %v6563_v29 = vmax.f32 %v6562_v10, 0.0  ;;  %v3220_v13 = vld [vmem:[%s4518_s30 + $0x198] sm:$0xff]  ;;  %v3222_v61 = vld [vmem:[%s4518_s30 + $0x1a8] sm:$0xff]  ;;  %3342 = vst [vmem:[%s4518_s30 + $0x168] sm:$0xff] %v3278_v24  ;;  %3343 = vst [vmem:[%s4518_s30 + $0x170] sm:$0xff] %v3279_v59 }
 0x485   : > { %v3281_v30 = vadd.f32 %v3217_v63, %v6559_v40  ;;  %v6564_v35 = vld [vmem:[#allocation61_spill] sm:$0xff]  ;;  %v6568_v20 = vld [vmem:[#allocation24_spill] sm:$0xff]  ;;  %v3223_v34 = vld [vmem:[%s4518_s30 + $0x1b0] sm:$0xff]  ;;  %v6583_v55 = vmax.f32 %v5573_v44, 0.0  ;;  %v6584_v24 = vmax.f32 %v5564_v19, 0.0 }
 0x486   : > { %v3282_v54 = vadd.f32 %v3218_v52, %v6561_v11  ;;  %v3283_v51 = vadd.f32 %v3219_v57, %v6563_v29  ;;  %3344 = vst [vmem:[%s4518_s30 + $0x178] sm:$0xff] %v3280_v21  ;;  %v6565_v12 = vmax.f32 %v6564_v35, 0.0  ;;  %v6566_v37 = vld [vmem:[#allocation25_spill] sm:$0xff]  ;;  %v6569_v47 = vmax.f32 %v6568_v20, 0.0  ;;  %v3224_v39 = vld [vmem:[%s4518_s30 + $0x1b8] sm:$0xff]  ;;  %v6570_v1 = vld [vmem:[#allocation23_spill] sm:$0xff] }
 0x487   : > { %v6567_v14 = vmax.f32 %v6566_v37, 0.0  ;;  %v3225_v3 = vld [vmem:[%s4518_s30 + $0x1c0] sm:$0xff]  ;;  %3345 = vst [vmem:[%s4518_s30 + $0x180] sm:$0xff] %v3281_v30  ;;  %v6571_v25 = vmax.f32 %v6570_v1, 0.0  ;;  %v6574_v22 = vld [vmem:[#allocation40_spill] sm:$0xff]  ;;  %v3226_v9 = vld [vmem:[%s4518_s30 + $0x1c8] sm:$0xff] }
 0x488   : > { %v3284_v48 = vadd.f32 %v3220_v13, %v6565_v12  ;;  %v3286_v45 = vadd.f32 %v3222_v61, %v6569_v47  ;;  %3346 = vst [vmem:[%s4518_s30 + $0x188] sm:$0xff] %v3282_v54  ;;  %3347 = vst [vmem:[%s4518_s30 + $0x190] sm:$0xff] %v3283_v51  ;;  %v6572_v60 = vld [vmem:[#allocation21_spill] sm:$0xff]  ;;  %v6575_v62 = vmax.f32 %v6574_v22, 0.0  ;;  %v3227_v56 = vld [vmem:[%s4518_s30 + $0x1d0] sm:$0xff] }
 0x489   : > { %v3285_v32 = vadd.f32 %v3221_v42, %v6567_v14  ;;  %v3287_v0 = vadd.f32 %v3223_v34, %v6571_v25  ;;  %v6573_v16 = vmax.f32 %v6572_v60, 0.0  ;;  %v3228_v36 = vld [vmem:[%s4518_s30 + $0x1d8] sm:$0xff]  ;;  %v6576_v41 = vld [vmem:[#allocation38_spill] sm:$0xff]  ;;  %v6578_v27 = vld [vmem:[#allocation41_spill] sm:$0xff] }
 0x48a   : > { %v3289_v38 = vadd.f32 %v3225_v3, %v6575_v62  ;;  %3348 = vst [vmem:[%s4518_s30 + $0x198] sm:$0xff] %v3284_v48  ;;  %3350 = vst [vmem:[%s4518_s30 + $0x1a8] sm:$0xff] %v3286_v45  ;;  %v6577_v49 = vmax.f32 %v6576_v41, 0.0  ;;  %v6579_v53 = vmax.f32 %v6578_v27, 0.0  ;;  %v6580_v15 = vld [vmem:[#allocation39_spill] sm:$0xff]  ;;  %v3229_v46 = vld [vmem:[%s4518_s30 + $0x1e0] sm:$0xff] }
 0x48b   : > { %v3288_v31 = vadd.f32 %v3224_v39, %v6573_v16  ;;  %3349 = vst [vmem:[%s4518_s30 + $0x1a0] sm:$0xff] %v3285_v32  ;;  %v6581_v28 = vmax.f32 %v6580_v15, 0.0  ;;  %v3230_v5 = vld [vmem:[%s4518_s30 + $0x1e8] sm:$0xff]  ;;  %v3231_v2 = vld [vmem:[%s4518_s30 + $0x1f0] sm:$0xff]  ;;  %3351 = vst [vmem:[%s4518_s30 + $0x1b0] sm:$0xff] %v3287_v0  ;;  %v3293_v58 = vadd.f32 %v3229_v46, %v6582_v8 }
 0x48c   : > { %v3290_v43 = vadd.f32 %v3226_v9, %v6577_v49  ;;  %v3291_v23 = vadd.f32 %v3227_v56, %v6579_v53  ;;  %3353 = vst [vmem:[%s4518_s30 + $0x1c0] sm:$0xff] %v3289_v38  ;;  %v3294_v17 = vadd.f32 %v3230_v5, %v6583_v55  ;;  %v3295_v26 = vadd.f32 %v3231_v2, %v6584_v24  ;;  %v3232_v59 = vld [vmem:[%s4518_s30 + $0x1f8] sm:$0xff]  ;;  %v6585_v18 = vld [vmem:[#allocation37_spill] sm:$0xff] }
 0x48d   : > { %v3292_v33 = vadd.f32 %v3228_v36, %v6581_v28  ;;  %3352 = vst [vmem:[%s4518_s30 + $0x1b8] sm:$0xff] %v3288_v31  ;;  %v6586_v50 = vmax.f32 %v6585_v18, 0.0  ;;  %3357 = vst [vmem:[%s4518_s30 + $0x1e0] sm:$0xff] %v3293_v58 }
 0x48e   : > { %3354 = vst [vmem:[%s4518_s30 + $0x1c8] sm:$0xff] %v3290_v43  ;;  %3355 = vst [vmem:[%s4518_s30 + $0x1d0] sm:$0xff] %v3291_v23 }
 0x48f   : > { %3356 = vst [vmem:[%s4518_s30 + $0x1d8] sm:$0xff] %v3292_v33  ;;  %v3296_v21 = vadd.f32 %v3232_v59, %v6586_v50  ;;  %3358 = vst [vmem:[%s4518_s30 + $0x1e8] sm:$0xff] %v3294_v17 }
 0x490   : > { %3359 = vst [vmem:[%s4518_s30 + $0x1f0] sm:$0xff] %v3295_v26 }
 0x491   : > { %3360 = vst [vmem:[%s4518_s30 + $0x1f8] sm:$0xff] %v3296_v21 }
 0x492 PF: > { %s6587_s24 = sld [smem:[#allocation17_spill]] }
 0x498   : > { %p3853_p9 = scmp.ne.s32.totalorder %s6587_s24, 1 }
 0x49a   : > { %3364 = sbr.rel (%p3853_p9) target bundleno = 1218 (0x4c2), region = 88 }
 0x49f   : > { %v3365_v19 = vld [vmem:[%s4518_s30] sm:$0xff]  ;;  %v3366_v44 = vld [vmem:[%s4518_s30 + $0x8] sm:$0xff]  ;;  %v3367_v4 = vld [vmem:[%s4518_s30 + $0x10] sm:$0xff] }
 0x4a0   : > { %v3429_v63 = vmul.f32 0.5, %v3365_v19  ;;  %v3430_v52 = vmul.f32 0.5, %v3366_v44  ;;  %v3431_v57 = vmul.f32 0.5, %v3367_v4  ;;  %v3368_v7 = vld [vmem:[%s4518_s30 + $0x18] sm:$0xff]  ;;  %v3369_v40 = vld [vmem:[%s4518_s30 + $0x20] sm:$0xff]  ;;  %v3370_v30 = vld [vmem:[%s4518_s30 + $0x28] sm:$0xff] }
 0x4a1   : > { %v3432_v6 = vmul.f32 0.5, %v3368_v7  ;;  %v3433_v11 = vmul.f32 0.5, %v3369_v40  ;;  %v3434_v54 = vmul.f32 0.5, %v3370_v30  ;;  %v3371_v10 = vld [vmem:[%s4518_s30 + $0x30] sm:$0xff]  ;;  %v3372_v29 = vld [vmem:[%s4518_s30 + $0x38] sm:$0xff]  ;;  %v3373_v51 = vld [vmem:[%s4518_s30 + $0x40] sm:$0xff] }
 0x4a2   : > { %3493 = vst [vmem:[%s4518_s30] sm:$0xff] %v3429_v63  ;;  %3494 = vst [vmem:[%s4518_s30 + $0x8] sm:$0xff] %v3430_v52  ;;  %v3435_v13 = vmul.f32 0.5, %v3371_v10  ;;  %v3436_v42 = vmul.f32 0.5, %v3372_v29  ;;  %v3437_v61 = vmul.f32 0.5, %v3373_v51  ;;  %v3374_v35 = vld [vmem:[%s4518_s30 + $0x48] sm:$0xff]  ;;  %v3375_v12 = vld [vmem:[%s4518_s30 + $0x50] sm:$0xff] }
 0x4a3   : > { %3495 = vst [vmem:[%s4518_s30 + $0x10] sm:$0xff] %v3431_v57  ;;  %v3376_v48 = vld [vmem:[%s4518_s30 + $0x58] sm:$0xff]  ;;  %3496 = vst [vmem:[%s4518_s30 + $0x18] sm:$0xff] %v3432_v6  ;;  %v3438_v37 = vmul.f32 0.5, %v3374_v35  ;;  %v3439_v14 = vmul.f32 0.5, %v3375_v12  ;;  %v3377_v20 = vld [vmem:[%s4518_s30 + $0x60] sm:$0xff] }
 0x4a4   : > { %3497 = vst [vmem:[%s4518_s30 + $0x20] sm:$0xff] %v3433_v11  ;;  %3498 = vst [vmem:[%s4518_s30 + $0x28] sm:$0xff] %v3434_v54  ;;  %v3440_v32 = vmul.f32 0.5, %v3376_v48  ;;  %v3378_v47 = vld [vmem:[%s4518_s30 + $0x68] sm:$0xff]  ;;  %v3379_v45 = vld [vmem:[%s4518_s30 + $0x70] sm:$0xff]  ;;  %v3441_v34 = vmul.f32 0.5, %v3377_v20 }
 0x4a5   : > { %3499 = vst [vmem:[%s4518_s30 + $0x30] sm:$0xff] %v3435_v13  ;;  %3500 = vst [vmem:[%s4518_s30 + $0x38] sm:$0xff] %v3436_v42  ;;  %v3442_v39 = vmul.f32 0.5, %v3378_v47  ;;  %v3443_v3 = vmul.f32 0.5, %v3379_v45  ;;  %v3380_v1 = vld [vmem:[%s4518_s30 + $0x78] sm:$0xff]  ;;  %v3381_v25 = vld [vmem:[%s4518_s30 + $0x80] sm:$0xff] }
 0x4a6   : > { %3501 = vst [vmem:[%s4518_s30 + $0x40] sm:$0xff] %v3437_v61  ;;  %v3382_v0 = vld [vmem:[%s4518_s30 + $0x88] sm:$0xff]  ;;  %3502 = vst [vmem:[%s4518_s30 + $0x48] sm:$0xff] %v3438_v37  ;;  %v3444_v60 = vmul.f32 0.5, %v3380_v1  ;;  %v3445_v16 = vmul.f32 0.5, %v3381_v25  ;;  %v3383_v22 = vld [vmem:[%s4518_s30 + $0x90] sm:$0xff] }
 0x4a7   : > { %3503 = vst [vmem:[%s4518_s30 + $0x50] sm:$0xff] %v3439_v14  ;;  %3504 = vst [vmem:[%s4518_s30 + $0x58] sm:$0xff] %v3440_v32  ;;  %v3446_v31 = vmul.f32 0.5, %v3382_v0  ;;  %v3384_v62 = vld [vmem:[%s4518_s30 + $0x98] sm:$0xff]  ;;  %v3385_v38 = vld [vmem:[%s4518_s30 + $0xa0] sm:$0xff]  ;;  %v3447_v9 = vmul.f32 0.5, %v3383_v22 }
 0x4a8   : > { %3505 = vst [vmem:[%s4518_s30 + $0x60] sm:$0xff] %v3441_v34  ;;  %3506 = vst [vmem:[%s4518_s30 + $0x68] sm:$0xff] %v3442_v39  ;;  %v3448_v56 = vmul.f32 0.5, %v3384_v62  ;;  %v3449_v36 = vmul.f32 0.5, %v3385_v38  ;;  %v3386_v41 = vld [vmem:[%s4518_s30 + $0xa8] sm:$0xff]  ;;  %v3387_v49 = vld [vmem:[%s4518_s30 + $0xb0] sm:$0xff] }
 0x4a9   : > { %3507 = vst [vmem:[%s4518_s30 + $0x70] sm:$0xff] %v3443_v3  ;;  %v3388_v43 = vld [vmem:[%s4518_s30 + $0xb8] sm:$0xff]  ;;  %3508 = vst [vmem:[%s4518_s30 + $0x78] sm:$0xff] %v3444_v60  ;;  %v3450_v27 = vmul.f32 0.5, %v3386_v41  ;;  %v3451_v53 = vmul.f32 0.5, %v3387_v49  ;;  %v3389_v15 = vld [vmem:[%s4518_s30 + $0xc0] sm:$0xff] }
 0x4aa   : > { %3509 = vst [vmem:[%s4518_s30 + $0x80] sm:$0xff] %v3445_v16  ;;  %3510 = vst [vmem:[%s4518_s30 + $0x88] sm:$0xff] %v3446_v31  ;;  %v3452_v23 = vmul.f32 0.5, %v3388_v43  ;;  %v3390_v28 = vld [vmem:[%s4518_s30 + $0xc8] sm:$0xff]  ;;  %v3391_v33 = vld [vmem:[%s4518_s30 + $0xd0] sm:$0xff]  ;;  %v3453_v46 = vmul.f32 0.5, %v3389_v15 }
 0x4ab   : > { %3511 = vst [vmem:[%s4518_s30 + $0x90] sm:$0xff] %v3447_v9  ;;  %3512 = vst [vmem:[%s4518_s30 + $0x98] sm:$0xff] %v3448_v56  ;;  %v3454_v5 = vmul.f32 0.5, %v3390_v28  ;;  %v3455_v2 = vmul.f32 0.5, %v3391_v33  ;;  %v3392_v8 = vld [vmem:[%s4518_s30 + $0xd8] sm:$0xff]  ;;  %v3393_v58 = vld [vmem:[%s4518_s30 + $0xe0] sm:$0xff] }
 0x4ac   : > { %3513 = vst [vmem:[%s4518_s30 + $0xa0] sm:$0xff] %v3449_v36  ;;  %v3394_v55 = vld [vmem:[%s4518_s30 + $0xe8] sm:$0xff]  ;;  %3514 = vst [vmem:[%s4518_s30 + $0xa8] sm:$0xff] %v3450_v27  ;;  %v3456_v17 = vmul.f32 0.5, %v3392_v8  ;;  %v3457_v24 = vmul.f32 0.5, %v3393_v58  ;;  %v3395_v59 = vld [vmem:[%s4518_s30 + $0xf0] sm:$0xff] }
 0x4ad   : > { %3515 = vst [vmem:[%s4518_s30 + $0xb0] sm:$0xff] %v3451_v53  ;;  %3516 = vst [vmem:[%s4518_s30 + $0xb8] sm:$0xff] %v3452_v23  ;;  %v3458_v26 = vmul.f32 0.5, %v3394_v55  ;;  %v3396_v18 = vld [vmem:[%s4518_s30 + $0xf8] sm:$0xff]  ;;  %v3397_v50 = vld [vmem:[%s4518_s30 + $0x100] sm:$0xff]  ;;  %v3459_v21 = vmul.f32 0.5, %v3395_v59 }
 0x4ae   : > { %3517 = vst [vmem:[%s4518_s30 + $0xc0] sm:$0xff] %v3453_v46  ;;  %3518 = vst [vmem:[%s4518_s30 + $0xc8] sm:$0xff] %v3454_v5  ;;  %v3460_v19 = vmul.f32 0.5, %v3396_v18  ;;  %v3461_v44 = vmul.f32 0.5, %v3397_v50  ;;  %v3398_v4 = vld [vmem:[%s4518_s30 + $0x108] sm:$0xff]  ;;  %v3399_v63 = vld [vmem:[%s4518_s30 + $0x110] sm:$0xff] }
 0x4af   : > { %3519 = vst [vmem:[%s4518_s30 + $0xd0] sm:$0xff] %v3455_v2  ;;  %v3400_v52 = vld [vmem:[%s4518_s30 + $0x118] sm:$0xff]  ;;  %3520 = vst [vmem:[%s4518_s30 + $0xd8] sm:$0xff] %v3456_v17  ;;  %v3462_v57 = vmul.f32 0.5, %v3398_v4  ;;  %v3463_v7 = vmul.f32 0.5, %v3399_v63  ;;  %v3401_v30 = vld [vmem:[%s4518_s30 + $0x120] sm:$0xff] }
 0x4b0   : > { %3521 = vst [vmem:[%s4518_s30 + $0xe0] sm:$0xff] %v3457_v24  ;;  %3522 = vst [vmem:[%s4518_s30 + $0xe8] sm:$0xff] %v3458_v26  ;;  %v3464_v40 = vmul.f32 0.5, %v3400_v52  ;;  %v3402_v6 = vld [vmem:[%s4518_s30 + $0x128] sm:$0xff]  ;;  %v3403_v11 = vld [vmem:[%s4518_s30 + $0x130] sm:$0xff]  ;;  %v3465_v54 = vmul.f32 0.5, %v3401_v30 }
 0x4b1   : > { %3523 = vst [vmem:[%s4518_s30 + $0xf0] sm:$0xff] %v3459_v21  ;;  %3524 = vst [vmem:[%s4518_s30 + $0xf8] sm:$0xff] %v3460_v19  ;;  %v3466_v10 = vmul.f32 0.5, %v3402_v6  ;;  %v3467_v29 = vmul.f32 0.5, %v3403_v11  ;;  %v3404_v51 = vld [vmem:[%s4518_s30 + $0x138] sm:$0xff]  ;;  %v3405_v13 = vld [vmem:[%s4518_s30 + $0x140] sm:$0xff] }
 0x4b2   : > { %3525 = vst [vmem:[%s4518_s30 + $0x100] sm:$0xff] %v3461_v44  ;;  %v3406_v42 = vld [vmem:[%s4518_s30 + $0x148] sm:$0xff]  ;;  %3526 = vst [vmem:[%s4518_s30 + $0x108] sm:$0xff] %v3462_v57  ;;  %v3468_v61 = vmul.f32 0.5, %v3404_v51  ;;  %v3469_v35 = vmul.f32 0.5, %v3405_v13  ;;  %v3407_v48 = vld [vmem:[%s4518_s30 + $0x150] sm:$0xff] }
 0x4b3   : > { %3527 = vst [vmem:[%s4518_s30 + $0x110] sm:$0xff] %v3463_v7  ;;  %3528 = vst [vmem:[%s4518_s30 + $0x118] sm:$0xff] %v3464_v40  ;;  %v3470_v12 = vmul.f32 0.5, %v3406_v42  ;;  %v3408_v37 = vld [vmem:[%s4518_s30 + $0x158] sm:$0xff]  ;;  %v3409_v14 = vld [vmem:[%s4518_s30 + $0x160] sm:$0xff]  ;;  %v3471_v32 = vmul.f32 0.5, %v3407_v48 }
 0x4b4   : > { %3529 = vst [vmem:[%s4518_s30 + $0x120] sm:$0xff] %v3465_v54  ;;  %3530 = vst [vmem:[%s4518_s30 + $0x128] sm:$0xff] %v3466_v10  ;;  %v3472_v20 = vmul.f32 0.5, %v3408_v37  ;;  %v3473_v47 = vmul.f32 0.5, %v3409_v14  ;;  %v3410_v45 = vld [vmem:[%s4518_s30 + $0x168] sm:$0xff]  ;;  %v3411_v34 = vld [vmem:[%s4518_s30 + $0x170] sm:$0xff] }
 0x4b5   : > { %3531 = vst [vmem:[%s4518_s30 + $0x130] sm:$0xff] %v3467_v29  ;;  %v3412_v39 = vld [vmem:[%s4518_s30 + $0x178] sm:$0xff]  ;;  %3532 = vst [vmem:[%s4518_s30 + $0x138] sm:$0xff] %v3468_v61  ;;  %v3474_v3 = vmul.f32 0.5, %v3410_v45  ;;  %v3475_v1 = vmul.f32 0.5, %v3411_v34  ;;  %v3413_v0 = vld [vmem:[%s4518_s30 + $0x180] sm:$0xff] }
 0x4b6   : > { %3533 = vst [vmem:[%s4518_s30 + $0x140] sm:$0xff] %v3469_v35  ;;  %3534 = vst [vmem:[%s4518_s30 + $0x148] sm:$0xff] %v3470_v12  ;;  %v3476_v25 = vmul.f32 0.5, %v3412_v39  ;;  %v3414_v60 = vld [vmem:[%s4518_s30 + $0x188] sm:$0xff]  ;;  %v3415_v16 = vld [vmem:[%s4518_s30 + $0x190] sm:$0xff]  ;;  %v3477_v31 = vmul.f32 0.5, %v3413_v0 }
 0x4b7   : > { %3535 = vst [vmem:[%s4518_s30 + $0x150] sm:$0xff] %v3471_v32  ;;  %3536 = vst [vmem:[%s4518_s30 + $0x158] sm:$0xff] %v3472_v20  ;;  %v3478_v22 = vmul.f32 0.5, %v3414_v60  ;;  %v3479_v62 = vmul.f32 0.5, %v3415_v16  ;;  %v3416_v38 = vld [vmem:[%s4518_s30 + $0x198] sm:$0xff]  ;;  %v3417_v9 = vld [vmem:[%s4518_s30 + $0x1a0] sm:$0xff] }
 0x4b8   : > { %3537 = vst [vmem:[%s4518_s30 + $0x160] sm:$0xff] %v3473_v47  ;;  %v3418_v56 = vld [vmem:[%s4518_s30 + $0x1a8] sm:$0xff]  ;;  %3538 = vst [vmem:[%s4518_s30 + $0x168] sm:$0xff] %v3474_v3  ;;  %v3480_v36 = vmul.f32 0.5, %v3416_v38  ;;  %v3481_v41 = vmul.f32 0.5, %v3417_v9  ;;  %v3419_v43 = vld [vmem:[%s4518_s30 + $0x1b0] sm:$0xff] }
 0x4b9   : > { %3539 = vst [vmem:[%s4518_s30 + $0x170] sm:$0xff] %v3475_v1  ;;  %3540 = vst [vmem:[%s4518_s30 + $0x178] sm:$0xff] %v3476_v25  ;;  %v3482_v49 = vmul.f32 0.5, %v3418_v56  ;;  %v3420_v27 = vld [vmem:[%s4518_s30 + $0x1b8] sm:$0xff]  ;;  %v3421_v53 = vld [vmem:[%s4518_s30 + $0x1c0] sm:$0xff]  ;;  %v3483_v23 = vmul.f32 0.5, %v3419_v43 }
 0x4ba   : > { %3541 = vst [vmem:[%s4518_s30 + $0x180] sm:$0xff] %v3477_v31  ;;  %3542 = vst [vmem:[%s4518_s30 + $0x188] sm:$0xff] %v3478_v22  ;;  %v3484_v15 = vmul.f32 0.5, %v3420_v27  ;;  %v3485_v28 = vmul.f32 0.5, %v3421_v53  ;;  %v3422_v33 = vld [vmem:[%s4518_s30 + $0x1c8] sm:$0xff]  ;;  %v3423_v46 = vld [vmem:[%s4518_s30 + $0x1d0] sm:$0xff] }
 0x4bb   : > { %3543 = vst [vmem:[%s4518_s30 + $0x190] sm:$0xff] %v3479_v62  ;;  %v3424_v5 = vld [vmem:[%s4518_s30 + $0x1d8] sm:$0xff]  ;;  %3544 = vst [vmem:[%s4518_s30 + $0x198] sm:$0xff] %v3480_v36  ;;  %v3486_v2 = vmul.f32 0.5, %v3422_v33  ;;  %v3487_v8 = vmul.f32 0.5, %v3423_v46  ;;  %v3425_v55 = vld [vmem:[%s4518_s30 + $0x1e0] sm:$0xff] }
 0x4bc   : > { %3545 = vst [vmem:[%s4518_s30 + $0x1a0] sm:$0xff] %v3481_v41  ;;  %3546 = vst [vmem:[%s4518_s30 + $0x1a8] sm:$0xff] %v3482_v49  ;;  %v3488_v58 = vmul.f32 0.5, %v3424_v5  ;;  %v3426_v17 = vld [vmem:[%s4518_s30 + $0x1e8] sm:$0xff]  ;;  %v3427_v24 = vld [vmem:[%s4518_s30 + $0x1f0] sm:$0xff]  ;;  %v3489_v26 = vmul.f32 0.5, %v3425_v55 }
 0x4bd   : > { %3547 = vst [vmem:[%s4518_s30 + $0x1b0] sm:$0xff] %v3483_v23  ;;  %3548 = vst [vmem:[%s4518_s30 + $0x1b8] sm:$0xff] %v3484_v15  ;;  %v3490_v59 = vmul.f32 0.5, %v3426_v17  ;;  %v3491_v18 = vmul.f32 0.5, %v3427_v24  ;;  %v3428_v50 = vld [vmem:[%s4518_s30 + $0x1f8] sm:$0xff] }
 0x4be   : > { %3549 = vst [vmem:[%s4518_s30 + $0x1c0] sm:$0xff] %v3485_v28  ;;  %3550 = vst [vmem:[%s4518_s30 + $0x1c8] sm:$0xff] %v3486_v2  ;;  %v3492_v21 = vmul.f32 0.5, %v3428_v50 }
 0x4bf   : > { %3551 = vst [vmem:[%s4518_s30 + $0x1d0] sm:$0xff] %v3487_v8  ;;  %3552 = vst [vmem:[%s4518_s30 + $0x1d8] sm:$0xff] %v3488_v58 }
 0x4c0   : > { %3553 = vst [vmem:[%s4518_s30 + $0x1e0] sm:$0xff] %v3489_v26  ;;  %3554 = vst [vmem:[%s4518_s30 + $0x1e8] sm:$0xff] %v3490_v59 }
 0x4c1   : > { %3555 = vst [vmem:[%s4518_s30 + $0x1f0] sm:$0xff] %v3491_v18  ;;  %3556 = vst [vmem:[%s4518_s30 + $0x1f8] sm:$0xff] %v3492_v21 }
 0x4c2 PF: > { %s6588_s5 = sld [smem:[#allocation18_spill]]  ;;  %s3860_s28 = sshll.u32 %s4244_s16, 13 }
 0x4c3   : > { %s6589_s6 = sld [smem:[#allocation69_spill]]  ;;  %s3573_s4 = sshll.u32 %s4518_s30, 4  ;;  %s6167_s4 = int_to_ptr.vmem [resolvable:$true] %s3573_s4 }
 0x4c4   : > { %s6171_s25 = scalar_lea.sflag [#allocation5], %s436_s8  ;;  %s4128_s21 = scalar_lea.vmem %s6167_s4, 8192 }
 0x4c5   : > { %p4129_p2 = scmp.ne.s32.totalorder %s6167_s4, %s4128_s21  ;;  %s4270_s16 = smov [#allocation11]  }
 0x4c6   : > { %s4132_s15 = sshll.u32 %s4270_s16, 4  ;;  %s4133_s15 = int_to_ptr.vmem [resolvable:$false] %s4132_s15 }
 0x4c7   : > { %s4134_s12 = scalar_lea.vmem %s4133_s15, 16384  ;;  %p4135_p7 = scmp.lt.s32.totalorder %s6167_s4, %s4133_s15 }
 0x4c8   : > { %p6590_p6 = scmp.ne.s32.totalorder %s6588_s5, 0  ;;  %p4136_p0 = scmp.lt.s32.totalorder %s4134_s12, %s4128_s21 }
 0x4c9   : > { %s6164_s26 = scalar_lea.hbm %s6589_s6, %s3860_s28 }
 0x4ca   : > { %p4130_p4 = pnand %p4129_p2, %p6590_p6  ;;  %p4137_p8 = por %p4136_p0, %p4135_p7 }
 0x4cc   : > { %p4131_p5 = pneg %p4130_p4 }
 0x4ce   : > { %p4138_p10 = pnand %p4137_p8, %p4131_p5 }
 0x4d0   : > { %4141 = shalt.err (!%p4138_p10)
}
 0x4d1   : > { %s4142_s8 = scalar_lea.hbm %s6164_s26, 8192  ;;  %s4146_s28 = scalar_lea.hbm %s6589_s6, 16384 }
 0x4d2   : > { %p4143_p12 = scmp.ne.s32.totalorder %s6164_s26, %s4142_s8  ;;  %p4147_p3 = scmp.lt.s32.totalorder %s6164_s26, %s6589_s6 }
 0x4d3   : > { %p4148_p1 = scmp.lt.s32.totalorder %s4146_s28, %s4142_s8 }
 0x4d4   : > { %p4144_p13 = pnand %p4143_p12, %p6590_p6 }
 0x4d5   : > { %p4149_p9 = por %p4148_p1, %p4147_p3 }
 0x4d6   : > { %p4145_p11 = pneg %p4144_p13 }
 0x4d8   : > { %p4150_p2 = pnand %p4149_p9, %p4145_p11 }
 0x4da   : > { %4153 = shalt.err (!%p4150_p2)
}
 0x4db   : > { %s4271_s21 = smov 2048   ;;  %s4272_s16 = smov 128  }
 0x4dc   : > { %3879 = dma.vmem_to_hbm [thread:$0]  (%p6590_p6), %s6167_s4, 8192, %s6164_s26, %s6171_s25, %s4271_s21, %s4271_s21, %s4272_s16  }
 0x4dd PF: > { %s6591_s15 = sld [smem:[#allocation16_spill]]  ;;  %p3906_p4 = scmp.ge.s32.totalorder %s4256_s19, 2 }
 0x4de   : > { %s6592_s12 = sld [smem:[#allocation19_spill]] }
 0x4e3   : > { %s3588_s30 = sand.u32 1, %s6591_s15  }
 0x4e4   : > { %p6593_p5 = scmp.ne.s32.totalorder %s6592_s12, 0  ;;  %s3589_s8 = scalar_lea.sflag [#allocation5], %s3588_s30 }
 0x4e6   : > { %p3896_p7 = pnand %p3906_p4, %p6593_p5 }
 0x4e8   : > { %p3897_p0 = pneg %p3896_p7 }
 0x4ea   : > { %4211 = dma.done.wait (%p3897_p0), %s3589_s8, 8192  }
 0x4eb   : > { %4213 = vsyncadd (%p3897_p0), %s3589_s8, 4294959104  ;;  %s27_s19 = sadd.s32 1, %s4256_s19   ;;  %s6594_s5 = sld [smem:[#allocation20_spill]] }
 0x4ec   : > { %p24_p8 = scmp.ge.s32.totalorder %s27_s19, 6   ;;  %s6595_s30 = smov %s4220_s10 }
 0x4ed   : > { %s6596_s10 = smov %s4224_s11  ;;  %s6597_s11 = smov %s4471_s2 }
 0x4ee   : > { %s6598_s12 = smov %s4232_s13  ;;  %s6599_s13 = smov %s4236_s14 }
 0x4ef   : > { %s6600_s14 = smov %s4474_s3  ;;  %s6601_s15 = smov %s4248_s17 }
 0x4f0   : > { %s6602_s16 = smov %s4252_s18  ;;  %s6604_s18 = smov %s6610_s23 }
 0x4f1   : > { %s6603_s17 = smov %s6594_s5  ;;  %26 = sbr.rel (!%p24_p8) target bundleno = 20 (0x14), region = 132 }
 0x4f6   :  { %3594 = vsyncpa [#allocation4], 1 }
 0x4f7   :  { %3596 = vsyncpa [#allocation4 + $0x1], 1 }
 0x4f8   :  { %3597 = vsyncpa [#allocation7], 1 }
 0x4f9   :  { %3598 = vsyncpa [#allocation10], 1 }
 0x4fa   :  { %3599 = vsyncpa [#allocation5], 1 }
 0x4fb   :  { %3601 = vsyncpa [#allocation5 + $0x1], 1 }

</bundles_post_ra>
